<compile_context>
chip_gen: v5e
topology: v5e:2x2
jax: 0.10.0
libtpu: 0.0.40
codegen_flags: <defaults>
</compile_context>

<pallas_src>
import numpy as np
import jax
import jax.numpy as jnp
from jax.experimental import pallas as pl
from jax.experimental.pallas import tpu as pltpu


# ---------------------------------------------------------------------------
# Constant 0/1 "tap selection" matrices: the row-gather of a 3x3 / stride-2 /
# pad-1 conv expressed as a matmul, so the kernel contains only matmuls.
#   S[t, oh*OW + ow, h*IW + w] = 1   with  h = 2*oh + di - 1, w = 2*ow + dj - 1
# Rows that fall into the zero padding simply have no 1 -> contribute 0.
# ---------------------------------------------------------------------------
def _make_tap_select(ih, iw, oh, ow, k=3, stride=2, pad=1):
    s = np.zeros((k * k, oh * ow, ih * iw), np.float32)
    for di in range(k):
        for dj in range(k):
            t = di * k + dj
            for o_h in range(oh):
                h = stride * o_h + di - pad
                if not 0 <= h < ih:
                    continue
                for o_w in range(ow):
                    w = stride * o_w + dj - pad
                    if not 0 <= w < iw:
                        continue
                    s[t, o_h * ow + o_w, h * iw + w] = 1.0
    return s


# ---------------------------------------------------------------------------
# Fused forward kernel: conv1 -> conv2 -> conv3 -> fc for ONE image.
# Every layer is a bf16 MXU matmul with f32 accumulation; bias + ReLU on the
# VPU; activations stay in VMEM the whole time.
# ---------------------------------------------------------------------------
def _cnn_kernel(a1_ref, w1_ref, b1_ref,
                s2_ref, w2_ref, b2_ref,
                s3_ref, w3_ref, b3_ref,
                wfc_ref, bfc_ref,
                out_ref,
                act1_ref, act2_ref):
    f32 = jnp.float32
    bf16 = jnp.bfloat16

    # conv1: (196, 9) @ (9, 64) + bias, ReLU -> act1 (196, 64) in VMEM.
    # (K=9 pads to 128 MXU lanes, but the MXU is idle at this size and the
    #  inflated A1 is only a few KB.)
    y1 = jnp.dot(a1_ref[0], w1_ref[...], preferred_element_type=f32)
    act1_ref[...] = jnp.maximum(y1 + b1_ref[...], 0.0).astype(bf16)

    # conv2: 9 taps.  Gather the shifted stride-2 window rows with S2[t]
    # (a 0/1 matrix -> exact in bf16), then (49, 64) @ (64, 128).
    acc2 = jnp.zeros((49, 128), f32)
    for t in range(9):
        g = jnp.dot(s2_ref[t], act1_ref[...], preferred_element_type=f32)
        acc2 = acc2 + jnp.dot(g.astype(bf16), w2_ref[t],
                              preferred_element_type=f32)
    act2_ref[...] = jnp.maximum(acc2 + b2_ref[...], 0.0).astype(bf16)

    # conv3: same structure, (16, 49) gather then (16, 128) @ (128, 256).
    acc3 = jnp.zeros((16, 256), f32)
    for t in range(9):
        g = jnp.dot(s3_ref[t], act2_ref[...], preferred_element_type=f32)
        acc3 = acc3 + jnp.dot(g.astype(bf16), w3_ref[t],
                              preferred_element_type=f32)
    act3 = jnp.maximum(acc3 + b3_ref[...], 0.0).astype(bf16)      # (16, 256)

    # fc: logits = sum_p act3[p] @ Wfc[p] + bias.  Wfc is pre-permuted so
    # this reproduces PyTorch's (C, H, W) flatten order exactly.
    logits = bfc_ref[...].astype(f32)                             # (1, 10)
    for p in range(16):
        logits = logits + jnp.dot(act3[p:p + 1, :], wfc_ref[p],
                                  preferred_element_type=f32)
    out_ref[0] = logits


def _fused_forward(a1, pk, n):
    kernel = pl.pallas_call(
        _cnn_kernel,
        out_shape=jax.ShapeDtypeStruct((n, 1, 10), jnp.float32),
        grid_spec=pltpu.PrefetchScalarGridSpec(
            num_scalar_prefetch=0,
            grid=(n,),                                        # one image / step
            in_specs=[
                pl.BlockSpec((1, 196, 9), lambda i: (i, 0, 0)),    # conv1 im2col
                pl.BlockSpec((9, 64), lambda i: (0, 0)),           # w1
                pl.BlockSpec((1, 64), lambda i: (0, 0)),           # b1
                pl.BlockSpec((9, 49, 196), lambda i: (0, 0, 0)),   # S2 gather
                pl.BlockSpec((9, 64, 128), lambda i: (0, 0, 0)),   # w2 per tap
                pl.BlockSpec((1, 128), lambda i: (0, 0)),          # b2
                pl.BlockSpec((9, 16, 49), lambda i: (0, 0, 0)),    # S3 gather
                pl.BlockSpec((9, 128, 256), lambda i: (0, 0, 0)),  # w3 per tap
                pl.BlockSpec((1, 256), lambda i: (0, 0)),          # b3
                pl.BlockSpec((16, 256, 10), lambda i: (0, 0, 0)),  # fc weight
                pl.BlockSpec((1, 10), lambda i: (0, 0)),           # fc bias
            ],
            out_specs=pl.BlockSpec((1, 1, 10), lambda i: (i, 0, 0)),
            scratch_shapes=[
                pltpu.VMEM((196, 64), jnp.bfloat16),   # act1 (14*14, 64)
                pltpu.VMEM((49, 128), jnp.bfloat16),   # act2 (7*7, 128)
            ],
        ),
        compiler_params=pltpu.CompilerParams(
            dimension_semantics=("parallel",),         # megacore on v7x
            vmem_limit_bytes=32 * 1024 * 1024,
        ),
    )
    out = kernel(a1, pk["w1"], pk["b1"], pk["s2"], pk["w2"], pk["b2"],
                 pk["s3"], pk["w3"], pk["b3"], pk["wfc"], pk["bfc"])
    return out.reshape(n, 10)


# ---------------------------------------------------------------------------
# Parameters: PyTorch-convention init, then a one-time pack into kernel layout.
# ---------------------------------------------------------------------------
def init_params(key):
    def conv_p(k, oc, ic, ks):
        k1, k2 = jax.random.split(k)
        s = 1.0 / np.sqrt(ic * ks * ks)
        w = jax.random.uniform(k1, (oc, ic, ks, ks), jnp.float32, -s, s)
        b = jax.random.uniform(k2, (oc,), jnp.float32, -s, s)
        return w, b

    def fc_p(k, out_f, in_f):
        k1, k2 = jax.random.split(k)
        s = 1.0 / np.sqrt(in_f)
        w = jax.random.uniform(k1, (out_f, in_f), jnp.float32, -s, s)
        b = jax.random.uniform(k2, (out_f,), jnp.float32, -s, s)
        return w, b

    k1, k2, k3, k4 = jax.random.split(key, 4)
    return {"conv1": conv_p(k1, 64, 1, 3), "conv2": conv_p(k2, 128, 64, 3),
            "conv3": conv_p(k3, 256, 128, 3), "fc": fc_p(k4, 10, 4 * 4 * 256)}


def pack_params(params):
    """One-time re-layout of PyTorch weights into lane-dense bf16 matrices."""
    bf16 = jnp.bfloat16
    w1, b1 = params["conv1"]          # (64, 1, 3, 3), (64,)
    w2, b2 = params["conv2"]          # (128, 64, 3, 3)
    w3, b3 = params["conv3"]          # (256, 128, 3, 3)
    wf, bf = params["fc"]             # (10, 4096), (10,)
    return {
        # conv1 as (9, 64), tap order t = di*3 + dj.
        "w1": jnp.transpose(w1.reshape(64, 9), (1, 0)).astype(bf16),
        "b1": b1.reshape(1, 64),
        # conv2/conv3 as per-tap (IC, OC) slices: (9, IC, OC).
        "w2": jnp.transpose(w2, (2, 3, 1, 0)).reshape(9, 64, 128).astype(bf16),
        "b2": b2.reshape(1, 128),
        "w3": jnp.transpose(w3, (2, 3, 1, 0)).reshape(9, 128, 256).astype(bf16),
        "b3": b3.reshape(1, 256),
        # fc weight permuted from PyTorch (C, H, W) flatten to the kernel's
        # (p = H*W, C) activation layout: (16, 256, 10).
        "wfc": jnp.transpose(wf.reshape(10, 256, 4, 4),
                             (2, 3, 1, 0)).reshape(16, 256, 10).astype(bf16),
        "bfc": bf.reshape(1, 10),
        # Constant gather matrices for the stride-2 taps (0/1 -> exact bf16).
        "s2": jnp.asarray(_make_tap_select(14, 14, 7, 7), dtype=bf16),
        "s3": jnp.asarray(_make_tap_select(7, 7, 4, 4), dtype=bf16),
    }


# ---------------------------------------------------------------------------
# Full forward pass.
# ---------------------------------------------------------------------------
@jax.jit
def cnn_forward(packed, x):
    # x: (N, 1, 28, 28) NCHW, as in the PyTorch module.
    n = x.shape[0]
    # Tiny wrapper-side im2col of the raw input for conv1 (IC=1): (N, 196, 9).
    xp = jnp.pad(x[:, 0], ((0, 0), (1, 1), (1, 1)))            # (N, 30, 30)
    cols = [xp[:, di:di + 27:2, dj:dj + 27:2]
            for di in range(3) for dj in range(3)]             # each (N, 14, 14)
    a1 = jnp.stack(cols, axis=-1).reshape(n, 196, 9).astype(jnp.bfloat16)
    return _fused_forward(a1, packed, n)                       # (N, 10) f32


if __name__ == "__main__":
    key = jax.random.PRNGKey(0)
    k_param, k_input = jax.random.split(key)
    params = init_params(k_param)
    packed = pack_params(params)

    # MNIST-shaped input: batch=2, 1 channel, 28x28 (fc expects 4*4*256).
    x = jax.random.normal(k_input, (2, 1, 28, 28), dtype=jnp.float32)

    out = cnn_forward(packed, x)
    jax.block_until_ready(out)
    assert out.shape == (2, 10), out.shape
    print("KERNEL_OK")
</pallas_src>

<mosaic_0001>
module attributes {stable_mosaic.version = 11 : i64} {
  func.func @_cnn_kernel(%arg0: i32, %arg1: memref<1x196x9xbf16, #tpu.memory_space<vmem>>, %arg2: memref<9x64xbf16, #tpu.memory_space<vmem>>, %arg3: memref<1x64xf32, #tpu.memory_space<vmem>>, %arg4: memref<9x49x196xbf16, #tpu.memory_space<vmem>>, %arg5: memref<9x64x128xbf16, #tpu.memory_space<vmem>>, %arg6: memref<1x128xf32, #tpu.memory_space<vmem>>, %arg7: memref<9x16x49xbf16, #tpu.memory_space<vmem>>, %arg8: memref<9x128x256xbf16, #tpu.memory_space<vmem>>, %arg9: memref<1x256xf32, #tpu.memory_space<vmem>>, %arg10: memref<16x256x10xbf16, #tpu.memory_space<vmem>>, %arg11: memref<1x10xf32, #tpu.memory_space<vmem>>, %arg12: memref<1x1x10xf32, #tpu.memory_space<vmem>>, %arg13: memref<196x64xbf16, #tpu.memory_space<vmem>>, %arg14: memref<49x128xbf16, #tpu.memory_space<vmem>>) attributes {dimension_semantics = [#tpu.dimension_semantics<parallel>], iteration_bounds = array<i64: 2>, scalar_prefetch = 0 : i64, scratch_operands = 2 : i64, tpu.core_type = #tpu.core_type<tc>, window_params = [{transform_indices = @transform_0, window_bounds = array<i64: 1, 196, 9>}, {pipeline_mode = #tpu.pipeline_mode<synchronous>, transform_indices = @transform_1, window_bounds = array<i64: 9, 64>}, {pipeline_mode = #tpu.pipeline_mode<synchronous>, transform_indices = @transform_2, window_bounds = array<i64: 1, 64>}, {pipeline_mode = #tpu.pipeline_mode<synchronous>, transform_indices = @transform_3, window_bounds = array<i64: 9, 49, 196>}, {pipeline_mode = #tpu.pipeline_mode<synchronous>, transform_indices = @transform_4, window_bounds = array<i64: 9, 64, 128>}, {pipeline_mode = #tpu.pipeline_mode<synchronous>, transform_indices = @transform_5, window_bounds = array<i64: 1, 128>}, {pipeline_mode = #tpu.pipeline_mode<synchronous>, transform_indices = @transform_6, window_bounds = array<i64: 9, 16, 49>}, {pipeline_mode = #tpu.pipeline_mode<synchronous>, transform_indices = @transform_7, window_bounds = array<i64: 9, 128, 256>}, {pipeline_mode = #tpu.pipeline_mode<synchronous>, transform_indices = @transform_8, window_bounds = array<i64: 1, 256>}, {pipeline_mode = #tpu.pipeline_mode<synchronous>, transform_indices = @transform_9, window_bounds = array<i64: 16, 256, 10>}, {pipeline_mode = #tpu.pipeline_mode<synchronous>, transform_indices = @transform_10, window_bounds = array<i64: 1, 10>}, {transform_indices = @transform_11, window_bounds = array<i64: 1, 1, 10>}]} {
    %c0 = arith.constant 0 : index
    %c0_0 = arith.constant 0 : index
    %c0_1 = arith.constant 0 : index
    %0 = vector.load %arg1[%c0, %c0_0, %c0_1] : memref<1x196x9xbf16, #tpu.memory_space<vmem>>, vector<1x196x9xbf16>
    %1 = vector.shape_cast %0 : vector<1x196x9xbf16> to vector<196x9xbf16>
    %c0_2 = arith.constant 0 : index
    %c0_3 = arith.constant 0 : index
    %2 = vector.load %arg2[%c0_2, %c0_3] : memref<9x64xbf16, #tpu.memory_space<vmem>>, vector<9x64xbf16>
    %cst = arith.constant dense<0.000000e+00> : vector<196x64xf32>
    %3 = tpu.matmul %1, %2, %cst {dimension_numbers = #tpu.dot_dimension_numbers<[1], [0], [0], [1], [0, 0, 1, 1], [], []>} : vector<196x9xbf16>, vector<9x64xbf16>, vector<196x64xf32> -> vector<196x64xf32>
    %c0_4 = arith.constant 0 : index
    %c0_5 = arith.constant 0 : index
    %4 = vector.load %arg3[%c0_4, %c0_5] : memref<1x64xf32, #tpu.memory_space<vmem>>, vector<1x64xf32>
    %5 = vector.broadcast %4 : vector<1x64xf32> to vector<196x64xf32>
    %6 = arith.addf %3, %5 : vector<196x64xf32>
    %cst_6 = arith.constant 0.000000e+00 : f32
    %7 = vector.broadcast %cst_6 : f32 to vector<196x64xf32>
    %8 = arith.maximumf %6, %7 : vector<196x64xf32>
    %9 = arith.truncf %8 : vector<196x64xf32> to vector<196x64xbf16>
    %c0_7 = arith.constant 0 : index
    %c0_8 = arith.constant 0 : index
    %10 = vector.load %arg13[%c0_7, %c0_8] : memref<196x64xbf16, #tpu.memory_space<vmem>>, vector<196x64xbf16>
    tpu.vector_store %arg13[%c0_7, %c0_8], %9 {strides = array<i32>} : memref<196x64xbf16, #tpu.memory_space<vmem>>, vector<196x64xbf16>,
    %cst_9 = arith.constant 0.000000e+00 : f32
    %11 = vector.broadcast %cst_9 : f32 to vector<49x128xf32>
    %c0_10 = arith.constant 0 : index
    %c0_11 = arith.constant 0 : index
    %c0_12 = arith.constant 0 : index
    %12 = vector.load %arg4[%c0_10, %c0_11, %c0_12] : memref<9x49x196xbf16, #tpu.memory_space<vmem>>, vector<1x49x196xbf16>
    %13 = vector.shape_cast %12 : vector<1x49x196xbf16> to vector<49x196xbf16>
    %c0_13 = arith.constant 0 : index
    %c0_14 = arith.constant 0 : index
    %14 = vector.load %arg13[%c0_13, %c0_14] : memref<196x64xbf16, #tpu.memory_space<vmem>>, vector<196x64xbf16>
    %cst_15 = arith.constant dense<0.000000e+00> : vector<49x64xf32>
    %15 = tpu.matmul %13, %14, %cst_15 {dimension_numbers = #tpu.dot_dimension_numbers<[1], [0], [0], [1], [0, 0, 1, 1], [], []>} : vector<49x196xbf16>, vector<196x64xbf16>, vector<49x64xf32> -> vector<49x64xf32>
    %16 = arith.truncf %15 : vector<49x64xf32> to vector<49x64xbf16>
    %c0_16 = arith.constant 0 : index
    %c0_17 = arith.constant 0 : index
    %c0_18 = arith.constant 0 : index
    %17 = vector.load %arg5[%c0_16, %c0_17, %c0_18] : memref<9x64x128xbf16, #tpu.memory_space<vmem>>, vector<1x64x128xbf16>
    %18 = vector.shape_cast %17 : vector<1x64x128xbf16> to vector<64x128xbf16>
    %cst_19 = arith.constant dense<0.000000e+00> : vector<49x128xf32>
    %19 = tpu.matmul %16, %18, %cst_19 {dimension_numbers = #tpu.dot_dimension_numbers<[1], [0], [0], [1], [0, 0, 1, 1], [], []>} : vector<49x64xbf16>, vector<64x128xbf16>, vector<49x128xf32> -> vector<49x128xf32>
    %20 = arith.addf %11, %19 : vector<49x128xf32>
    %c1 = arith.constant 1 : index
    %c0_20 = arith.constant 0 : index
    %c0_21 = arith.constant 0 : index
    %21 = vector.load %arg4[%c1, %c0_20, %c0_21] : memref<9x49x196xbf16, #tpu.memory_space<vmem>>, vector<1x49x196xbf16>
    %22 = vector.shape_cast %21 : vector<1x49x196xbf16> to vector<49x196xbf16>
    %c0_22 = arith.constant 0 : index
    %c0_23 = arith.constant 0 : index
    %23 = vector.load %arg13[%c0_22, %c0_23] : memref<196x64xbf16, #tpu.memory_space<vmem>>, vector<196x64xbf16>
    %cst_24 = arith.constant dense<0.000000e+00> : vector<49x64xf32>
    %24 = tpu.matmul %22, %23, %cst_24 {dimension_numbers = #tpu.dot_dimension_numbers<[1], [0], [0], [1], [0, 0, 1, 1], [], []>} : vector<49x196xbf16>, vector<196x64xbf16>, vector<49x64xf32> -> vector<49x64xf32>
    %25 = arith.truncf %24 : vector<49x64xf32> to vector<49x64xbf16>
    %c1_25 = arith.constant 1 : index
    %c0_26 = arith.constant 0 : index
    %c0_27 = arith.constant 0 : index
    %26 = vector.load %arg5[%c1_25, %c0_26, %c0_27] : memref<9x64x128xbf16, #tpu.memory_space<vmem>>, vector<1x64x128xbf16>
    %27 = vector.shape_cast %26 : vector<1x64x128xbf16> to vector<64x128xbf16>
    %cst_28 = arith.constant dense<0.000000e+00> : vector<49x128xf32>
    %28 = tpu.matmul %25, %27, %cst_28 {dimension_numbers = #tpu.dot_dimension_numbers<[1], [0], [0], [1], [0, 0, 1, 1], [], []>} : vector<49x64xbf16>, vector<64x128xbf16>, vector<49x128xf32> -> vector<49x128xf32>
    %29 = arith.addf %20, %28 : vector<49x128xf32>
    %c2 = arith.constant 2 : index
    %c0_29 = arith.constant 0 : index
    %c0_30 = arith.constant 0 : index
    %30 = vector.load %arg4[%c2, %c0_29, %c0_30] : memref<9x49x196xbf16, #tpu.memory_space<vmem>>, vector<1x49x196xbf16>
    %31 = vector.shape_cast %30 : vector<1x49x196xbf16> to vector<49x196xbf16>
    %c0_31 = arith.constant 0 : index
    %c0_32 = arith.constant 0 : index
    %32 = vector.load %arg13[%c0_31, %c0_32] : memref<196x64xbf16, #tpu.memory_space<vmem>>, vector<196x64xbf16>
    %cst_33 = arith.constant dense<0.000000e+00> : vector<49x64xf32>
    %33 = tpu.matmul %31, %32, %cst_33 {dimension_numbers = #tpu.dot_dimension_numbers<[1], [0], [0], [1], [0, 0, 1, 1], [], []>} : vector<49x196xbf16>, vector<196x64xbf16>, vector<49x64xf32> -> vector<49x64xf32>
    %34 = arith.truncf %33 : vector<49x64xf32> to vector<49x64xbf16>
    %c2_34 = arith.constant 2 : index
    %c0_35 = arith.constant 0 : index
    %c0_36 = arith.constant 0 : index
    %35 = vector.load %arg5[%c2_34, %c0_35, %c0_36] : memref<9x64x128xbf16, #tpu.memory_space<vmem>>, vector<1x64x128xbf16>
    %36 = vector.shape_cast %35 : vector<1x64x128xbf16> to vector<64x128xbf16>
    %cst_37 = arith.constant dense<0.000000e+00> : vector<49x128xf32>
    %37 = tpu.matmul %34, %36, %cst_37 {dimension_numbers = #tpu.dot_dimension_numbers<[1], [0], [0], [1], [0, 0, 1, 1], [], []>} : vector<49x64xbf16>, vector<64x128xbf16>, vector<49x128xf32> -> vector<49x128xf32>
    %38 = arith.addf %29, %37 : vector<49x128xf32>
    %c3 = arith.constant 3 : index
    %c0_38 = arith.constant 0 : index
    %c0_39 = arith.constant 0 : index
    %39 = vector.load %arg4[%c3, %c0_38, %c0_39] : memref<9x49x196xbf16, #tpu.memory_space<vmem>>, vector<1x49x196xbf16>
    %40 = vector.shape_cast %39 : vector<1x49x196xbf16> to vector<49x196xbf16>
    %c0_40 = arith.constant 0 : index
    %c0_41 = arith.constant 0 : index
    %41 = vector.load %arg13[%c0_40, %c0_41] : memref<196x64xbf16, #tpu.memory_space<vmem>>, vector<196x64xbf16>
    %cst_42 = arith.constant dense<0.000000e+00> : vector<49x64xf32>
    %42 = tpu.matmul %40, %41, %cst_42 {dimension_numbers = #tpu.dot_dimension_numbers<[1], [0], [0], [1], [0, 0, 1, 1], [], []>} : vector<49x196xbf16>, vector<196x64xbf16>, vector<49x64xf32> -> vector<49x64xf32>
    %43 = arith.truncf %42 : vector<49x64xf32> to vector<49x64xbf16>
    %c3_43 = arith.constant 3 : index
    %c0_44 = arith.constant 0 : index
    %c0_45 = arith.constant 0 : index
    %44 = vector.load %arg5[%c3_43, %c0_44, %c0_45] : memref<9x64x128xbf16, #tpu.memory_space<vmem>>, vector<1x64x128xbf16>
    %45 = vector.shape_cast %44 : vector<1x64x128xbf16> to vector<64x128xbf16>
    %cst_46 = arith.constant dense<0.000000e+00> : vector<49x128xf32>
    %46 = tpu.matmul %43, %45, %cst_46 {dimension_numbers = #tpu.dot_dimension_numbers<[1], [0], [0], [1], [0, 0, 1, 1], [], []>} : vector<49x64xbf16>, vector<64x128xbf16>, vector<49x128xf32> -> vector<49x128xf32>
    %47 = arith.addf %38, %46 : vector<49x128xf32>
    %c4 = arith.constant 4 : index
    %c0_47 = arith.constant 0 : index
    %c0_48 = arith.constant 0 : index
    %48 = vector.load %arg4[%c4, %c0_47, %c0_48] : memref<9x49x196xbf16, #tpu.memory_space<vmem>>, vector<1x49x196xbf16>
    %49 = vector.shape_cast %48 : vector<1x49x196xbf16> to vector<49x196xbf16>
    %c0_49 = arith.constant 0 : index
    %c0_50 = arith.constant 0 : index
    %50 = vector.load %arg13[%c0_49, %c0_50] : memref<196x64xbf16, #tpu.memory_space<vmem>>, vector<196x64xbf16>
    %cst_51 = arith.constant dense<0.000000e+00> : vector<49x64xf32>
    %51 = tpu.matmul %49, %50, %cst_51 {dimension_numbers = #tpu.dot_dimension_numbers<[1], [0], [0], [1], [0, 0, 1, 1], [], []>} : vector<49x196xbf16>, vector<196x64xbf16>, vector<49x64xf32> -> vector<49x64xf32>
    %52 = arith.truncf %51 : vector<49x64xf32> to vector<49x64xbf16>
    %c4_52 = arith.constant 4 : index
    %c0_53 = arith.constant 0 : index
    %c0_54 = arith.constant 0 : index
    %53 = vector.load %arg5[%c4_52, %c0_53, %c0_54] : memref<9x64x128xbf16, #tpu.memory_space<vmem>>, vector<1x64x128xbf16>
    %54 = vector.shape_cast %53 : vector<1x64x128xbf16> to vector<64x128xbf16>
    %cst_55 = arith.constant dense<0.000000e+00> : vector<49x128xf32>
    %55 = tpu.matmul %52, %54, %cst_55 {dimension_numbers = #tpu.dot_dimension_numbers<[1], [0], [0], [1], [0, 0, 1, 1], [], []>} : vector<49x64xbf16>, vector<64x128xbf16>, vector<49x128xf32> -> vector<49x128xf32>
    %56 = arith.addf %47, %55 : vector<49x128xf32>
    %c5 = arith.constant 5 : index
    %c0_56 = arith.constant 0 : index
    %c0_57 = arith.constant 0 : index
    %57 = vector.load %arg4[%c5, %c0_56, %c0_57] : memref<9x49x196xbf16, #tpu.memory_space<vmem>>, vector<1x49x196xbf16>
    %58 = vector.shape_cast %57 : vector<1x49x196xbf16> to vector<49x196xbf16>
    %c0_58 = arith.constant 0 : index
    %c0_59 = arith.constant 0 : index
    %59 = vector.load %arg13[%c0_58, %c0_59] : memref<196x64xbf16, #tpu.memory_space<vmem>>, vector<196x64xbf16>
    %cst_60 = arith.constant dense<0.000000e+00> : vector<49x64xf32>
    %60 = tpu.matmul %58, %59, %cst_60 {dimension_numbers = #tpu.dot_dimension_numbers<[1], [0], [0], [1], [0, 0, 1, 1], [], []>} : vector<49x196xbf16>, vector<196x64xbf16>, vector<49x64xf32> -> vector<49x64xf32>
    %61 = arith.truncf %60 : vector<49x64xf32> to vector<49x64xbf16>
    %c5_61 = arith.constant 5 : index
    %c0_62 = arith.constant 0 : index
    %c0_63 = arith.constant 0 : index
    %62 = vector.load %arg5[%c5_61, %c0_62, %c0_63] : memref<9x64x128xbf16, #tpu.memory_space<vmem>>, vector<1x64x128xbf16>
    %63 = vector.shape_cast %62 : vector<1x64x128xbf16> to vector<64x128xbf16>
    %cst_64 = arith.constant dense<0.000000e+00> : vector<49x128xf32>
    %64 = tpu.matmul %61, %63, %cst_64 {dimension_numbers = #tpu.dot_dimension_numbers<[1], [0], [0], [1], [0, 0, 1, 1], [], []>} : vector<49x64xbf16>, vector<64x128xbf16>, vector<49x128xf32> -> vector<49x128xf32>
    %65 = arith.addf %56, %64 : vector<49x128xf32>
    %c6 = arith.constant 6 : index
    %c0_65 = arith.constant 0 : index
    %c0_66 = arith.constant 0 : index
    %66 = vector.load %arg4[%c6, %c0_65, %c0_66] : memref<9x49x196xbf16, #tpu.memory_space<vmem>>, vector<1x49x196xbf16>
    %67 = vector.shape_cast %66 : vector<1x49x196xbf16> to vector<49x196xbf16>
    %c0_67 = arith.constant 0 : index
    %c0_68 = arith.constant 0 : index
    %68 = vector.load %arg13[%c0_67, %c0_68] : memref<196x64xbf16, #tpu.memory_space<vmem>>, vector<196x64xbf16>
    %cst_69 = arith.constant dense<0.000000e+00> : vector<49x64xf32>
    %69 = tpu.matmul %67, %68, %cst_69 {dimension_numbers = #tpu.dot_dimension_numbers<[1], [0], [0], [1], [0, 0, 1, 1], [], []>} : vector<49x196xbf16>, vector<196x64xbf16>, vector<49x64xf32> -> vector<49x64xf32>
    %70 = arith.truncf %69 : vector<49x64xf32> to vector<49x64xbf16>
    %c6_70 = arith.constant 6 : index
    %c0_71 = arith.constant 0 : index
    %c0_72 = arith.constant 0 : index
    %71 = vector.load %arg5[%c6_70, %c0_71, %c0_72] : memref<9x64x128xbf16, #tpu.memory_space<vmem>>, vector<1x64x128xbf16>
    %72 = vector.shape_cast %71 : vector<1x64x128xbf16> to vector<64x128xbf16>
    %cst_73 = arith.constant dense<0.000000e+00> : vector<49x128xf32>
    %73 = tpu.matmul %70, %72, %cst_73 {dimension_numbers = #tpu.dot_dimension_numbers<[1], [0], [0], [1], [0, 0, 1, 1], [], []>} : vector<49x64xbf16>, vector<64x128xbf16>, vector<49x128xf32> -> vector<49x128xf32>
    %74 = arith.addf %65, %73 : vector<49x128xf32>
    %c7 = arith.constant 7 : index
    %c0_74 = arith.constant 0 : index
    %c0_75 = arith.constant 0 : index
    %75 = vector.load %arg4[%c7, %c0_74, %c0_75] : memref<9x49x196xbf16, #tpu.memory_space<vmem>>, vector<1x49x196xbf16>
    %76 = vector.shape_cast %75 : vector<1x49x196xbf16> to vector<49x196xbf16>
    %c0_76 = arith.constant 0 : index
    %c0_77 = arith.constant 0 : index
    %77 = vector.load %arg13[%c0_76, %c0_77] : memref<196x64xbf16, #tpu.memory_space<vmem>>, vector<196x64xbf16>
    %cst_78 = arith.constant dense<0.000000e+00> : vector<49x64xf32>
    %78 = tpu.matmul %76, %77, %cst_78 {dimension_numbers = #tpu.dot_dimension_numbers<[1], [0], [0], [1], [0, 0, 1, 1], [], []>} : vector<49x196xbf16>, vector<196x64xbf16>, vector<49x64xf32> -> vector<49x64xf32>
    %79 = arith.truncf %78 : vector<49x64xf32> to vector<49x64xbf16>
    %c7_79 = arith.constant 7 : index
    %c0_80 = arith.constant 0 : index
    %c0_81 = arith.constant 0 : index
    %80 = vector.load %arg5[%c7_79, %c0_80, %c0_81] : memref<9x64x128xbf16, #tpu.memory_space<vmem>>, vector<1x64x128xbf16>
    %81 = vector.shape_cast %80 : vector<1x64x128xbf16> to vector<64x128xbf16>
    %cst_82 = arith.constant dense<0.000000e+00> : vector<49x128xf32>
    %82 = tpu.matmul %79, %81, %cst_82 {dimension_numbers = #tpu.dot_dimension_numbers<[1], [0], [0], [1], [0, 0, 1, 1], [], []>} : vector<49x64xbf16>, vector<64x128xbf16>, vector<49x128xf32> -> vector<49x128xf32>
    %83 = arith.addf %74, %82 : vector<49x128xf32>
    %c8 = arith.constant 8 : index
    %c0_83 = arith.constant 0 : index
    %c0_84 = arith.constant 0 : index
    %84 = vector.load %arg4[%c8, %c0_83, %c0_84] : memref<9x49x196xbf16, #tpu.memory_space<vmem>>, vector<1x49x196xbf16>
    %85 = vector.shape_cast %84 : vector<1x49x196xbf16> to vector<49x196xbf16>
    %c0_85 = arith.constant 0 : index
    %c0_86 = arith.constant 0 : index
    %86 = vector.load %arg13[%c0_85, %c0_86] : memref<196x64xbf16, #tpu.memory_space<vmem>>, vector<196x64xbf16>
    %cst_87 = arith.constant dense<0.000000e+00> : vector<49x64xf32>
    %87 = tpu.matmul %85, %86, %cst_87 {dimension_numbers = #tpu.dot_dimension_numbers<[1], [0], [0], [1], [0, 0, 1, 1], [], []>} : vector<49x196xbf16>, vector<196x64xbf16>, vector<49x64xf32> -> vector<49x64xf32>
    %88 = arith.truncf %87 : vector<49x64xf32> to vector<49x64xbf16>
    %c8_88 = arith.constant 8 : index
    %c0_89 = arith.constant 0 : index
    %c0_90 = arith.constant 0 : index
    %89 = vector.load %arg5[%c8_88, %c0_89, %c0_90] : memref<9x64x128xbf16, #tpu.memory_space<vmem>>, vector<1x64x128xbf16>
    %90 = vector.shape_cast %89 : vector<1x64x128xbf16> to vector<64x128xbf16>
    %cst_91 = arith.constant dense<0.000000e+00> : vector<49x128xf32>
    %91 = tpu.matmul %88, %90, %cst_91 {dimension_numbers = #tpu.dot_dimension_numbers<[1], [0], [0], [1], [0, 0, 1, 1], [], []>} : vector<49x64xbf16>, vector<64x128xbf16>, vector<49x128xf32> -> vector<49x128xf32>
    %92 = arith.addf %83, %91 : vector<49x128xf32>
    %c0_92 = arith.constant 0 : index
    %c0_93 = arith.constant 0 : index
    %93 = vector.load %arg6[%c0_92, %c0_93] : memref<1x128xf32, #tpu.memory_space<vmem>>, vector<1x128xf32>
    %94 = vector.broadcast %93 : vector<1x128xf32> to vector<49x128xf32>
    %95 = arith.addf %92, %94 : vector<49x128xf32>
    %cst_94 = arith.constant 0.000000e+00 : f32
    %96 = vector.broadcast %cst_94 : f32 to vector<49x128xf32>
    %97 = arith.maximumf %95, %96 : vector<49x128xf32>
    %98 = arith.truncf %97 : vector<49x128xf32> to vector<49x128xbf16>
    %c0_95 = arith.constant 0 : index
    %c0_96 = arith.constant 0 : index
    %99 = vector.load %arg14[%c0_95, %c0_96] : memref<49x128xbf16, #tpu.memory_space<vmem>>, vector<49x128xbf16>
    tpu.vector_store %arg14[%c0_95, %c0_96], %98 {strides = array<i32>} : memref<49x128xbf16, #tpu.memory_space<vmem>>, vector<49x128xbf16>,
    %cst_97 = arith.constant 0.000000e+00 : f32
    %100 = vector.broadcast %cst_97 : f32 to vector<16x256xf32>
    %c0_98 = arith.constant 0 : index
    %c0_99 = arith.constant 0 : index
    %c0_100 = arith.constant 0 : index
    %101 = vector.load %arg7[%c0_98, %c0_99, %c0_100] : memref<9x16x49xbf16, #tpu.memory_space<vmem>>, vector<1x16x49xbf16>
    %102 = vector.shape_cast %101 : vector<1x16x49xbf16> to vector<16x49xbf16>
    %c0_101 = arith.constant 0 : index
    %c0_102 = arith.constant 0 : index
    %103 = vector.load %arg14[%c0_101, %c0_102] : memref<49x128xbf16, #tpu.memory_space<vmem>>, vector<49x128xbf16>
    %cst_103 = arith.constant dense<0.000000e+00> : vector<16x128xf32>
    %104 = tpu.matmul %102, %103, %cst_103 {dimension_numbers = #tpu.dot_dimension_numbers<[1], [0], [0], [1], [0, 0, 1, 1], [], []>} : vector<16x49xbf16>, vector<49x128xbf16>, vector<16x128xf32> -> vector<16x128xf32>
    %105 = arith.truncf %104 : vector<16x128xf32> to vector<16x128xbf16>
    %c0_104 = arith.constant 0 : index
    %c0_105 = arith.constant 0 : index
    %c0_106 = arith.constant 0 : index
    %106 = vector.load %arg8[%c0_104, %c0_105, %c0_106] : memref<9x128x256xbf16, #tpu.memory_space<vmem>>, vector<1x128x256xbf16>
    %107 = vector.shape_cast %106 : vector<1x128x256xbf16> to vector<128x256xbf16>
    %cst_107 = arith.constant dense<0.000000e+00> : vector<16x256xf32>
    %108 = tpu.matmul %105, %107, %cst_107 {dimension_numbers = #tpu.dot_dimension_numbers<[1], [0], [0], [1], [0, 0, 1, 1], [], []>} : vector<16x128xbf16>, vector<128x256xbf16>, vector<16x256xf32> -> vector<16x256xf32>
    %109 = arith.addf %100, %108 : vector<16x256xf32>
    %c1_108 = arith.constant 1 : index
    %c0_109 = arith.constant 0 : index
    %c0_110 = arith.constant 0 : index
    %110 = vector.load %arg7[%c1_108, %c0_109, %c0_110] : memref<9x16x49xbf16, #tpu.memory_space<vmem>>, vector<1x16x49xbf16>
    %111 = vector.shape_cast %110 : vector<1x16x49xbf16> to vector<16x49xbf16>
    %c0_111 = arith.constant 0 : index
    %c0_112 = arith.constant 0 : index
    %112 = vector.load %arg14[%c0_111, %c0_112] : memref<49x128xbf16, #tpu.memory_space<vmem>>, vector<49x128xbf16>
    %cst_113 = arith.constant dense<0.000000e+00> : vector<16x128xf32>
    %113 = tpu.matmul %111, %112, %cst_113 {dimension_numbers = #tpu.dot_dimension_numbers<[1], [0], [0], [1], [0, 0, 1, 1], [], []>} : vector<16x49xbf16>, vector<49x128xbf16>, vector<16x128xf32> -> vector<16x128xf32>
    %114 = arith.truncf %113 : vector<16x128xf32> to vector<16x128xbf16>
    %c1_114 = arith.constant 1 : index
    %c0_115 = arith.constant 0 : index
    %c0_116 = arith.constant 0 : index
    %115 = vector.load %arg8[%c1_114, %c0_115, %c0_116] : memref<9x128x256xbf16, #tpu.memory_space<vmem>>, vector<1x128x256xbf16>
    %116 = vector.shape_cast %115 : vector<1x128x256xbf16> to vector<128x256xbf16>
    %cst_117 = arith.constant dense<0.000000e+00> : vector<16x256xf32>
    %117 = tpu.matmul %114, %116, %cst_117 {dimension_numbers = #tpu.dot_dimension_numbers<[1], [0], [0], [1], [0, 0, 1, 1], [], []>} : vector<16x128xbf16>, vector<128x256xbf16>, vector<16x256xf32> -> vector<16x256xf32>
    %118 = arith.addf %109, %117 : vector<16x256xf32>
    %c2_118 = arith.constant 2 : index
    %c0_119 = arith.constant 0 : index
    %c0_120 = arith.constant 0 : index
    %119 = vector.load %arg7[%c2_118, %c0_119, %c0_120] : memref<9x16x49xbf16, #tpu.memory_space<vmem>>, vector<1x16x49xbf16>
    %120 = vector.shape_cast %119 : vector<1x16x49xbf16> to vector<16x49xbf16>
    %c0_121 = arith.constant 0 : index
    %c0_122 = arith.constant 0 : index
    %121 = vector.load %arg14[%c0_121, %c0_122] : memref<49x128xbf16, #tpu.memory_space<vmem>>, vector<49x128xbf16>
    %cst_123 = arith.constant dense<0.000000e+00> : vector<16x128xf32>
    %122 = tpu.matmul %120, %121, %cst_123 {dimension_numbers = #tpu.dot_dimension_numbers<[1], [0], [0], [1], [0, 0, 1, 1], [], []>} : vector<16x49xbf16>, vector<49x128xbf16>, vector<16x128xf32> -> vector<16x128xf32>
    %123 = arith.truncf %122 : vector<16x128xf32> to vector<16x128xbf16>
    %c2_124 = arith.constant 2 : index
    %c0_125 = arith.constant 0 : index
    %c0_126 = arith.constant 0 : index
    %124 = vector.load %arg8[%c2_124, %c0_125, %c0_126] : memref<9x128x256xbf16, #tpu.memory_space<vmem>>, vector<1x128x256xbf16>
    %125 = vector.shape_cast %124 : vector<1x128x256xbf16> to vector<128x256xbf16>
    %cst_127 = arith.constant dense<0.000000e+00> : vector<16x256xf32>
    %126 = tpu.matmul %123, %125, %cst_127 {dimension_numbers = #tpu.dot_dimension_numbers<[1], [0], [0], [1], [0, 0, 1, 1], [], []>} : vector<16x128xbf16>, vector<128x256xbf16>, vector<16x256xf32> -> vector<16x256xf32>
    %127 = arith.addf %118, %126 : vector<16x256xf32>
    %c3_128 = arith.constant 3 : index
    %c0_129 = arith.constant 0 : index
    %c0_130 = arith.constant 0 : index
    %128 = vector.load %arg7[%c3_128, %c0_129, %c0_130] : memref<9x16x49xbf16, #tpu.memory_space<vmem>>, vector<1x16x49xbf16>
    %129 = vector.shape_cast %128 : vector<1x16x49xbf16> to vector<16x49xbf16>
    %c0_131 = arith.constant 0 : index
    %c0_132 = arith.constant 0 : index
    %130 = vector.load %arg14[%c0_131, %c0_132] : memref<49x128xbf16, #tpu.memory_space<vmem>>, vector<49x128xbf16>
    %cst_133 = arith.constant dense<0.000000e+00> : vector<16x128xf32>
    %131 = tpu.matmul %129, %130, %cst_133 {dimension_numbers = #tpu.dot_dimension_numbers<[1], [0], [0], [1], [0, 0, 1, 1], [], []>} : vector<16x49xbf16>, vector<49x128xbf16>, vector<16x128xf32> -> vector<16x128xf32>
    %132 = arith.truncf %131 : vector<16x128xf32> to vector<16x128xbf16>
    %c3_134 = arith.constant 3 : index
    %c0_135 = arith.constant 0 : index
    %c0_136 = arith.constant 0 : index
    %133 = vector.load %arg8[%c3_134, %c0_135, %c0_136] : memref<9x128x256xbf16, #tpu.memory_space<vmem>>, vector<1x128x256xbf16>
    %134 = vector.shape_cast %133 : vector<1x128x256xbf16> to vector<128x256xbf16>
    %cst_137 = arith.constant dense<0.000000e+00> : vector<16x256xf32>
    %135 = tpu.matmul %132, %134, %cst_137 {dimension_numbers = #tpu.dot_dimension_numbers<[1], [0], [0], [1], [0, 0, 1, 1], [], []>} : vector<16x128xbf16>, vector<128x256xbf16>, vector<16x256xf32> -> vector<16x256xf32>
    %136 = arith.addf %127, %135 : vector<16x256xf32>
    %c4_138 = arith.constant 4 : index
    %c0_139 = arith.constant 0 : index
    %c0_140 = arith.constant 0 : index
    %137 = vector.load %arg7[%c4_138, %c0_139, %c0_140] : memref<9x16x49xbf16, #tpu.memory_space<vmem>>, vector<1x16x49xbf16>
    %138 = vector.shape_cast %137 : vector<1x16x49xbf16> to vector<16x49xbf16>
    %c0_141 = arith.constant 0 : index
    %c0_142 = arith.constant 0 : index
    %139 = vector.load %arg14[%c0_141, %c0_142] : memref<49x128xbf16, #tpu.memory_space<vmem>>, vector<49x128xbf16>
    %cst_143 = arith.constant dense<0.000000e+00> : vector<16x128xf32>
    %140 = tpu.matmul %138, %139, %cst_143 {dimension_numbers = #tpu.dot_dimension_numbers<[1], [0], [0], [1], [0, 0, 1, 1], [], []>} : vector<16x49xbf16>, vector<49x128xbf16>, vector<16x128xf32> -> vector<16x128xf32>
    %141 = arith.truncf %140 : vector<16x128xf32> to vector<16x128xbf16>
    %c4_144 = arith.constant 4 : index
    %c0_145 = arith.constant 0 : index
    %c0_146 = arith.constant 0 : index
    %142 = vector.load %arg8[%c4_144, %c0_145, %c0_146] : memref<9x128x256xbf16, #tpu.memory_space<vmem>>, vector<1x128x256xbf16>
    %143 = vector.shape_cast %142 : vector<1x128x256xbf16> to vector<128x256xbf16>
    %cst_147 = arith.constant dense<0.000000e+00> : vector<16x256xf32>
    %144 = tpu.matmul %141, %143, %cst_147 {dimension_numbers = #tpu.dot_dimension_numbers<[1], [0], [0], [1], [0, 0, 1, 1], [], []>} : vector<16x128xbf16>, vector<128x256xbf16>, vector<16x256xf32> -> vector<16x256xf32>
    %145 = arith.addf %136, %144 : vector<16x256xf32>
    %c5_148 = arith.constant 5 : index
    %c0_149 = arith.constant 0 : index
    %c0_150 = arith.constant 0 : index
    %146 = vector.load %arg7[%c5_148, %c0_149, %c0_150] : memref<9x16x49xbf16, #tpu.memory_space<vmem>>, vector<1x16x49xbf16>
    %147 = vector.shape_cast %146 : vector<1x16x49xbf16> to vector<16x49xbf16>
    %c0_151 = arith.constant 0 : index
    %c0_152 = arith.constant 0 : index
    %148 = vector.load %arg14[%c0_151, %c0_152] : memref<49x128xbf16, #tpu.memory_space<vmem>>, vector<49x128xbf16>
    %cst_153 = arith.constant dense<0.000000e+00> : vector<16x128xf32>
    %149 = tpu.matmul %147, %148, %cst_153 {dimension_numbers = #tpu.dot_dimension_numbers<[1], [0], [0], [1], [0, 0, 1, 1], [], []>} : vector<16x49xbf16>, vector<49x128xbf16>, vector<16x128xf32> -> vector<16x128xf32>
    %150 = arith.truncf %149 : vector<16x128xf32> to vector<16x128xbf16>
    %c5_154 = arith.constant 5 : index
    %c0_155 = arith.constant 0 : index
    %c0_156 = arith.constant 0 : index
    %151 = vector.load %arg8[%c5_154, %c0_155, %c0_156] : memref<9x128x256xbf16, #tpu.memory_space<vmem>>, vector<1x128x256xbf16>
    %152 = vector.shape_cast %151 : vector<1x128x256xbf16> to vector<128x256xbf16>
    %cst_157 = arith.constant dense<0.000000e+00> : vector<16x256xf32>
    %153 = tpu.matmul %150, %152, %cst_157 {dimension_numbers = #tpu.dot_dimension_numbers<[1], [0], [0], [1], [0, 0, 1, 1], [], []>} : vector<16x128xbf16>, vector<128x256xbf16>, vector<16x256xf32> -> vector<16x256xf32>
    %154 = arith.addf %145, %153 : vector<16x256xf32>
    %c6_158 = arith.constant 6 : index
    %c0_159 = arith.constant 0 : index
    %c0_160 = arith.constant 0 : index
    %155 = vector.load %arg7[%c6_158, %c0_159, %c0_160] : memref<9x16x49xbf16, #tpu.memory_space<vmem>>, vector<1x16x49xbf16>
    %156 = vector.shape_cast %155 : vector<1x16x49xbf16> to vector<16x49xbf16>
    %c0_161 = arith.constant 0 : index
    %c0_162 = arith.constant 0 : index
    %157 = vector.load %arg14[%c0_161, %c0_162] : memref<49x128xbf16, #tpu.memory_space<vmem>>, vector<49x128xbf16>
    %cst_163 = arith.constant dense<0.000000e+00> : vector<16x128xf32>
    %158 = tpu.matmul %156, %157, %cst_163 {dimension_numbers = #tpu.dot_dimension_numbers<[1], [0], [0], [1], [0, 0, 1, 1], [], []>} : vector<16x49xbf16>, vector<49x128xbf16>, vector<16x128xf32> -> vector<16x128xf32>
    %159 = arith.truncf %158 : vector<16x128xf32> to vector<16x128xbf16>
    %c6_164 = arith.constant 6 : index
    %c0_165 = arith.constant 0 : index
    %c0_166 = arith.constant 0 : index
    %160 = vector.load %arg8[%c6_164, %c0_165, %c0_166] : memref<9x128x256xbf16, #tpu.memory_space<vmem>>, vector<1x128x256xbf16>
    %161 = vector.shape_cast %160 : vector<1x128x256xbf16> to vector<128x256xbf16>
    %cst_167 = arith.constant dense<0.000000e+00> : vector<16x256xf32>
    %162 = tpu.matmul %159, %161, %cst_167 {dimension_numbers = #tpu.dot_dimension_numbers<[1], [0], [0], [1], [0, 0, 1, 1], [], []>} : vector<16x128xbf16>, vector<128x256xbf16>, vector<16x256xf32> -> vector<16x256xf32>
    %163 = arith.addf %154, %162 : vector<16x256xf32>
    %c7_168 = arith.constant 7 : index
    %c0_169 = arith.constant 0 : index
    %c0_170 = arith.constant 0 : index
    %164 = vector.load %arg7[%c7_168, %c0_169, %c0_170] : memref<9x16x49xbf16, #tpu.memory_space<vmem>>, vector<1x16x49xbf16>
    %165 = vector.shape_cast %164 : vector<1x16x49xbf16> to vector<16x49xbf16>
    %c0_171 = arith.constant 0 : index
    %c0_172 = arith.constant 0 : index
    %166 = vector.load %arg14[%c0_171, %c0_172] : memref<49x128xbf16, #tpu.memory_space<vmem>>, vector<49x128xbf16>
    %cst_173 = arith.constant dense<0.000000e+00> : vector<16x128xf32>
    %167 = tpu.matmul %165, %166, %cst_173 {dimension_numbers = #tpu.dot_dimension_numbers<[1], [0], [0], [1], [0, 0, 1, 1], [], []>} : vector<16x49xbf16>, vector<49x128xbf16>, vector<16x128xf32> -> vector<16x128xf32>
    %168 = arith.truncf %167 : vector<16x128xf32> to vector<16x128xbf16>
    %c7_174 = arith.constant 7 : index
    %c0_175 = arith.constant 0 : index
    %c0_176 = arith.constant 0 : index
    %169 = vector.load %arg8[%c7_174, %c0_175, %c0_176] : memref<9x128x256xbf16, #tpu.memory_space<vmem>>, vector<1x128x256xbf16>
    %170 = vector.shape_cast %169 : vector<1x128x256xbf16> to vector<128x256xbf16>
    %cst_177 = arith.constant dense<0.000000e+00> : vector<16x256xf32>
    %171 = tpu.matmul %168, %170, %cst_177 {dimension_numbers = #tpu.dot_dimension_numbers<[1], [0], [0], [1], [0, 0, 1, 1], [], []>} : vector<16x128xbf16>, vector<128x256xbf16>, vector<16x256xf32> -> vector<16x256xf32>
    %172 = arith.addf %163, %171 : vector<16x256xf32>
    %c8_178 = arith.constant 8 : index
    %c0_179 = arith.constant 0 : index
    %c0_180 = arith.constant 0 : index
    %173 = vector.load %arg7[%c8_178, %c0_179, %c0_180] : memref<9x16x49xbf16, #tpu.memory_space<vmem>>, vector<1x16x49xbf16>
    %174 = vector.shape_cast %173 : vector<1x16x49xbf16> to vector<16x49xbf16>
    %c0_181 = arith.constant 0 : index
    %c0_182 = arith.constant 0 : index
    %175 = vector.load %arg14[%c0_181, %c0_182] : memref<49x128xbf16, #tpu.memory_space<vmem>>, vector<49x128xbf16>
    %cst_183 = arith.constant dense<0.000000e+00> : vector<16x128xf32>
    %176 = tpu.matmul %174, %175, %cst_183 {dimension_numbers = #tpu.dot_dimension_numbers<[1], [0], [0], [1], [0, 0, 1, 1], [], []>} : vector<16x49xbf16>, vector<49x128xbf16>, vector<16x128xf32> -> vector<16x128xf32>
    %177 = arith.truncf %176 : vector<16x128xf32> to vector<16x128xbf16>
    %c8_184 = arith.constant 8 : index
    %c0_185 = arith.constant 0 : index
    %c0_186 = arith.constant 0 : index
    %178 = vector.load %arg8[%c8_184, %c0_185, %c0_186] : memref<9x128x256xbf16, #tpu.memory_space<vmem>>, vector<1x128x256xbf16>
    %179 = vector.shape_cast %178 : vector<1x128x256xbf16> to vector<128x256xbf16>
    %cst_187 = arith.constant dense<0.000000e+00> : vector<16x256xf32>
    %180 = tpu.matmul %177, %179, %cst_187 {dimension_numbers = #tpu.dot_dimension_numbers<[1], [0], [0], [1], [0, 0, 1, 1], [], []>} : vector<16x128xbf16>, vector<128x256xbf16>, vector<16x256xf32> -> vector<16x256xf32>
    %181 = arith.addf %172, %180 : vector<16x256xf32>
    %c0_188 = arith.constant 0 : index
    %c0_189 = arith.constant 0 : index
    %182 = vector.load %arg9[%c0_188, %c0_189] : memref<1x256xf32, #tpu.memory_space<vmem>>, vector<1x256xf32>
    %183 = vector.broadcast %182 : vector<1x256xf32> to vector<16x256xf32>
    %184 = arith.addf %181, %183 : vector<16x256xf32>
    %cst_190 = arith.constant 0.000000e+00 : f32
    %185 = vector.broadcast %cst_190 : f32 to vector<16x256xf32>
    %186 = arith.maximumf %184, %185 : vector<16x256xf32>
    %187 = arith.truncf %186 : vector<16x256xf32> to vector<16x256xbf16>
    %c0_191 = arith.constant 0 : index
    %c0_192 = arith.constant 0 : index
    %188 = vector.load %arg11[%c0_191, %c0_192] : memref<1x10xf32, #tpu.memory_space<vmem>>, vector<1x10xf32>
    %189 = vector.extract_strided_slice %187 {offsets = [0, 0], sizes = [1, 256], strides = [1, 1]} : vector<16x256xbf16> to vector<1x256xbf16>
    %c0_193 = arith.constant 0 : index
    %c0_194 = arith.constant 0 : index
    %c0_195 = arith.constant 0 : index
    %190 = vector.load %arg10[%c0_193, %c0_194, %c0_195] : memref<16x256x10xbf16, #tpu.memory_space<vmem>>, vector<1x256x10xbf16>
    %191 = vector.shape_cast %190 : vector<1x256x10xbf16> to vector<256x10xbf16>
    %cst_196 = arith.constant dense<0.000000e+00> : vector<1x10xf32>
    %192 = tpu.matmul %189, %191, %cst_196 {dimension_numbers = #tpu.dot_dimension_numbers<[1], [0], [0], [1], [0, 0, 1, 1], [], []>} : vector<1x256xbf16>, vector<256x10xbf16>, vector<1x10xf32> -> vector<1x10xf32>
    %193 = arith.addf %188, %192 : vector<1x10xf32>
    %194 = vector.extract_strided_slice %187 {offsets = [1, 0], sizes = [1, 256], strides = [1, 1]} : vector<16x256xbf16> to vector<1x256xbf16>
    %c1_197 = arith.constant 1 : index
    %c0_198 = arith.constant 0 : index
    %c0_199 = arith.constant 0 : index
    %195 = vector.load %arg10[%c1_197, %c0_198, %c0_199] : memref<16x256x10xbf16, #tpu.memory_space<vmem>>, vector<1x256x10xbf16>
    %196 = vector.shape_cast %195 : vector<1x256x10xbf16> to vector<256x10xbf16>
    %cst_200 = arith.constant dense<0.000000e+00> : vector<1x10xf32>
    %197 = tpu.matmul %194, %196, %cst_200 {dimension_numbers = #tpu.dot_dimension_numbers<[1], [0], [0], [1], [0, 0, 1, 1], [], []>} : vector<1x256xbf16>, vector<256x10xbf16>, vector<1x10xf32> -> vector<1x10xf32>
    %198 = arith.addf %193, %197 : vector<1x10xf32>
    %199 = vector.extract_strided_slice %187 {offsets = [2, 0], sizes = [1, 256], strides = [1, 1]} : vector<16x256xbf16> to vector<1x256xbf16>
    %c2_201 = arith.constant 2 : index
    %c0_202 = arith.constant 0 : index
    %c0_203 = arith.constant 0 : index
    %200 = vector.load %arg10[%c2_201, %c0_202, %c0_203] : memref<16x256x10xbf16, #tpu.memory_space<vmem>>, vector<1x256x10xbf16>
    %201 = vector.shape_cast %200 : vector<1x256x10xbf16> to vector<256x10xbf16>
    %cst_204 = arith.constant dense<0.000000e+00> : vector<1x10xf32>
    %202 = tpu.matmul %199, %201, %cst_204 {dimension_numbers = #tpu.dot_dimension_numbers<[1], [0], [0], [1], [0, 0, 1, 1], [], []>} : vector<1x256xbf16>, vector<256x10xbf16>, vector<1x10xf32> -> vector<1x10xf32>
    %203 = arith.addf %198, %202 : vector<1x10xf32>
    %204 = vector.extract_strided_slice %187 {offsets = [3, 0], sizes = [1, 256], strides = [1, 1]} : vector<16x256xbf16> to vector<1x256xbf16>
    %c3_205 = arith.constant 3 : index
    %c0_206 = arith.constant 0 : index
    %c0_207 = arith.constant 0 : index
    %205 = vector.load %arg10[%c3_205, %c0_206, %c0_207] : memref<16x256x10xbf16, #tpu.memory_space<vmem>>, vector<1x256x10xbf16>
    %206 = vector.shape_cast %205 : vector<1x256x10xbf16> to vector<256x10xbf16>
    %cst_208 = arith.constant dense<0.000000e+00> : vector<1x10xf32>
    %207 = tpu.matmul %204, %206, %cst_208 {dimension_numbers = #tpu.dot_dimension_numbers<[1], [0], [0], [1], [0, 0, 1, 1], [], []>} : vector<1x256xbf16>, vector<256x10xbf16>, vector<1x10xf32> -> vector<1x10xf32>
    %208 = arith.addf %203, %207 : vector<1x10xf32>
    %209 = vector.extract_strided_slice %187 {offsets = [4, 0], sizes = [1, 256], strides = [1, 1]} : vector<16x256xbf16> to vector<1x256xbf16>
    %c4_209 = arith.constant 4 : index
    %c0_210 = arith.constant 0 : index
    %c0_211 = arith.constant 0 : index
    %210 = vector.load %arg10[%c4_209, %c0_210, %c0_211] : memref<16x256x10xbf16, #tpu.memory_space<vmem>>, vector<1x256x10xbf16>
    %211 = vector.shape_cast %210 : vector<1x256x10xbf16> to vector<256x10xbf16>
    %cst_212 = arith.constant dense<0.000000e+00> : vector<1x10xf32>
    %212 = tpu.matmul %209, %211, %cst_212 {dimension_numbers = #tpu.dot_dimension_numbers<[1], [0], [0], [1], [0, 0, 1, 1], [], []>} : vector<1x256xbf16>, vector<256x10xbf16>, vector<1x10xf32> -> vector<1x10xf32>
    %213 = arith.addf %208, %212 : vector<1x10xf32>
    %214 = vector.extract_strided_slice %187 {offsets = [5, 0], sizes = [1, 256], strides = [1, 1]} : vector<16x256xbf16> to vector<1x256xbf16>
    %c5_213 = arith.constant 5 : index
    %c0_214 = arith.constant 0 : index
    %c0_215 = arith.constant 0 : index
    %215 = vector.load %arg10[%c5_213, %c0_214, %c0_215] : memref<16x256x10xbf16, #tpu.memory_space<vmem>>, vector<1x256x10xbf16>
    %216 = vector.shape_cast %215 : vector<1x256x10xbf16> to vector<256x10xbf16>
    %cst_216 = arith.constant dense<0.000000e+00> : vector<1x10xf32>
    %217 = tpu.matmul %214, %216, %cst_216 {dimension_numbers = #tpu.dot_dimension_numbers<[1], [0], [0], [1], [0, 0, 1, 1], [], []>} : vector<1x256xbf16>, vector<256x10xbf16>, vector<1x10xf32> -> vector<1x10xf32>
    %218 = arith.addf %213, %217 : vector<1x10xf32>
    %219 = vector.extract_strided_slice %187 {offsets = [6, 0], sizes = [1, 256], strides = [1, 1]} : vector<16x256xbf16> to vector<1x256xbf16>
    %c6_217 = arith.constant 6 : index
    %c0_218 = arith.constant 0 : index
    %c0_219 = arith.constant 0 : index
    %220 = vector.load %arg10[%c6_217, %c0_218, %c0_219] : memref<16x256x10xbf16, #tpu.memory_space<vmem>>, vector<1x256x10xbf16>
    %221 = vector.shape_cast %220 : vector<1x256x10xbf16> to vector<256x10xbf16>
    %cst_220 = arith.constant dense<0.000000e+00> : vector<1x10xf32>
    %222 = tpu.matmul %219, %221, %cst_220 {dimension_numbers = #tpu.dot_dimension_numbers<[1], [0], [0], [1], [0, 0, 1, 1], [], []>} : vector<1x256xbf16>, vector<256x10xbf16>, vector<1x10xf32> -> vector<1x10xf32>
    %223 = arith.addf %218, %222 : vector<1x10xf32>
    %224 = vector.extract_strided_slice %187 {offsets = [7, 0], sizes = [1, 256], strides = [1, 1]} : vector<16x256xbf16> to vector<1x256xbf16>
    %c7_221 = arith.constant 7 : index
    %c0_222 = arith.constant 0 : index
    %c0_223 = arith.constant 0 : index
    %225 = vector.load %arg10[%c7_221, %c0_222, %c0_223] : memref<16x256x10xbf16, #tpu.memory_space<vmem>>, vector<1x256x10xbf16>
    %226 = vector.shape_cast %225 : vector<1x256x10xbf16> to vector<256x10xbf16>
    %cst_224 = arith.constant dense<0.000000e+00> : vector<1x10xf32>
    %227 = tpu.matmul %224, %226, %cst_224 {dimension_numbers = #tpu.dot_dimension_numbers<[1], [0], [0], [1], [0, 0, 1, 1], [], []>} : vector<1x256xbf16>, vector<256x10xbf16>, vector<1x10xf32> -> vector<1x10xf32>
    %228 = arith.addf %223, %227 : vector<1x10xf32>
    %229 = vector.extract_strided_slice %187 {offsets = [8, 0], sizes = [1, 256], strides = [1, 1]} : vector<16x256xbf16> to vector<1x256xbf16>
    %c8_225 = arith.constant 8 : index
    %c0_226 = arith.constant 0 : index
    %c0_227 = arith.constant 0 : index
    %230 = vector.load %arg10[%c8_225, %c0_226, %c0_227] : memref<16x256x10xbf16, #tpu.memory_space<vmem>>, vector<1x256x10xbf16>
    %231 = vector.shape_cast %230 : vector<1x256x10xbf16> to vector<256x10xbf16>
    %cst_228 = arith.constant dense<0.000000e+00> : vector<1x10xf32>
    %232 = tpu.matmul %229, %231, %cst_228 {dimension_numbers = #tpu.dot_dimension_numbers<[1], [0], [0], [1], [0, 0, 1, 1], [], []>} : vector<1x256xbf16>, vector<256x10xbf16>, vector<1x10xf32> -> vector<1x10xf32>
    %233 = arith.addf %228, %232 : vector<1x10xf32>
    %234 = vector.extract_strided_slice %187 {offsets = [9, 0], sizes = [1, 256], strides = [1, 1]} : vector<16x256xbf16> to vector<1x256xbf16>
    %c9 = arith.constant 9 : index
    %c0_229 = arith.constant 0 : index
    %c0_230 = arith.constant 0 : index
    %235 = vector.load %arg10[%c9, %c0_229, %c0_230] : memref<16x256x10xbf16, #tpu.memory_space<vmem>>, vector<1x256x10xbf16>
    %236 = vector.shape_cast %235 : vector<1x256x10xbf16> to vector<256x10xbf16>
    %cst_231 = arith.constant dense<0.000000e+00> : vector<1x10xf32>
    %237 = tpu.matmul %234, %236, %cst_231 {dimension_numbers = #tpu.dot_dimension_numbers<[1], [0], [0], [1], [0, 0, 1, 1], [], []>} : vector<1x256xbf16>, vector<256x10xbf16>, vector<1x10xf32> -> vector<1x10xf32>
    %238 = arith.addf %233, %237 : vector<1x10xf32>
    %239 = vector.extract_strided_slice %187 {offsets = [10, 0], sizes = [1, 256], strides = [1, 1]} : vector<16x256xbf16> to vector<1x256xbf16>
    %c10 = arith.constant 10 : index
    %c0_232 = arith.constant 0 : index
    %c0_233 = arith.constant 0 : index
    %240 = vector.load %arg10[%c10, %c0_232, %c0_233] : memref<16x256x10xbf16, #tpu.memory_space<vmem>>, vector<1x256x10xbf16>
    %241 = vector.shape_cast %240 : vector<1x256x10xbf16> to vector<256x10xbf16>
    %cst_234 = arith.constant dense<0.000000e+00> : vector<1x10xf32>
    %242 = tpu.matmul %239, %241, %cst_234 {dimension_numbers = #tpu.dot_dimension_numbers<[1], [0], [0], [1], [0, 0, 1, 1], [], []>} : vector<1x256xbf16>, vector<256x10xbf16>, vector<1x10xf32> -> vector<1x10xf32>
    %243 = arith.addf %238, %242 : vector<1x10xf32>
    %244 = vector.extract_strided_slice %187 {offsets = [11, 0], sizes = [1, 256], strides = [1, 1]} : vector<16x256xbf16> to vector<1x256xbf16>
    %c11 = arith.constant 11 : index
    %c0_235 = arith.constant 0 : index
    %c0_236 = arith.constant 0 : index
    %245 = vector.load %arg10[%c11, %c0_235, %c0_236] : memref<16x256x10xbf16, #tpu.memory_space<vmem>>, vector<1x256x10xbf16>
    %246 = vector.shape_cast %245 : vector<1x256x10xbf16> to vector<256x10xbf16>
    %cst_237 = arith.constant dense<0.000000e+00> : vector<1x10xf32>
    %247 = tpu.matmul %244, %246, %cst_237 {dimension_numbers = #tpu.dot_dimension_numbers<[1], [0], [0], [1], [0, 0, 1, 1], [], []>} : vector<1x256xbf16>, vector<256x10xbf16>, vector<1x10xf32> -> vector<1x10xf32>
    %248 = arith.addf %243, %247 : vector<1x10xf32>
    %249 = vector.extract_strided_slice %187 {offsets = [12, 0], sizes = [1, 256], strides = [1, 1]} : vector<16x256xbf16> to vector<1x256xbf16>
    %c12 = arith.constant 12 : index
    %c0_238 = arith.constant 0 : index
    %c0_239 = arith.constant 0 : index
    %250 = vector.load %arg10[%c12, %c0_238, %c0_239] : memref<16x256x10xbf16, #tpu.memory_space<vmem>>, vector<1x256x10xbf16>
    %251 = vector.shape_cast %250 : vector<1x256x10xbf16> to vector<256x10xbf16>
    %cst_240 = arith.constant dense<0.000000e+00> : vector<1x10xf32>
    %252 = tpu.matmul %249, %251, %cst_240 {dimension_numbers = #tpu.dot_dimension_numbers<[1], [0], [0], [1], [0, 0, 1, 1], [], []>} : vector<1x256xbf16>, vector<256x10xbf16>, vector<1x10xf32> -> vector<1x10xf32>
    %253 = arith.addf %248, %252 : vector<1x10xf32>
    %254 = vector.extract_strided_slice %187 {offsets = [13, 0], sizes = [1, 256], strides = [1, 1]} : vector<16x256xbf16> to vector<1x256xbf16>
    %c13 = arith.constant 13 : index
    %c0_241 = arith.constant 0 : index
    %c0_242 = arith.constant 0 : index
    %255 = vector.load %arg10[%c13, %c0_241, %c0_242] : memref<16x256x10xbf16, #tpu.memory_space<vmem>>, vector<1x256x10xbf16>
    %256 = vector.shape_cast %255 : vector<1x256x10xbf16> to vector<256x10xbf16>
    %cst_243 = arith.constant dense<0.000000e+00> : vector<1x10xf32>
    %257 = tpu.matmul %254, %256, %cst_243 {dimension_numbers = #tpu.dot_dimension_numbers<[1], [0], [0], [1], [0, 0, 1, 1], [], []>} : vector<1x256xbf16>, vector<256x10xbf16>, vector<1x10xf32> -> vector<1x10xf32>
    %258 = arith.addf %253, %257 : vector<1x10xf32>
    %259 = vector.extract_strided_slice %187 {offsets = [14, 0], sizes = [1, 256], strides = [1, 1]} : vector<16x256xbf16> to vector<1x256xbf16>
    %c14 = arith.constant 14 : index
    %c0_244 = arith.constant 0 : index
    %c0_245 = arith.constant 0 : index
    %260 = vector.load %arg10[%c14, %c0_244, %c0_245] : memref<16x256x10xbf16, #tpu.memory_space<vmem>>, vector<1x256x10xbf16>
    %261 = vector.shape_cast %260 : vector<1x256x10xbf16> to vector<256x10xbf16>
    %cst_246 = arith.constant dense<0.000000e+00> : vector<1x10xf32>
    %262 = tpu.matmul %259, %261, %cst_246 {dimension_numbers = #tpu.dot_dimension_numbers<[1], [0], [0], [1], [0, 0, 1, 1], [], []>} : vector<1x256xbf16>, vector<256x10xbf16>, vector<1x10xf32> -> vector<1x10xf32>
    %263 = arith.addf %258, %262 : vector<1x10xf32>
    %264 = vector.extract_strided_slice %187 {offsets = [15, 0], sizes = [1, 256], strides = [1, 1]} : vector<16x256xbf16> to vector<1x256xbf16>
    %c15 = arith.constant 15 : index
    %c0_247 = arith.constant 0 : index
    %c0_248 = arith.constant 0 : index
    %265 = vector.load %arg10[%c15, %c0_247, %c0_248] : memref<16x256x10xbf16, #tpu.memory_space<vmem>>, vector<1x256x10xbf16>
    %266 = vector.shape_cast %265 : vector<1x256x10xbf16> to vector<256x10xbf16>
    %cst_249 = arith.constant dense<0.000000e+00> : vector<1x10xf32>
    %267 = tpu.matmul %264, %266, %cst_249 {dimension_numbers = #tpu.dot_dimension_numbers<[1], [0], [0], [1], [0, 0, 1, 1], [], []>} : vector<1x256xbf16>, vector<256x10xbf16>, vector<1x10xf32> -> vector<1x10xf32>
    %268 = arith.addf %263, %267 : vector<1x10xf32>
    %c0_250 = arith.constant 0 : index
    %c0_251 = arith.constant 0 : index
    %c0_252 = arith.constant 0 : index
    %269 = vector.load %arg12[%c0_250, %c0_251, %c0_252] : memref<1x1x10xf32, #tpu.memory_space<vmem>>, vector<1x1x10xf32>
    %270 = vector.shape_cast %269 : vector<1x1x10xf32> to vector<1x10xf32>
    %271 = vector.shape_cast %268 : vector<1x10xf32> to vector<1x1x10xf32>
    tpu.vector_store %arg12[%c0_250, %c0_251, %c0_252], %271 {strides = array<i32>} : memref<1x1x10xf32, #tpu.memory_space<vmem>>, vector<1x1x10xf32>,
    return
  }
  func.func @transform_0(%arg0: i32) -> (i32, i32, i32) {
    %c0_i32 = arith.constant 0 : i32
    %c0_i32_0 = arith.constant 0 : i32
    %c0_i32_1 = arith.constant 0 : i32
    return %arg0, %c0_i32, %c0_i32_0 : i32, i32, i32
  }
  func.func @transform_1(%arg0: i32) -> (i32, i32) {
    %c0_i32 = arith.constant 0 : i32
    %c0_i32_0 = arith.constant 0 : i32
    %c0_i32_1 = arith.constant 0 : i32
    return %c0_i32, %c0_i32_0 : i32, i32
  }
  func.func @transform_2(%arg0: i32) -> (i32, i32) {
    %c0_i32 = arith.constant 0 : i32
    %c0_i32_0 = arith.constant 0 : i32
    %c0_i32_1 = arith.constant 0 : i32
    return %c0_i32, %c0_i32_0 : i32, i32
  }
  func.func @transform_3(%arg0: i32) -> (i32, i32, i32) {
    %c0_i32 = arith.constant 0 : i32
    %c0_i32_0 = arith.constant 0 : i32
    %c0_i32_1 = arith.constant 0 : i32
    %c0_i32_2 = arith.constant 0 : i32
    return %c0_i32, %c0_i32_0, %c0_i32_1 : i32, i32, i32
  }
  func.func @transform_4(%arg0: i32) -> (i32, i32, i32) {
    %c0_i32 = arith.constant 0 : i32
    %c0_i32_0 = arith.constant 0 : i32
    %c0_i32_1 = arith.constant 0 : i32
    %c0_i32_2 = arith.constant 0 : i32
    return %c0_i32, %c0_i32_0, %c0_i32_1 : i32, i32, i32
  }
  func.func @transform_5(%arg0: i32) -> (i32, i32) {
    %c0_i32 = arith.constant 0 : i32
    %c0_i32_0 = arith.constant 0 : i32
    %c0_i32_1 = arith.constant 0 : i32
    return %c0_i32, %c0_i32_0 : i32, i32
  }
  func.func @transform_6(%arg0: i32) -> (i32, i32, i32) {
    %c0_i32 = arith.constant 0 : i32
    %c0_i32_0 = arith.constant 0 : i32
    %c0_i32_1 = arith.constant 0 : i32
    %c0_i32_2 = arith.constant 0 : i32
    return %c0_i32, %c0_i32_0, %c0_i32_1 : i32, i32, i32
  }
  func.func @transform_7(%arg0: i32) -> (i32, i32, i32) {
    %c0_i32 = arith.constant 0 : i32
    %c0_i32_0 = arith.constant 0 : i32
    %c0_i32_1 = arith.constant 0 : i32
    %c0_i32_2 = arith.constant 0 : i32
    return %c0_i32, %c0_i32_0, %c0_i32_1 : i32, i32, i32
  }
  func.func @transform_8(%arg0: i32) -> (i32, i32) {
    %c0_i32 = arith.constant 0 : i32
    %c0_i32_0 = arith.constant 0 : i32
    %c0_i32_1 = arith.constant 0 : i32
    return %c0_i32, %c0_i32_0 : i32, i32
  }
  func.func @transform_9(%arg0: i32) -> (i32, i32, i32) {
    %c0_i32 = arith.constant 0 : i32
    %c0_i32_0 = arith.constant 0 : i32
    %c0_i32_1 = arith.constant 0 : i32
    %c0_i32_2 = arith.constant 0 : i32
    return %c0_i32, %c0_i32_0, %c0_i32_1 : i32, i32, i32
  }
  func.func @transform_10(%arg0: i32) -> (i32, i32) {
    %c0_i32 = arith.constant 0 : i32
    %c0_i32_0 = arith.constant 0 : i32
    %c0_i32_1 = arith.constant 0 : i32
    return %c0_i32, %c0_i32_0 : i32, i32
  }
  func.func @transform_11(%arg0: i32) -> (i32, i32, i32) {
    %c0_i32 = arith.constant 0 : i32
    %c0_i32_0 = arith.constant 0 : i32
    %c0_i32_1 = arith.constant 0 : i32
    return %arg0, %c0_i32, %c0_i32_0 : i32, i32, i32
  }
}

</mosaic_0001>

<bundles_post_ra>
// kernel: cnn_forward.1
= control target key start
LH: loop header
LB: loop body
LE: loop exit
PB: predicated region body
PF: predicated region fallthrough
CT: control target
= control target key end

     0   :  { %s13110_s0 = inlined_call_operand.vmem [shape: bf16[2,196,9], index: 0, kind: input, shape index: {}]   ;;  %s13111_s1 = inlined_call_operand.vmem [shape: bf16[9,64], index: 1, kind: input, shape index: {}]   ;;  %s13112_s2 = inlined_call_operand.vmem [shape: f32[1,64], index: 2, kind: input, shape index: {}]   ;;  %s13113_s3 = inlined_call_operand.vmem [shape: bf16[9,49,196], index: 3, kind: input, shape index: {}]   ;;  %s13114_s4 = inlined_call_operand.vmem [shape: bf16[9,64,128], index: 4, kind: input, shape index: {}]   ;;  %s13115_s5 = inlined_call_operand.vmem [shape: f32[1,128], index: 5, kind: input, shape index: {}]   ;;  %s13116_s6 = inlined_call_operand.vmem [shape: bf16[9,16,49], index: 6, kind: input, shape index: {}]   ;;  %s13117_s7 = inlined_call_operand.vmem [shape: bf16[9,128,256], index: 7, kind: input, shape index: {}]   ;;  %s13118_s8 = inlined_call_operand.vmem [shape: f32[1,256], index: 8, kind: input, shape index: {}]   ;;  %s13119_s9 = inlined_call_operand.vmem [shape: bf16[16,256,10], index: 9, kind: input, shape index: {}]   ;;  %s13120_s10 = inlined_call_operand.vmem [shape: f32[1,10], index: 10, kind: input, shape index: {}]   ;;  %s13121_s11 = inlined_call_operand.hbm [shape: f32[2,1,10], index: 11, kind: output, shape index: {}]  }
   0x1   :  { %13122 = sst [smem:[#allocation7_spill]] %s13110_s0 }
   0x2   :  { %13123 = sst [smem:[#allocation8_spill]] %s13111_s1 }
   0x3   :  { %16 = vsyncpa [#allocation5], 0 }
   0x4   :  { %18 = vsyncpa [#allocation5 + $0x1], 0  ;;  %s10292_s17 = smov 0   ;;  %s10294_s18 = smov 0  }
   0x5   :  { %s10296_s19 = smov 0   ;;  %s10298_s20 = smov 0  }
   0x6 LB: > { %s10313_s21 = sadd.s32 4294967295, %s10228_s20   ;;  %s6625_s22 = sadd.s32 4294967294, %s10228_s20   ;;  %s10228_s20 = sphi %s10298_s20, %s13131_s20   ;;  %s10224_s19 = sphi %s10296_s19, %s13130_s19   ;;  %s10220_s18 = sphi %s10294_s18, %s13129_s18   ;;  %s10216_s17 = sphi %s10292_s17, %s13128_s17  }
   0x7   : > { %s10317_s23 = sadd.s32 1, %s10228_s20   ;;  %s267_s24 = sadd.s32 1, %s10224_s19 }
   0x8   : > { %s264_s25 = ssub.s32 %s10228_s20, %s10317_s23  ;;  %p277_p0 = scmp.ne.s32.totalorder %s10224_s19, %s10220_s18 }
   0x9   : > { %p265_p1 = scmp.eq.s32.totalorder %s264_s25, 0  ;;  %p278_p2 = scmp.eq.s32.totalorder %s10313_s21, 1 }
   0xa   : > { %p283_p3 = scmp.ne.s32.totalorder %s10220_s18, %s10216_s17  ;;  %p284_p4 = scmp.eq.s32.totalorder %s6625_s22, 1 }
   0xb   : > { %s10328_s26 = scalar_select %p265_p1, %s10224_s19, %s267_s24  }
   0xc   : > { %p10330_p5 = por %p278_p2, %p277_p0  ;;  %p10334_p6 = por %p284_p4, %p283_p3 }
   0xd   : > { %p6628_p7 = scmp.ge.s32.totalorder %s10228_s20, 1  ;;  %p340_p8 = scmp.lt.s32.totalorder %s10228_s20, 3 }
   0xf   : > { %p341_p9 = pnand %p6628_p7, %p340_p8 }
  0x10   : > { %s13126_s1 = sld [smem:[#allocation8_spill]] (!%p341_p9)  ;;  %p379_p10 = scmp.lt.s32.totalorder (!%p341_p9), %s10313_s21, 1 }
  0x11   : > { %344 = sbr.rel (%p341_p9) target bundleno = 2730 (0xaaa), region = 64  ;;  %s13127_s0 = sld [smem:[#allocation7_spill]] (!%p341_p9) }
  0x12   : > { %s377_s13 = sand.u32 (!%p341_p9), 1, %s10220_s18   ;;  %s6566_s16 = scalar_lea.hbm (!%p341_p9), %s13121_s11, %s10313_s21 }
  0x13   : > { %s378_s22 = scalar_lea.vmem (!%p341_p9), [#allocation4], %s377_s13  ;;  %s6570_s25 = sshll.u32 (!%p341_p9), %s6566_s16, 4  ;;  %s6571_s25 = int_to_ptr.hbm [resolvable:$true] %s6570_s25 }
  0x14   : > { %s10186_s12 = scalar_lea.hbm (!%p341_p9), %s13121_s11, 2 }
  0x16   : > { %v6680_v0 = vld [vmem:[%s13126_s1] sm:$0xf]  ;;  %v9590_v1 = vld [vmem:[%s13126_s1] sm:$0x10]  ;;  %vm524_vm0 = vcmask 1043456   ;;  %vm525_vm1 = vcmask 1044480  }
  0x17   : > { %v6681_v2 = vor.u32 %v9590_v1, %v6680_v0  ;;  %v10230_v3 = vmov 65535   ;;  %s380_s14 = scalar_select %p379_p10, %s10313_s21, 1  ;;  %vm484_vm2 = vcmask 72704   ;;  %v10372_v15 = vld [vmem:[%s13112_s2] ss:$0 sm:$0xff]  ;;  %vm654_vm3 = vcmask 519168  }
  0x18   : > { %v526_v4 = vsel %vm524_vm0, 4294967295, %v10230_v3  ;;  %vm679_vm4 = vcmask 517120   ;;  %vm834_vm5 = vcmask 1041408   ;;  %vm821_vm6 = vcmask 556032   ;;  %s6558_s21 = scalar_lea.sflag [#allocation5], %s377_s13  ;;  %s10180_s1 = sshra.s32 %s6571_s25, 4  ;;  %s10181_s1 = int_to_ptr.hbm [resolvable:$true] %s10180_s1 }
  0x19   : > { %v527_v5 = vsel %vm525_vm1, %v526_v4, 0  ;;  %s10122_s15 = smul.u32 100, %s380_s14  ;;  %vm1052_vm7 = vcmask 523264   ;;  %vm2539_vm8 = vcmask 1040384   ;;  %vm2540_vm9 = vsmask.f32 256  ;;  %p10187_p0 = scmp.lt.s32.totalorder %s10181_s1, %s13121_s11 }
  0x1a   : > { %v529_v6 = vand.u32 %v6681_v2, %v527_v5  ;;  %vm2541_vm10 = vmand %vm2539_vm8, %vm2540_vm9  ;;  %vm2580_vm11 = vcmask 400384   ;;  %vm6555_vm12 = vcmask 73728   ;;  %s10182_s29 = scalar_lea.hbm %s10181_s1, 1 }
  0x1b   : > { %s10351_s24 = scalar_lea.vmem %s13127_s0, %s10122_s15  ;;  %p10183_p11 = scmp.ne.s32.totalorder %s10181_s1, %s10182_s29 }
  0x1c   : > { %538 = vmatpush.bf16.msra.mxu0 %v529_v6  ;;  %v9578_v7 = vld [vmem:[%s10351_s24] sm:$0xff]  ;;  %v9579_v8 = vld [vmem:[%s10351_s24 + $0x8] sm:$0xff]  ;;  %v9580_v9 = vld [vmem:[%s10351_s24 + $0x10] sm:$0xff]  ;;  %p10188_p1 = scmp.lt.s32.totalorder %s10186_s12, %s10182_s29 }
  0x1d   : > { %v9581_v10 = vld [vmem:[%s10351_s24 + $0x18] sm:$0xff]  ;;  %v9582_v11 = vld [vmem:[%s10351_s24 + $0x20] sm:$0xff]  ;;  %v9583_v12 = vld [vmem:[%s10351_s24 + $0x28] sm:$0xff]  ;;  %p10184_p12 = pnand %p10183_p11, %p10330_p5 }
  0x1e   : > { %v9584_v13 = vld [vmem:[%s10351_s24 + $0x30] sm:$0xff]  ;;  %v9585_v14 = vld [vmem:[%s10351_s24 + $0x38] sm:$0xff]  ;;  %v9586_v16 = vld [vmem:[%s10351_s24 + $0x40] sm:$0xff]  ;;  %p10189_p2 = por %p10188_p1, %p10187_p0 }
  0x1f   : > { %6682 = vmatmul.msk.bf16.vlgmr.msra.gmra.mxu0 %vm484_vm2, %v9578_v7  ;;  %v9587_v25 = vld [vmem:[%s10351_s24 + $0x48] sm:$0xff]  ;;  %v9588_v34 = vld [vmem:[%s10351_s24 + $0x50] sm:$0xff]  ;;  %v9589_v43 = vld [vmem:[%s10351_s24 + $0x58] sm:$0xff]  ;;  %p10185_p13 = pneg %p10184_p12 }
  0x20   : > { %v409_v49 = vld [vmem:[%s10351_s24 + $0x60] sm:$0x3]  ;;  %s6568_s24 = sshll.u32 %s378_s22, 4  ;;  %s6569_s24 = int_to_ptr.vmem [resolvable:$true] %s6568_s24 }
  0x21   : > { %v465_v52 = vunpack.c.l.b16 %v409_v49  ;;  %p10190_p3 = pnand %p10189_p2, %p10185_p13 }
  0x23   : > { %v478_v54 = vpack.c.b16 %v465_v52, %v465_v52 }
  0x2f   : > { %6683 = vmatmul.msk.bf16.gmra.mxu0 %vm484_vm2, %v9579_v8 }
  0x3f   : > { %6684 = vmatmul.msk.bf16.gmra.mxu0 %vm484_vm2, %v9580_v9 }
  0x4f   : > { %6685 = vmatmul.msk.bf16.gmra.mxu0 %vm484_vm2, %v9581_v10 }
  0x5f   : > { %6686 = vmatmul.msk.bf16.gmra.mxu0 %vm484_vm2, %v9582_v11 }
  0x6f   : > { %6687 = vmatmul.msk.bf16.gmra.mxu0 %vm484_vm2, %v9583_v12 }
  0x7f   : > { %6688 = vmatmul.msk.bf16.gmra.mxu0 %vm484_vm2, %v9584_v13 }
  0x8f   : > { %6689 = vmatmul.msk.bf16.gmra.mxu0 %vm484_vm2, %v9585_v14 }
  0x9c   : > { %v540_v17 = vpop.f32.mrf.mxu0 }
  0x9d   : > { %v541_v18 = vadd.f32 %v10372_v15, %v540_v17 }
  0x9f   : > { %v604_v19 = vmax.f32 %v541_v18, 0.0  ;;  %6690 = vmatmul.msk.bf16.gmra.mxu0 %vm484_vm2, %v9586_v16 }
  0xa1   : > { %v629_v20 = vpack.c.bf16 %v604_v19, %v604_v19 }
  0xa3   : > { %655 = vst.msk [vmem:[#allocation2] sm:$0xf] %vm654_vm3, %v629_v20 }
  0xa4   : > { %v542_v21 = vpop.f32.mrf.mxu0 }
  0xa5   : > { %v543_v22 = vadd.f32 %v10372_v15, %v542_v21 }
  0xa7   : > { %v605_v23 = vmax.f32 %v543_v22, 0.0 }
  0xa9   : > { %v630_v24 = vpack.c.bf16 %v605_v23, %v605_v23 }
  0xab   : > { %656 = vst.msk [vmem:[#allocation2 + $0x4] sm:$0xf] %vm654_vm3, %v630_v24 }
  0xac   : > { %v545_v26 = vpop.f32.mrf.mxu0 }
  0xad   : > { %v546_v27 = vadd.f32 %v10372_v15, %v545_v26 }
  0xaf   : > { %v606_v28 = vmax.f32 %v546_v27, 0.0  ;;  %6691 = vmatmul.msk.bf16.gmra.mxu0 %vm484_vm2, %v9587_v25 }
  0xb1   : > { %v631_v29 = vpack.c.bf16 %v606_v28, %v606_v28 }
  0xb3   : > { %657 = vst.msk [vmem:[#allocation2 + $0x8] sm:$0xf] %vm654_vm3, %v631_v29 }
  0xb4   : > { %v547_v30 = vpop.f32.mrf.mxu0 }
  0xb5   : > { %v548_v31 = vadd.f32 %v10372_v15, %v547_v30 }
  0xb7   : > { %v607_v32 = vmax.f32 %v548_v31, 0.0 }
  0xb9   : > { %v632_v33 = vpack.c.bf16 %v607_v32, %v607_v32 }
  0xbb   : > { %658 = vst.msk [vmem:[#allocation2 + $0xc] sm:$0xf] %vm654_vm3, %v632_v33 }
  0xbc   : > { %v550_v35 = vpop.f32.mrf.mxu0 }
  0xbd   : > { %v551_v36 = vadd.f32 %v10372_v15, %v550_v35 }
  0xbf   : > { %v608_v37 = vmax.f32 %v551_v36, 0.0  ;;  %6692 = vmatmul.msk.bf16.gmra.mxu0 %vm484_vm2, %v9588_v34 }
  0xc1   : > { %v633_v38 = vpack.c.bf16 %v608_v37, %v608_v37 }
  0xc3   : > { %659 = vst.msk [vmem:[#allocation2 + $0x10] sm:$0xf] %vm654_vm3, %v633_v38 }
  0xc4   : > { %v552_v39 = vpop.f32.mrf.mxu0 }
  0xc5   : > { %v553_v40 = vadd.f32 %v10372_v15, %v552_v39 }
  0xc7   : > { %v609_v41 = vmax.f32 %v553_v40, 0.0 }
  0xc9   : > { %v634_v42 = vpack.c.bf16 %v609_v41, %v609_v41 }
  0xcb   : > { %660 = vst.msk [vmem:[#allocation2 + $0x14] sm:$0xf] %vm654_vm3, %v634_v42 }
  0xcc   : > { %v555_v44 = vpop.f32.mrf.mxu0 }
  0xcd   : > { %v556_v45 = vadd.f32 %v10372_v15, %v555_v44 }
  0xcf   : > { %v610_v46 = vmax.f32 %v556_v45, 0.0  ;;  %6693 = vmatmul.msk.bf16.gmra.mxu0 %vm484_vm2, %v9589_v43 }
  0xd1   : > { %v635_v47 = vpack.c.bf16 %v610_v46, %v610_v46 }
  0xd3   : > { %661 = vst.msk [vmem:[#allocation2 + $0x18] sm:$0xf] %vm654_vm3, %v635_v47 }
  0xd4   : > { %v557_v48 = vpop.f32.mrf.mxu0 }
  0xd5   : > { %v558_v50 = vadd.f32 %v10372_v15, %v557_v48 }
  0xd7   : > { %v611_v51 = vmax.f32 %v558_v50, 0.0 }
  0xd9   : > { %v636_v53 = vpack.c.bf16 %v611_v51, %v611_v51  ;;  %v9599_v51 = vld [vmem:[#allocation2 + $0x10] sm:$0xf0] }
  0xda   : > { %v6733_v49 = vld [vmem:[#allocation2 + $0x18] sm:$0xf] }
  0xdb   : > { %662 = vst.msk [vmem:[#allocation2 + $0x1c] sm:$0xf] %vm654_vm3, %v636_v53 }
  0xdc   : > { %v560_v55 = vpop.f32.mrf.mxu0 }
  0xdd   : > { %v561_v56 = vadd.f32 %v10372_v15, %v560_v55 }
  0xdf   : > { %v612_v57 = vmax.f32 %v561_v56, 0.0  ;;  %6694 = vmatmul.msk.bf16.gmra.mxu0 %vm484_vm2, %v478_v54  ;;  %v6729_v54 = vld [vmem:[#allocation2 + $0x10] sm:$0xf] }
  0xe0   : > { %v10448_v55 = vor.u32 %v9599_v51, %v6729_v54 }
  0xe1   : > { %v637_v58 = vpack.c.bf16 %v612_v57, %v612_v57  ;;  %v9598_v57 = vld [vmem:[#allocation2 + $0x8] sm:$0xf0] }
  0xe2   : > { %v9600_v47 = vld [vmem:[#allocation2 + $0x18] sm:$0xf0] }
  0xe3   : > { %663 = vst.msk [vmem:[#allocation2 + $0x20] sm:$0xf] %vm654_vm3, %v637_v58  ;;  %v10441_v50 = vor.u32 %v9600_v47, %v6733_v49 }
  0xe4   : > { %v562_v59 = vpop.f32.mrf.mxu0 }
  0xe5   : > { %v563_v60 = vadd.f32 %v10372_v15, %v562_v59  ;;  %v6725_v59 = vld [vmem:[#allocation2 + $0x8] sm:$0xf] }
  0xe7   : > { %v613_v61 = vmax.f32 %v563_v60, 0.0  ;;  %v10453_v60 = vor.u32 %v9598_v57, %v6725_v59  ;;  %v6705_v57 = vld [vmem:[%s13113_s3 + $0x10] sm:$0xf] }
  0xe9   : > { %v638_v62 = vpack.c.bf16 %v613_v61, %v613_v61  ;;  %v9597_v61 = vld [vmem:[#allocation2] sm:$0xf0] }
  0xea   : > { %v6737_v44 = vld [vmem:[#allocation2 + $0x20] sm:$0xf] }
  0xeb   : > { %664 = vst.msk [vmem:[#allocation2 + $0x24] sm:$0xf] %vm654_vm3, %v638_v62 }
  0xec   : > { %v565_v63 = vpop.f32.mrf.mxu0 }
  0xed   : > { %v566_v0 = vadd.f32 %v10372_v15, %v565_v63 }
  0xef   : > { %v614_v1 = vmax.f32 %v566_v0, 0.0  ;;  %v6721_v0 = vld [vmem:[#allocation2] sm:$0xf] }
  0xf1   : > { %v639_v2 = vpack.c.bf16 %v614_v1, %v614_v1  ;;  %v6926_v1 = vld [vmem:[%s13113_s3 + $0xa8] sm:$0xf] }
  0xf2   : > { %v9601_v41 = vld [vmem:[#allocation2 + $0x20] sm:$0xf0] }
  0xf3   : > { %665 = vst.msk [vmem:[#allocation2 + $0x28] sm:$0xf] %vm654_vm3, %v639_v2  ;;  %v10436_v45 = vor.u32 %v9601_v41, %v6737_v44  ;;  %v9634_v2 = vld [vmem:[%s13113_s3 + $0xac] sm:$0xf0] }
  0xf4   : > { %v567_v3 = vpop.f32.mrf.mxu0 }
  0xf5   : > { %v568_v4 = vadd.f32 %v10372_v15, %v567_v3  ;;  %v10466_v3 = vor.u32 %v9597_v61, %v6721_v0  ;;  %v9591_v0 = vld [vmem:[%s13113_s3 + $0x4] sm:$0xf] }
  0xf7   : > { %v615_v5 = vmax.f32 %v568_v4, 0.0 }
  0xf9   : > { %v640_v6 = vpack.c.bf16 %v615_v5, %v615_v5 }
  0xfa   : > { %v6741_v39 = vld [vmem:[#allocation2 + $0x28] sm:$0xf] }
  0xfb   : > { %666 = vst.msk [vmem:[#allocation2 + $0x2c] sm:$0xf] %vm654_vm3, %v640_v6  ;;  %v6927_v6 = vor.u32 %v9634_v2, %v6926_v1  ;;  %v6699_v1 = vld [vmem:[%s13113_s3 + $0x8] sm:$0xf0] }
  0xfc   : > { %v570_v7 = vpop.f32.mrf.mxu0 }
  0xfd   : > { %v571_v8 = vadd.f32 %v10372_v15, %v570_v7  ;;  %v9622_v7 = vld [vmem:[%s13114_s4 + $0x38] sm:$0xff] }
  0xff   : > { %v616_v9 = vmax.f32 %v571_v8, 0.0 }
 0x101   : > { %v641_v10 = vpack.c.bf16 %v616_v9, %v616_v9  ;;  %v9621_v9 = vld [vmem:[%s13114_s4 + $0x30] sm:$0xff] }
 0x102   : > { %v9602_v37 = vld [vmem:[#allocation2 + $0x28] sm:$0xf0] }
 0x103   : > { %667 = vst.msk [vmem:[#allocation2 + $0x30] sm:$0xf] %vm654_vm3, %v641_v10  ;;  %v10429_v40 = vor.u32 %v9602_v37, %v6741_v39 }
 0x104   : > { %v572_v11 = vpop.f32.mrf.mxu0 }
 0x105   : > { %v573_v12 = vadd.f32 %v10372_v15, %v572_v11  ;;  %v6697_v11 = vld [vmem:[%s13113_s3] sm:$0xf] }
 0x107   : > { %v617_v13 = vmax.f32 %v573_v12, 0.0  ;;  %v9592_v12 = vld [vmem:[%s13113_s3 + $0x4] sm:$0xf0] }
 0x109   : > { %v642_v14 = vpack.c.bf16 %v617_v13, %v617_v13 }
 0x10a   : > { %v6745_v34 = vld [vmem:[#allocation2 + $0x30] sm:$0xf] }
 0x10b   : > { %668 = vst.msk [vmem:[#allocation2 + $0x34] sm:$0xf] %vm654_vm3, %v642_v14  ;;  %v6698_v14 = vor.u32 %v9592_v12, %v6697_v11  ;;  %v9660_v11 = vld [vmem:[%s13114_s4 + $0xa8] sm:$0xff]  ;;  %v6713_v12 = vld [vmem:[%s13113_s3 + $0x20] sm:$0xf] }
 0x10c   : > { %v575_v16 = vpop.f32.mrf.mxu0 }
 0x10d   : > { %v576_v17 = vadd.f32 %v10372_v15, %v575_v16  ;;  %v9620_v16 = vld [vmem:[%s13114_s4 + $0x28] sm:$0xff] }
 0x10f   : > { %v618_v18 = vmax.f32 %v576_v17, 0.0 }
 0x111   : > { %v643_v19 = vpack.c.bf16 %v618_v18, %v618_v18 }
 0x112   : > { %v9603_v31 = vld [vmem:[#allocation2 + $0x30] sm:$0xf0] }
 0x113   : > { %669 = vst.msk [vmem:[#allocation2 + $0x38] sm:$0xf] %vm654_vm3, %v643_v19  ;;  %v10424_v35 = vor.u32 %v9603_v31, %v6745_v34  ;;  %v9619_v19 = vld [vmem:[%s13114_s4 + $0x20] sm:$0xff]  ;;  %v9638_v34 = vld [vmem:[%s13113_s3 + $0xcc] sm:$0xf0] }
 0x114   : > { %v577_v20 = vpop.f32.mrf.mxu0 }
 0x115   : > { %v578_v21 = vadd.f32 %v10372_v15, %v577_v20 }
 0x117   : > { %v619_v22 = vmax.f32 %v578_v21, 0.0  ;;  %v6934_v21 = vld [vmem:[%s13113_s3 + $0xb8] sm:$0xf] }
 0x119   : > { %v644_v23 = vpack.c.bf16 %v619_v22, %v619_v22  ;;  %v9636_v22 = vld [vmem:[%s13113_s3 + $0xbc] sm:$0xf0] }
 0x11a   : > { %v6749_v28 = vld [vmem:[#allocation2 + $0x38] sm:$0xf] }
 0x11b   : > { %670 = vst.msk [vmem:[#allocation2 + $0x3c] sm:$0xf] %vm654_vm3, %v644_v23 }
 0x11c   : > { %v580_v24 = vpop.f32.mrf.mxu0 }
 0x11d   : > { %v581_v25 = vadd.f32 %v10372_v15, %v580_v24 }
 0x11f   : > { %v620_v26 = vmax.f32 %v581_v25, 0.0  ;;  %v6935_v25 = vor.u32 %v9636_v22, %v6934_v21  ;;  %v6780_v22 = vld [vmem:[%s13113_s3 + $0x38] sm:$0xf] }
 0x121   : > { %v645_v27 = vpack.c.bf16 %v620_v26, %v620_v26 }
 0x122   : > { %v9604_v29 = vld [vmem:[#allocation2 + $0x38] sm:$0xf0] }
 0x123   : > { %v10417_v30 = vor.u32 %v9604_v29, %v6749_v28  ;;  %671 = vst.msk [vmem:[#allocation2 + $0x40] sm:$0xf] %vm654_vm3, %v645_v27 }
 0x124   : > { %v582_v32 = vpop.f32.mrf.mxu0 }
 0x125   : > { %v583_v33 = vadd.f32 %v10372_v15, %v582_v32  ;;  %838 = vmatpush.bf16.msra.mxu1 %v10417_v30  ;;  %959 = vmatpush.bf16.msra.mxu3 %v10417_v30 }
 0x126   : > { %1403 = vmatpush.bf16.msrb.mxu0 %v10417_v30 }
 0x127   : > { %v621_v36 = vmax.f32 %v583_v33, 0.0  ;;  %v6942_v33 = vld [vmem:[%s13113_s3 + $0xc8] sm:$0xf] }
 0x129   : > { %v646_v38 = vpack.c.bf16 %v621_v36, %v621_v36  ;;  %839 = vmatpush.bf16.msra.mxu1 %v10424_v35  ;;  %960 = vmatpush.bf16.msra.mxu3 %v10424_v35 }
 0x12a   : > { %1404 = vmatpush.bf16.msrb.mxu0 %v10424_v35  ;;  %v6753_v2 = vld [vmem:[#allocation2 + $0x40] sm:$0xf] }
 0x12b   : > { %672 = vst.msk [vmem:[#allocation2 + $0x44] sm:$0xf] %vm654_vm3, %v646_v38  ;;  %v6943_v38 = vor.u32 %v9638_v34, %v6942_v33 }
 0x12c   : > { %v585_v42 = vpop.f32.mrf.mxu0 }
 0x12d   : > { %v586_v43 = vadd.f32 %v10372_v15, %v585_v42  ;;  %840 = vmatpush.bf16.msra.mxu1 %v10429_v40  ;;  %961 = vmatpush.bf16.msra.mxu3 %v10429_v40 }
 0x12e   : > { %1405 = vmatpush.bf16.msrb.mxu0 %v10429_v40 }
 0x12f   : > { %v622_v46 = vmax.f32 %v586_v43, 0.0 }
 0x131   : > { %v647_v48 = vpack.c.bf16 %v622_v46, %v622_v46  ;;  %841 = vmatpush.bf16.msra.mxu1 %v10436_v45  ;;  %962 = vmatpush.bf16.msra.mxu3 %v10436_v45 }
 0x132   : > { %1406 = vmatpush.bf16.msrb.mxu0 %v10436_v45 }
 0x133   : > { %673 = vst.msk [vmem:[#allocation2 + $0x48] sm:$0xf] %vm654_vm3, %v647_v48 }
 0x134   : > { %v587_v52 = vpop.f32.mrf.mxu0 }
 0x135   : > { %v588_v53 = vadd.f32 %v10372_v15, %v587_v52  ;;  %842 = vmatpush.bf16.msra.mxu1 %v10441_v50  ;;  %963 = vmatpush.bf16.msra.mxu3 %v10441_v50 }
 0x136   : > { %1407 = vmatpush.bf16.msrb.mxu0 %v10441_v50 }
 0x137   : > { %v623_v56 = vmax.f32 %v588_v53, 0.0 }
 0x139   : > { %v648_v58 = vpack.c.bf16 %v623_v56, %v623_v56  ;;  %843 = vmatpush.bf16.msra.mxu1 %v10448_v55  ;;  %964 = vmatpush.bf16.msra.mxu3 %v10448_v55 }
 0x13a   : > { %1408 = vmatpush.bf16.msrb.mxu0 %v10448_v55  ;;  %v6757_v61 = vld [vmem:[#allocation2 + $0x48] sm:$0xf] }
 0x13b   : > { %674 = vst.msk [vmem:[#allocation2 + $0x4c] sm:$0xf] %vm654_vm3, %v648_v58  ;;  %v9594_v58 = vld [vmem:[%s13113_s3 + $0x14] sm:$0xf0] }
 0x13c   : > { %v590_v62 = vpop.f32.mrf.mxu0  ;;  %v6706_v59 = vor.u32 %v9594_v58, %v6705_v57  ;;  %v9610_v57 = vld [vmem:[%s13114_s4 + $0x8] sm:$0xff]  ;;  %v9617_v58 = vld [vmem:[%s13113_s3 + $0x5c] sm:$0xf] }
 0x13d   : > { %v591_v63 = vadd.f32 %v10372_v15, %v590_v62  ;;  %844 = vmatpush.bf16.msra.mxu1 %v10453_v60  ;;  %965 = vmatpush.bf16.msra.mxu3 %v10453_v60 }
 0x13e   : > { %1409 = vmatpush.bf16.msrb.mxu0 %v10453_v60 }
 0x13f   : > { %v624_v4 = vmax.f32 %v591_v63, 0.0  ;;  %v9605_v63 = vld [vmem:[#allocation2 + $0x40] sm:$0xf0] }
 0x141   : > { %v649_v5 = vpack.c.bf16 %v624_v4, %v624_v4  ;;  %845 = vmatpush.bf16.msra.mxu1 %v10466_v3  ;;  %966 = vmatpush.bf16.msra.mxu3 %v10466_v3  ;;  %v10547_v4 = vor.u32 %v9605_v63, %v6753_v2  ;;  %v9609_v63 = vld [vmem:[%s13114_s4] sm:$0xff]  ;;  %v9631_v2 = vld [vmem:[%s13114_s4 + $0x50] sm:$0xff] }
 0x142   : > { %1410 = vmatpush.bf16.msrb.mxu0 %v10466_v3  ;;  %v9606_v56 = vld [vmem:[#allocation2 + $0x48] sm:$0xf0] }
 0x143   : > { %675 = vst.msk [vmem:[#allocation2 + $0x50] sm:$0xf] %vm654_vm3, %v649_v5  ;;  %v10536_v62 = vor.u32 %v9606_v56, %v6757_v61  ;;  %v9662_v5 = vld [vmem:[%s13114_s4 + $0xb8] sm:$0xff]  ;;  %v9611_v56 = vld [vmem:[%s13114_s4 + $0x10] sm:$0xff] }
 0x144   : > { %v592_v8 = vpop.f32.mrf.mxu0  ;;  %846 = vmatmul.bf16.vlgmr.msra.gmra.mxu1 %v6698_v14 }
 0x145   : > { %1069 = vmatpush.bf16.msrb.mxu1 %v9622_v7  ;;  %v593_v10 = vadd.f32 %v10372_v15, %v592_v8  ;;  %1411 = vmatmul.bf16.vlgmr.msrb.gmra.mxu0 %v6927_v6  ;;  %v6702_v6 = vor.u32 %v9591_v0, %v6699_v1  ;;  %v9643_v7 = vld [vmem:[%s13113_s3 + $0xe4] sm:$0xf]  ;;  %v6991_v8 = vld [vmem:[%s13113_s3 + $0xe8] sm:$0xf0]  ;;  %v9632_v1 = vld [vmem:[%s13114_s4 + $0x58] sm:$0xff] }
 0x147   : > { %v625_v13 = vmax.f32 %v593_v10, 0.0  ;;  %v6994_v10 = vor.u32 %v9643_v7, %v6991_v8  ;;  %v9630_v7 = vld [vmem:[%s13114_s4 + $0x48] sm:$0xff] }
 0x149   : > { %1070 = vmatpush.bf16.msrb.mxu1 %v9621_v9  ;;  %v650_v17 = vpack.c.bf16 %v625_v13, %v625_v13  ;;  %v9661_v9 = vld [vmem:[%s13114_s4 + $0xb0] sm:$0xff]  ;;  %v9596_v13 = vld [vmem:[%s13113_s3 + $0x24] sm:$0xf0] }
 0x14a   : > { %v6761_v53 = vld [vmem:[#allocation2 + $0x50] sm:$0xf]  ;;  %v6714_v14 = vor.u32 %v9596_v13, %v6713_v12  ;;  %v9624_v12 = vld [vmem:[%s13113_s3 + $0x74] sm:$0xf0] }
 0x14b   : > { %676 = vst.msk [vmem:[#allocation2 + $0x54] sm:$0xf] %vm654_vm3, %v650_v17  ;;  %v9593_v17 = vld [vmem:[%s13113_s3 + $0x14] sm:$0xf] }
 0x14c   : > { %v595_v18 = vpop.f32.mrf.mxu0 }
 0x14d   : > { %1071 = vmatpush.bf16.msrb.mxu1 %v9620_v16  ;;  %v596_v20 = vadd.f32 %v10372_v15, %v595_v18  ;;  %v9659_v16 = vld [vmem:[%s13114_s4 + $0xa0] sm:$0xff]  ;;  %v6707_v18 = vld [vmem:[%s13113_s3 + $0x18] sm:$0xf0] }
 0x14f   : > { %v626_v23 = vmax.f32 %v596_v20, 0.0  ;;  %v687_v20 = vld [vmem:[%s13113_s3 + $0x30] sm:$0x11] }
 0x150   : > { %v732_v21 = vunpack.c.l.b16 %v687_v20  ;;  %v733_v33 = vunpack.c.h.b16 %v687_v20 }
 0x151   : > { %1072 = vmatpush.bf16.msrb.mxu1 %v9619_v19  ;;  %v651_v24 = vpack.c.bf16 %v626_v23, %v626_v23  ;;  %v6710_v19 = vor.u32 %v9593_v17, %v6707_v18  ;;  %v9614_v23 = vld [vmem:[%s13113_s3 + $0x3c] sm:$0xf0] }
 0x152   : > { %v9607_v52 = vld [vmem:[#allocation2 + $0x50] sm:$0xf0]  ;;  %v741_v34 = vpack.c.b16 %v733_v33, %v733_v33  ;;  %v6871_v18 = vld [vmem:[%s13113_s3 + $0x80] sm:$0xf]  ;;  %v9650_v33 = vld [vmem:[%s13114_s4 + $0x88] sm:$0xff] }
 0x153   : > { %677 = vst.msk [vmem:[#allocation2 + $0x58] sm:$0xf] %vm654_vm3, %v651_v24  ;;  %v10525_v54 = vor.u32 %v9607_v52, %v6761_v53  ;;  %v6781_v24 = vor.u32 %v9614_v23, %v6780_v22  ;;  %v9612_v53 = vld [vmem:[%s13114_s4 + $0x18] sm:$0xff] }
 0x154   : > { %v597_v26 = vpop.f32.mrf.mxu0  ;;  %851 = vmatmul.bf16.gmra.mxu1 %v6706_v59  ;;  %1133 = vmatpush.bf16.msrb.mxu3 %v9612_v53  ;;  %v6798_v59 = vld [vmem:[%s13113_s3 + $0x60] sm:$0xf0] }
 0x155   : > { %v598_v27 = vadd.f32 %v10372_v15, %v597_v26  ;;  %1416 = vmatmul.bf16.gmra.mxu0 %v6935_v25  ;;  %v740_v25 = vpack.c.b16 %v732_v21, %v732_v21  ;;  %967 = vmatmul.bf16.vlgmr.msra.gmra.mxu3 %v6781_v24  ;;  %v9595_v26 = vld [vmem:[%s13113_s3 + $0x24] sm:$0xf]  ;;  %v6801_v61 = vor.u32 %v9617_v58, %v6798_v59 }
 0x157   : > { %v627_v28 = vmax.f32 %v598_v27, 0.0  ;;  %v6715_v27 = vld [vmem:[%s13113_s3 + $0x28] sm:$0xf0] }
 0x158   : > { %1134 = vmatpush.bf16.msrb.mxu3 %v9611_v56 }
 0x159   : > { %v652_v29 = vpack.c.bf16 %v627_v28, %v627_v28  ;;  %v6718_v28 = vor.u32 %v9595_v26, %v6715_v27  ;;  %v9652_v26 = vld [vmem:[%s13114_s4 + $0x98] sm:$0xff] }
 0x15a   : > { %v6765_v48 = vld [vmem:[#allocation2 + $0x58] sm:$0xf] }
 0x15b   : > { %678 = vst.msk [vmem:[#allocation2 + $0x5c] sm:$0xf] %vm654_vm3, %v652_v29  ;;  %v6788_v29 = vld [vmem:[%s13113_s3 + $0x48] sm:$0xf] }
 0x15c   : > { %v600_v31 = vpop.f32.mrf.mxu0  ;;  %1135 = vmatpush.bf16.msrb.mxu3 %v9610_v57 }
 0x15d   : > { %v601_v32 = vadd.f32 %v10372_v15, %v600_v31  ;;  %v10512_v15 = vld [vmem:[%s13113_s3 + $0xd8] sm:$0x11]  ;;  %v9616_v31 = vld [vmem:[%s13113_s3 + $0x4c] sm:$0xf0] }
 0x15e   : > { %v1377_v44 = vunpack.c.l.b16 %v10512_v15 }
 0x15f   : > { %v628_v36 = vmax.f32 %v601_v32, 0.0  ;;  %v6789_v32 = vor.u32 %v9616_v31, %v6788_v29  ;;  %v9651_v29 = vld [vmem:[%s13114_s4 + $0x90] sm:$0xff] }
 0x160   : > { %v1385_v51 = vpack.c.b16 %v1377_v44, %v1377_v44  ;;  %1136 = vmatpush.bf16.msrb.mxu3 %v9609_v63  ;;  %v6879_v31 = vld [vmem:[%s13113_s3 + $0x90] sm:$0xf] }
 0x161   : > { %v653_v37 = vpack.c.bf16 %v628_v36, %v628_v36  ;;  %v6796_v36 = vld [vmem:[%s13113_s3 + $0x58] sm:$0xf] }
 0x162   : > { %v9608_v46 = vld [vmem:[#allocation2 + $0x58] sm:$0xf0] }
 0x163   : > { %680 = vst.msk [vmem:[#allocation2 + $0x60] sm:$0x3] %vm679_vm4, %v653_v37  ;;  %v10520_v49 = vor.u32 %v9608_v46, %v6765_v48  ;;  %v9618_v37 = vld [vmem:[%s13113_s3 + $0x5c] sm:$0xf0]  ;;  %v9615_v48 = vld [vmem:[%s13113_s3 + $0x4c] sm:$0xf] }
 0x164   : > { %v602_v39 = vpop.f32.mrf.mxu0  ;;  %856 = vmatmul.bf16.gmra.mxu1 %v6714_v14  ;;  %1319 = vmatpush.bf16.msra.mxu3 %v9632_v1  ;;  %v6928_v1 = vld [vmem:[%s13113_s3 + $0xb0] sm:$0xf0] }
 0x165   : > { %1421 = vmatmul.bf16.gmra.mxu0 %v6943_v38  ;;  %972 = vmatmul.bf16.gmra.mxu3 %v6789_v32  ;;  %v6797_v38 = vor.u32 %v9618_v37, %v6796_v36  ;;  %v9613_v39 = vld [vmem:[%s13113_s3 + $0x3c] sm:$0xf]  ;;  %v9628_v32 = vld [vmem:[%s13113_s3 + $0x94] sm:$0xf0] }
 0x168   : > { %1320 = vmatpush.bf16.msra.mxu3 %v9631_v2 }
 0x16a   : > { %v712_v41 = vld [vmem:[#allocation2 + $0x60] sm:$0x3] }
 0x16b   : > { %v795_v42 = vunpack.c.l.b16 %v712_v41  ;;  %v6782_v41 = vld [vmem:[%s13113_s3 + $0x40] sm:$0xf0] }
 0x16c   : > { %1321 = vmatpush.bf16.msra.mxu3 %v9630_v7 }
 0x16d   : > { %v808_v43 = vpack.c.b16 %v795_v42, %v795_v42  ;;  %v6785_v42 = vor.u32 %v9613_v39, %v6782_v41  ;;  %v6880_v39 = vor.u32 %v9628_v32, %v6879_v31  ;;  %v9639_v31 = vld [vmem:[%s13114_s4 + $0x60] sm:$0xff] }
 0x16f   : > { %v10515_v47 = vsel %vm834_vm5, %v808_v43, 0  ;;  %v6777_v43 = vld [vmem:[%s13113_s3 + $0x68] sm:$0x11] }
 0x170   : > { %869 = vmatpush.bf16.msra.mxu2 %v10515_v47  ;;  %1241 = vmatpush.bf16.msra.mxu1 %v10515_v47  ;;  %v933_v44 = vunpack.c.l.b16 %v6777_v43 }
 0x171   : > { %1627 = vmatpush.bf16.msra.mxu0 %v10515_v47 }
 0x172   : > { %v941_v46 = vpack.c.b16 %v933_v44, %v933_v44 }
 0x174   : > { %870 = vmatpush.bf16.msra.mxu2 %v10520_v49  ;;  %1242 = vmatpush.bf16.msra.mxu1 %v10520_v49 }
 0x175   : > { %1628 = vmatpush.bf16.msra.mxu0 %v10520_v49  ;;  %861 = vmatmul.bf16.gmra.mxu1 %v740_v25 }
 0x176   : > { %1426 = vmatmul.bf16.gmra.mxu0 %v1385_v51  ;;  %977 = vmatmul.bf16.gmra.mxu3 %v6797_v38  ;;  %v6790_v51 = vld [vmem:[%s13113_s3 + $0x50] sm:$0xf0] }
 0x177   : > { %v6793_v52 = vor.u32 %v9615_v48, %v6790_v51  ;;  %v10730_v48 = vld [vmem:[%s13113_s3 + $0xa0] sm:$0x11] }
 0x178   : > { %871 = vmatpush.bf16.msra.mxu2 %v10525_v54  ;;  %1243 = vmatpush.bf16.msra.mxu1 %v10525_v54  ;;  %v1184_v51 = vunpack.c.l.b16 %v10730_v48 }
 0x179   : > { %1629 = vmatpush.bf16.msra.mxu0 %v10525_v54 }
 0x17a   : > { %v1192_v58 = vpack.c.b16 %v1184_v51, %v1184_v51 }
 0x17c   : > { %872 = vmatpush.bf16.msra.mxu2 %v10536_v62  ;;  %1244 = vmatpush.bf16.msra.mxu1 %v10536_v62 }
 0x17d   : > { %1630 = vmatpush.bf16.msra.mxu0 %v10536_v62 }
 0x180   : > { %873 = vmatpush.bf16.msra.mxu2 %v10547_v4  ;;  %1245 = vmatpush.bf16.msra.mxu1 %v10547_v4 }
 0x181   : > { %1631 = vmatpush.bf16.msra.mxu0 %v10547_v4 }
 0x183   : > { %6767 = vmatmul.msk.bf16.vlgmr.msra.gmra.mxu2 %vm821_vm6, %v6702_v6 }
 0x184   : > { %990 = vmatpush.bf16.msrb.mxu2 %v10515_v47 }
 0x185   : > { %1898 = vmatpush.bf16.msrb.mxu0 %v9662_v5  ;;  %v934_v5 = vunpack.c.h.b16 %v6777_v43 }
 0x186   : > { %7011 = vmatmul.msk.bf16.vlgmr.msra.gmra.mxu0 %vm821_vm6, %v6994_v10  ;;  %982 = vmatmul.bf16.gmra.mxu3 %v941_v46 }
 0x187   : > { %v942_v8 = vpack.c.b16 %v934_v5, %v934_v5 }
 0x188   : > { %991 = vmatpush.bf16.msrb.mxu2 %v10520_v49 }
 0x189   : > { %1899 = vmatpush.bf16.msrb.mxu0 %v9661_v9  ;;  %v9629_v9 = vld [vmem:[%s13114_s4 + $0x40] sm:$0xff] }
 0x18a   : > { %1322 = vmatpush.bf16.msra.mxu3 %v9629_v9 }
 0x18c   : > { %992 = vmatpush.bf16.msrb.mxu2 %v10525_v54 }
 0x18d   : > { %1900 = vmatpush.bf16.msrb.mxu0 %v9660_v11  ;;  %v6863_v11 = vld [vmem:[%s13113_s3 + $0x70] sm:$0xf] }
 0x18e   : > { %v6864_v13 = vor.u32 %v9624_v12, %v6863_v11 }
 0x190   : > { %993 = vmatpush.bf16.msrb.mxu2 %v10536_v62 }
 0x191   : > { %1901 = vmatpush.bf16.msrb.mxu0 %v9659_v16 }
 0x193   : > { %6768 = vmatmul.msk.bf16.gmra.mxu2 %vm821_vm6, %v6710_v19  ;;  %v9626_v19 = vld [vmem:[%s13113_s3 + $0x84] sm:$0xf0] }
 0x194   : > { %994 = vmatpush.bf16.msrb.mxu2 %v10547_v4  ;;  %v6872_v23 = vor.u32 %v9626_v19, %v6871_v18 }
 0x195   : > { %2175 = vmatpush.bf16.msra.mxu0 %v10417_v30 }
 0x198   : > { %1210 = vmatpush.bf16.msra.mxu2 %v10417_v30 }
 0x199   : > { %2176 = vmatpush.bf16.msra.mxu0 %v10424_v35 }
 0x19c   : > { %1211 = vmatpush.bf16.msra.mxu2 %v10424_v35 }
 0x19d   : > { %2177 = vmatpush.bf16.msra.mxu0 %v10429_v40 }
 0x1a0   : > { %1212 = vmatpush.bf16.msra.mxu2 %v10429_v40 }
 0x1a1   : > { %2178 = vmatpush.bf16.msra.mxu0 %v10436_v45 }
 0x1a3   : > { %6769 = vmatmul.msk.bf16.gmra.mxu2 %vm821_vm6, %v6718_v28 }
 0x1a4   : > { %1213 = vmatpush.bf16.msra.mxu2 %v10436_v45 }
 0x1a5   : > { %2179 = vmatpush.bf16.msra.mxu0 %v10441_v50 }
 0x1a8   : > { %1214 = vmatpush.bf16.msra.mxu2 %v10441_v50 }
 0x1a9   : > { %2180 = vmatpush.bf16.msra.mxu0 %v10448_v55 }
 0x1ac   : > { %1215 = vmatpush.bf16.msra.mxu2 %v10448_v55 }
 0x1ad   : > { %2181 = vmatpush.bf16.msra.mxu0 %v10453_v60 }
 0x1b0   : > { %1216 = vmatpush.bf16.msra.mxu2 %v10453_v60 }
 0x1b1   : > { %2182 = vmatpush.bf16.msra.mxu0 %v10466_v3 }
 0x1b3   : > { %6770 = vmatmul.msk.bf16.gmra.mxu2 %vm821_vm6, %v741_v34 }
 0x1b4   : > { %1217 = vmatpush.bf16.msra.mxu2 %v10466_v3 }
 0x1c1   : > { %v847_v0 = vpop.f32.mrf.mxu1 }
 0x1c3   : > { %6802 = vmatmul.msk.bf16.vlgmr.msrb.gmra.mxu2 %vm821_vm6, %v6785_v42  ;;  %v9649_v42 = vld [vmem:[%s13114_s4 + $0x80] sm:$0xff] }
 0x1c4   : > { %1434 = vmatpush.bf16.msrb.mxu2 %v10515_v47 }
 0x1c8   : > { %1435 = vmatpush.bf16.msrb.mxu2 %v10520_v49 }
 0x1c9   : > { %v849_v6 = vpop.f32.mrf.mxu1 }
 0x1cc   : > { %1436 = vmatpush.bf16.msrb.mxu2 %v10525_v54 }
 0x1d0   : > { %1437 = vmatpush.bf16.msrb.mxu2 %v10536_v62 }
 0x1d1   : > { %v852_v10 = vpop.f32.mrf.mxu1 }
 0x1d3   : > { %6803 = vmatmul.msk.bf16.gmra.mxu2 %vm821_vm6, %v6793_v52 }
 0x1d4   : > { %1438 = vmatpush.bf16.msrb.mxu2 %v10547_v4 }
 0x1d8   : > { %v968_v36 = vpop.f32.mrf.mxu3 }
 0x1d9   : > { %v854_v14 = vpop.f32.mrf.mxu1 }
 0x1e0   : > { %v970_v46 = vpop.f32.mrf.mxu3 }
 0x1e1   : > { %v857_v17 = vpop.f32.mrf.mxu1 }
 0x1e3   : > { %6804 = vmatmul.msk.bf16.gmra.mxu2 %vm821_vm6, %v6801_v61 }
 0x1e8   : > { %v973_v53 = vpop.f32.mrf.mxu3 }
 0x1e9   : > { %v859_v24 = vpop.f32.mrf.mxu1 }
 0x1f0   : > { %v975_v63 = vpop.f32.mrf.mxu3 }
 0x1f2   : > { %v862_v28 = vpop.f32.mrf.mxu1 }
 0x1f3   : > { %6805 = vmatmul.msk.bf16.gmra.mxu2 %vm821_vm6, %v942_v8 }
 0x1f9   : > { %v978_v8 = vpop.f32.mrf.mxu3 }
 0x1fa   : > { %v864_v41 = vpop.f32.mrf.mxu1 }
 0x203   : > { %1218 = vmatmul.bf16.vlgmr.msra.gmra.mxu2 %v6864_v13 }
 0x204   : > { %1705 = vmatpush.bf16.msra.mxu2 %v9652_v26  ;;  %v9640_v26 = vld [vmem:[%s13114_s4 + $0x68] sm:$0xff] }
 0x206   : > { %v875_v16 = vpop.f32.mrf.mxu2 }
 0x207   : > { %v876_v21 = vadd.f32 %v875_v16, %v847_v0  ;;  %v9633_v0 = vld [vmem:[%s13113_s3 + $0xac] sm:$0xf] }
 0x208   : > { %1706 = vmatpush.bf16.msra.mxu2 %v9651_v29 }
 0x20c   : > { %1707 = vmatpush.bf16.msra.mxu2 %v9650_v33 }
 0x20e   : > { %v877_v20 = vpop.f32.mrf.mxu2 }
 0x20f   : > { %v878_v22 = vadd.f32 %v877_v20, %v849_v6  ;;  %v6931_v6 = vor.u32 %v9633_v0, %v6928_v1 }
 0x210   : > { %1708 = vmatpush.bf16.msra.mxu2 %v9649_v42 }
 0x211   : > { %v894_v25 = vpack.c.bf16 %v878_v22, %v876_v21 }
 0x213   : > { %6850 = vmatmul.msk.bf16.vlgmr.msrb.gmra.mxu3 %vm1052_vm7, %v894_v25  ;;  %1223 = vmatmul.bf16.gmra.mxu2 %v6872_v23  ;;  %v9642_v23 = vld [vmem:[%s13114_s4 + $0x78] sm:$0xff]  ;;  %v9641_v25 = vld [vmem:[%s13114_s4 + $0x70] sm:$0xff] }
 0x214   : > { %1596 = vmatpush.bf16.msrb.mxu3 %v10417_v30 }
 0x216   : > { %v880_v27 = vpop.f32.mrf.mxu2 }
 0x217   : > { %v881_v37 = vadd.f32 %v880_v27, %v852_v10  ;;  %v980_v10 = vpop.f32.mrf.mxu3 }
 0x218   : > { %1597 = vmatpush.bf16.msrb.mxu3 %v10424_v35 }
 0x21c   : > { %1598 = vmatpush.bf16.msrb.mxu3 %v10429_v40 }
 0x21e   : > { %v882_v34 = vpop.f32.mrf.mxu2 }
 0x21f   : > { %v883_v38 = vadd.f32 %v882_v34, %v854_v14  ;;  %v983_v16 = vpop.f32.mrf.mxu3 }
 0x220   : > { %1599 = vmatpush.bf16.msrb.mxu3 %v10436_v45 }
 0x221   : > { %v895_v43 = vpack.c.bf16 %v883_v38, %v881_v37  ;;  %v9635_v38 = vld [vmem:[%s13113_s3 + $0xbc] sm:$0xf] }
 0x223   : > { %6851 = vmatmul.msk.bf16.gmra.mxu3 %vm1052_vm7, %v895_v43  ;;  %1228 = vmatmul.bf16.gmra.mxu2 %v6880_v39  ;;  %v6936_v39 = vld [vmem:[%s13113_s3 + $0xc0] sm:$0xf0]  ;;  %v9623_v43 = vld [vmem:[%s13113_s3 + $0x74] sm:$0xf] }
 0x224   : > { %1600 = vmatpush.bf16.msrb.mxu3 %v10441_v50  ;;  %v6939_v41 = vor.u32 %v9635_v38, %v6936_v39 }
 0x226   : > { %v885_v44 = vpop.f32.mrf.mxu2 }
 0x227   : > { %v886_v56 = vadd.f32 %v885_v44, %v857_v17  ;;  %v985_v18 = vpop.f32.mrf.mxu3  ;;  %v6865_v44 = vld [vmem:[%s13113_s3 + $0x78] sm:$0xf0] }
 0x228   : > { %1601 = vmatpush.bf16.msrb.mxu3 %v10448_v55  ;;  %v6868_v51 = vor.u32 %v9623_v43, %v6865_v44 }
 0x22c   : > { %1602 = vmatpush.bf16.msrb.mxu3 %v10453_v60 }
 0x22e   : > { %v887_v52 = vpop.f32.mrf.mxu2 }
 0x22f   : > { %v888_v57 = vadd.f32 %v887_v52, %v859_v24  ;;  %v9637_v52 = vld [vmem:[%s13113_s3 + $0xcc] sm:$0xf] }
 0x230   : > { %1603 = vmatpush.bf16.msrb.mxu3 %v10466_v3 }
 0x231   : > { %v896_v59 = vpack.c.bf16 %v888_v57, %v886_v56 }
 0x233   : > { %6852 = vmatmul.msk.bf16.gmra.mxu3 %vm1052_vm7, %v896_v59  ;;  %1233 = vmatmul.bf16.gmra.mxu2 %v1192_v58  ;;  %v9625_v59 = vld [vmem:[%s13113_s3 + $0x84] sm:$0xf] }
 0x236   : > { %v890_v61 = vpop.f32.mrf.mxu2 }
 0x237   : > { %v891_v2 = vadd.f32 %v890_v61, %v862_v28  ;;  %v6873_v61 = vld [vmem:[%s13113_s3 + $0x88] sm:$0xf0] }
 0x239   : > { %v897_v7 = vpack.c.bf16 %v891_v2, %v891_v2  ;;  %v6876_v2 = vor.u32 %v9625_v59, %v6873_v61 }
 0x23e   : > { %v892_v5 = vpop.f32.mrf.mxu2 }
 0x243   : > { %6853 = vmatmul.msk.bf16.gmra.mxu3 %vm1052_vm7, %v897_v7  ;;  %6948 = vmatmul.msk.bf16.vlgmr.msrb.gmra.mxu2 %vm821_vm6, %v6931_v6 }
 0x244   : > { %1982 = vmatpush.bf16.msrb.mxu2 %v10417_v30 }
 0x246   : > { %v996_v9 = vpop.f32.mrf.mxu2 }
 0x247   : > { %v997_v12 = vadd.f32 %v996_v9, %v968_v36 }
 0x248   : > { %1983 = vmatpush.bf16.msrb.mxu2 %v10424_v35 }
 0x24c   : > { %1984 = vmatpush.bf16.msrb.mxu2 %v10429_v40 }
 0x24e   : > { %v998_v11 = vpop.f32.mrf.mxu2 }
 0x24f   : > { %v999_v13 = vadd.f32 %v998_v11, %v970_v46 }
 0x250   : > { %1985 = vmatpush.bf16.msrb.mxu2 %v10436_v45 }
 0x251   : > { %v1015_v14 = vpack.c.bf16 %v999_v13, %v997_v12 }
 0x253   : > { %6830 = vmatmul.msk.bf16.vlgmr.msrb.gmra.mxu1 %vm1052_vm7, %v1015_v14  ;;  %6949 = vmatmul.msk.bf16.gmra.mxu2 %vm821_vm6, %v6939_v41  ;;  %v1185_v14 = vunpack.c.h.b16 %v10730_v48 }
 0x254   : > { %1986 = vmatpush.bf16.msrb.mxu2 %v10441_v50  ;;  %1512 = vmatpush.bf16.msrb.mxu1 %v9642_v23 }
 0x255   : > { %v1193_v18 = vpack.c.b16 %v1185_v14, %v1185_v14 }
 0x256   : > { %v1001_v17 = vpop.f32.mrf.mxu2 }
 0x257   : > { %v1002_v20 = vadd.f32 %v1001_v17, %v973_v53  ;;  %v6944_v53 = vld [vmem:[%s13113_s3 + $0xd0] sm:$0xf0] }
 0x258   : > { %1987 = vmatpush.bf16.msrb.mxu2 %v10448_v55  ;;  %1513 = vmatpush.bf16.msrb.mxu1 %v9641_v25  ;;  %v6947_v56 = vor.u32 %v9637_v52, %v6944_v53 }
 0x25c   : > { %1988 = vmatpush.bf16.msrb.mxu2 %v10453_v60  ;;  %1514 = vmatpush.bf16.msrb.mxu1 %v9640_v26 }
 0x25e   : > { %v1003_v19 = vpop.f32.mrf.mxu2 }
 0x25f   : > { %v1004_v21 = vadd.f32 %v1003_v19, %v975_v63  ;;  %v1378_v63 = vunpack.c.h.b16 %v10512_v15  ;;  %v9627_v15 = vld [vmem:[%s13113_s3 + $0x94] sm:$0xf]  ;;  %v1412_v19 = vpop.f32.mrf.mxu0 }
 0x260   : > { %1989 = vmatpush.bf16.msrb.mxu2 %v10466_v3  ;;  %1515 = vmatpush.bf16.msrb.mxu1 %v9639_v31 }
 0x261   : > { %v1016_v22 = vpack.c.bf16 %v1004_v21, %v1002_v20  ;;  %v1386_v5 = vpack.c.b16 %v1378_v63, %v1378_v63 }
 0x263   : > { %6831 = vmatmul.msk.bf16.gmra.mxu1 %vm1052_vm7, %v1016_v22  ;;  %6950 = vmatmul.msk.bf16.gmra.mxu2 %vm821_vm6, %v6947_v56 }
 0x266   : > { %v1006_v24 = vpop.f32.mrf.mxu2 }
 0x267   : > { %v1007_v28 = vadd.f32 %v1006_v24, %v978_v8  ;;  %v6881_v8 = vld [vmem:[%s13113_s3 + $0x98] sm:$0xf0]  ;;  %v1414_v22 = vpop.f32.mrf.mxu0 }
 0x268   : > { %v6884_v11 = vor.u32 %v9627_v15, %v6881_v8 }
 0x26e   : > { %v1008_v27 = vpop.f32.mrf.mxu2 }
 0x26f   : > { %v1009_v29 = vadd.f32 %v1008_v27, %v980_v10  ;;  %v1417_v43 = vpop.f32.mrf.mxu0 }
 0x271   : > { %v1017_v32 = vpack.c.bf16 %v1009_v29, %v1007_v28 }
 0x273   : > { %6832 = vmatmul.msk.bf16.gmra.mxu1 %vm1052_vm7, %v1017_v32  ;;  %6951 = vmatmul.msk.bf16.gmra.mxu2 %vm821_vm6, %v1386_v5 }
 0x276   : > { %v1011_v33 = vpop.f32.mrf.mxu2 }
 0x277   : > { %v1012_v34 = vadd.f32 %v1011_v33, %v983_v16  ;;  %v1419_v53 = vpop.f32.mrf.mxu0 }
 0x279   : > { %v1018_v37 = vpack.c.bf16 %v1012_v34, %v1012_v34 }
 0x27e   : > { %v1013_v36 = vpop.f32.mrf.mxu2 }
 0x27f   : > { %v1422_v5 = vpop.f32.mrf.mxu0 }
 0x283   : > { %6833 = vmatmul.msk.bf16.gmra.mxu1 %vm1052_vm7, %v1018_v37 }
 0x286   : > { %v10774_v42 = vpop.f32.mrf.mxu2 }
 0x28e   : > { %v10783_v46 = vpop.f32.mrf.mxu2 }
 0x293   : > { %6885 = vmatmul.msk.bf16.vlgmr.msra.gmra.mxu1 %vm821_vm6, %v6868_v51 }
 0x294   : > { %1789 = vmatpush.bf16.msra.mxu1 %v10417_v30 }
 0x296   : > { %v1138_v57 = vpop.f32.mrf.mxu3  ;;  %v10793_v58 = vpop.f32.mrf.mxu2 }
 0x298   : > { %1790 = vmatpush.bf16.msra.mxu1 %v10424_v35 }
 0x29c   : > { %1791 = vmatpush.bf16.msra.mxu1 %v10429_v40 }
 0x29e   : > { %v10805_v0 = vpop.f32.mrf.mxu3  ;;  %v10807_v1 = vpop.f32.mrf.mxu2 }
 0x2a0   : > { %1792 = vmatpush.bf16.msra.mxu1 %v10436_v45 }
 0x2a3   : > { %6886 = vmatmul.msk.bf16.gmra.mxu1 %vm821_vm6, %v6876_v2 }
 0x2a4   : > { %1793 = vmatpush.bf16.msra.mxu1 %v10441_v50 }
 0x2a6   : > { %v1143_v6 = vpop.f32.mrf.mxu3  ;;  %v10812_v7 = vpop.f32.mrf.mxu2 }
 0x2a8   : > { %1794 = vmatpush.bf16.msra.mxu1 %v10448_v55 }
 0x2ac   : > { %1795 = vmatpush.bf16.msra.mxu1 %v10453_v60 }
 0x2ae   : > { %v10823_v9 = vpop.f32.mrf.mxu3  ;;  %v10825_v10 = vpop.f32.mrf.mxu2 }
 0x2b0   : > { %1796 = vmatpush.bf16.msra.mxu1 %v10466_v3 }
 0x2b3   : > { %6887 = vmatmul.msk.bf16.gmra.mxu1 %vm821_vm6, %v6884_v11 }
 0x2b6   : > { %v1148_v12 = vpop.f32.mrf.mxu3  ;;  %v10829_v13 = vpop.f32.mrf.mxu2 }
 0x2be   : > { %v10832_v16 = vpop.f32.mrf.mxu3  ;;  %v1236_v17 = vpop.f32.mrf.mxu2 }
 0x2c3   : > { %6888 = vmatmul.msk.bf16.gmra.mxu1 %vm821_vm6, %v1193_v18 }
 0x2c6   : > { %v1153_v20 = vpop.f32.mrf.mxu3  ;;  %v1440_v21 = vpop.f32.mrf.mxu2 }
 0x2c7   : > { %v1441_v23 = vadd.f32 %v1440_v21, %v1412_v19 }
 0x2ce   : > { %v1155_v24 = vpop.f32.mrf.mxu3  ;;  %v1442_v25 = vpop.f32.mrf.mxu2 }
 0x2cf   : > { %v1443_v26 = vadd.f32 %v1442_v25, %v1414_v22 }
 0x2d0   : > { %v1074_v27 = vpop.f32.mrf.mxu1 }
 0x2d1   : > { %v1459_v28 = vpack.c.bf16 %v1443_v26, %v1441_v23  ;;  %v10835_v29 = vadd.f32 %v1138_v57, %v1074_v27 }
 0x2d3   : > { %6976 = vmatmul.msk.bf16.vlgmr.msrb.gmra.mxu1 %vm1052_vm7, %v1459_v28 }
 0x2d4   : > { %2013 = vmatpush.bf16.msrb.mxu1 %v10515_v47 }
 0x2d6   : > { %v1445_v44 = vpop.f32.mrf.mxu2 }
 0x2d7   : > { %v1446_v52 = vadd.f32 %v1445_v44, %v1417_v43 }
 0x2d8   : > { %2014 = vmatpush.bf16.msrb.mxu1 %v10520_v49  ;;  %v10840_v48 = vpop.f32.mrf.mxu1 }
 0x2dc   : > { %2015 = vmatpush.bf16.msrb.mxu1 %v10525_v54 }
 0x2de   : > { %v1447_v56 = vpop.f32.mrf.mxu2 }
 0x2df   : > { %v1448_v57 = vadd.f32 %v1447_v56, %v1419_v53  ;;  %v6989_v56 = vld [vmem:[%s13113_s3 + $0xe0] sm:$0xf] }
 0x2e0   : > { %2016 = vmatpush.bf16.msrb.mxu1 %v10536_v62  ;;  %v1079_v31 = vpop.f32.mrf.mxu1 }
 0x2e1   : > { %v10844_v32 = vadd.f32 %v1143_v6, %v1079_v31  ;;  %v1460_v59 = vpack.c.bf16 %v1448_v57, %v1446_v52  ;;  %v7007_v52 = vld [vmem:[%s13113_s3 + $0x108] sm:$0xf0] }
 0x2e3   : > { %6977 = vmatmul.msk.bf16.gmra.mxu1 %vm1052_vm7, %v1460_v59  ;;  %v6986_v59 = vld [vmem:[%s13113_s3 + $0x110] sm:$0x11] }
 0x2e4   : > { %2017 = vmatpush.bf16.msrb.mxu1 %v10547_v4 }
 0x2e6   : > { %v1450_v6 = vpop.f32.mrf.mxu2 }
 0x2e7   : > { %v1451_v11 = vadd.f32 %v1450_v6, %v1422_v5  ;;  %v9646_v5 = vld [vmem:[%s13113_s3 + $0xf4] sm:$0xf0] }
 0x2e8   : > { %v10847_v33 = vpop.f32.mrf.mxu1 }
 0x2ee   : > { %v1452_v14 = vpop.f32.mrf.mxu2 }
 0x2f0   : > { %v1084_v34 = vpop.f32.mrf.mxu1 }
 0x2f1   : > { %v10849_v36 = vadd.f32 %v1148_v12, %v1084_v34  ;;  %v1424_v12 = vpop.f32.mrf.mxu0  ;;  %v9645_v34 = vld [vmem:[%s13113_s3 + $0xf4] sm:$0xf] }
 0x2f2   : > { %v1453_v17 = vadd.f32 %v1452_v14, %v1424_v12  ;;  %v7005_v12 = vld [vmem:[%s13113_s3 + $0x100] sm:$0xf]  ;;  %v9648_v14 = vld [vmem:[%s13113_s3 + $0x104] sm:$0xf0] }
 0x2f4   : > { %v1461_v18 = vpack.c.bf16 %v1453_v17, %v1451_v11  ;;  %v9670_v11 = vld [vmem:[%s13114_s4 + $0xc8] sm:$0xff]  ;;  %v9669_v17 = vld [vmem:[%s13114_s4 + $0xc0] sm:$0xff] }
 0x2f6   : > { %6978 = vmatmul.msk.bf16.gmra.mxu1 %vm1052_vm7, %v1461_v18  ;;  %v1455_v22 = vpop.f32.mrf.mxu2  ;;  %v7006_v18 = vor.u32 %v9648_v14, %v7005_v12 }
 0x2f8   : > { %v10851_v37 = vpop.f32.mrf.mxu1 }
 0x2f9   : > { %v1427_v21 = vpop.f32.mrf.mxu0 }
 0x2fa   : > { %v1456_v23 = vadd.f32 %v1455_v22, %v1427_v21  ;;  %v1570_v21 = vunpack.c.l.b16 %v6986_v59 }
 0x2fc   : > { %v1462_v25 = vpack.c.bf16 %v1456_v23, %v1456_v23  ;;  %v1578_v22 = vpack.c.b16 %v1570_v21, %v1570_v21 }
 0x2fe   : > { %v1457_v27 = vpop.f32.mrf.mxu2 }
 0x300   : > { %v1089_v38 = vpop.f32.mrf.mxu1 }
 0x301   : > { %v10853_v39 = vadd.f32 %v1153_v20, %v1089_v38  ;;  %v1429_v26 = vpop.f32.mrf.mxu0  ;;  %v6999_v38 = vld [vmem:[%s13113_s3 + $0xf8] sm:$0xf0] }
 0x306   : > { %6979 = vmatmul.msk.bf16.gmra.mxu1 %vm1052_vm7, %v1462_v25  ;;  %v9656_v25 = vld [vmem:[%s13113_s3 + $0x12c] sm:$0xf0] }
 0x308   : > { %v1091_v41 = vpop.f32.mrf.mxu1 }
 0x309   : > { %v7002_v41 = vor.u32 %v9645_v34, %v6999_v38 }
 0x30b   : > { %7012 = vmatmul.msk.bf16.gmra.mxu0 %vm821_vm6, %v7002_v41  ;;  %v7068_v41 = vld [vmem:[%s13113_s3 + $0x138] sm:$0xf] }
 0x310   : > { %v1247_v51 = vpop.f32.mrf.mxu1 }
 0x311   : > { %v1248_v63 = vadd.f32 %v1247_v51, %v10774_v42 }
 0x318   : > { %v1249_v61 = vpop.f32.mrf.mxu1 }
 0x319   : > { %v1250_v2 = vadd.f32 %v1249_v61, %v10783_v46  ;;  %v1571_v61 = vunpack.c.h.b16 %v6986_v59 }
 0x31b   : > { %v1266_v15 = vpack.c.bf16 %v1250_v2, %v1248_v63  ;;  %v1579_v63 = vpack.c.b16 %v1571_v61, %v1571_v61  ;;  %v6997_v2 = vld [vmem:[%s13113_s3 + $0xf0] sm:$0xf] }
 0x31c   : > { %v6998_v6 = vor.u32 %v9646_v5, %v6997_v2 }
 0x31d   : > { %6913 = vmatmul.msk.bf16.vlgmr.msra.gmra.mxu3 %vm1052_vm7, %v1266_v15  ;;  %v9672_v15 = vld [vmem:[%s13114_s4 + $0xd8] sm:$0xff] }
 0x31e   : > { %1820 = vmatpush.bf16.msra.mxu3 %v10515_v47 }
 0x320   : > { %v1252_v8 = vpop.f32.mrf.mxu1 }
 0x321   : > { %v1253_v46 = vadd.f32 %v1252_v8, %v10793_v58  ;;  %v9671_v8 = vld [vmem:[%s13114_s4 + $0xd0] sm:$0xff] }
 0x322   : > { %1821 = vmatpush.bf16.msra.mxu3 %v10520_v49 }
 0x326   : > { %1822 = vmatpush.bf16.msra.mxu3 %v10525_v54 }
 0x328   : > { %v1254_v42 = vpop.f32.mrf.mxu1 }
 0x329   : > { %v1255_v19 = vadd.f32 %v1254_v42, %v10807_v1  ;;  %v7052_v42 = vld [vmem:[%s13113_s3 + $0x118] sm:$0xf] }
 0x32a   : > { %1823 = vmatpush.bf16.msra.mxu3 %v10536_v62 }
 0x32b   : > { %v1267_v20 = vpack.c.bf16 %v1255_v19, %v1253_v46  ;;  %v9654_v46 = vld [vmem:[%s13113_s3 + $0x11c] sm:$0xf0] }
 0x32d   : > { %6914 = vmatmul.msk.bf16.gmra.mxu3 %vm1052_vm7, %v1267_v20  ;;  %v7053_v20 = vor.u32 %v9654_v46, %v7052_v42 }
 0x32e   : > { %1824 = vmatpush.bf16.msra.mxu3 %v10547_v4 }
 0x32f   : > { %1797 = vmatmul.bf16.vlgmr.msra.gmra.mxu1 %v7053_v20 }
 0x330   : > { %v1257_v24 = vpop.f32.mrf.mxu1 }
 0x331   : > { %v1258_v58 = vadd.f32 %v1257_v24, %v10812_v7  ;;  %v7060_v24 = vld [vmem:[%s13113_s3 + $0x128] sm:$0xf] }
 0x332   : > { %v7061_v26 = vor.u32 %v9656_v25, %v7060_v24 }
 0x338   : > { %v1259_v28 = vpop.f32.mrf.mxu1 }
 0x339   : > { %v1260_v1 = vadd.f32 %v1259_v28, %v10825_v10  ;;  %v9647_v10 = vld [vmem:[%s13113_s3 + $0x104] sm:$0xf]  ;;  %v9653_v28 = vld [vmem:[%s13113_s3 + $0x11c] sm:$0xf] }
 0x33a   : > { %v7010_v53 = vor.u32 %v9647_v10, %v7007_v52 }
 0x33b   : > { %v1268_v31 = vpack.c.bf16 %v1260_v1, %v1258_v58  ;;  %v7054_v58 = vld [vmem:[%s13113_s3 + $0x120] sm:$0xf0] }
 0x33c   : > { %7013 = vmatmul.msk.bf16.gmra.mxu0 %vm821_vm6, %v7010_v53  ;;  %v7057_v1 = vor.u32 %v9653_v28, %v7054_v58 }
 0x33d   : > { %6915 = vmatmul.msk.bf16.gmra.mxu3 %vm1052_vm7, %v1268_v31 }
 0x33f   : > { %1802 = vmatmul.bf16.gmra.mxu1 %v7061_v26 }
 0x340   : > { %v1262_v43 = vpop.f32.mrf.mxu1 }
 0x341   : > { %v1263_v44 = vadd.f32 %v1262_v43, %v10829_v13  ;;  %v9644_v13 = vld [vmem:[%s13113_s3 + $0xe4] sm:$0xf0]  ;;  %v9658_v43 = vld [vmem:[%s13113_s3 + $0x13c] sm:$0xf0] }
 0x342   : > { %v6990_v57 = vor.u32 %v9644_v13, %v6989_v56 }
 0x343   : > { %v1269_v51 = vpack.c.bf16 %v1263_v44, %v1263_v44  ;;  %v7069_v44 = vor.u32 %v9658_v43, %v7068_v41 }
 0x348   : > { %v1264_v7 = vpop.f32.mrf.mxu1 }
 0x34c   : > { %7014 = vmatmul.msk.bf16.gmra.mxu0 %vm821_vm6, %v1579_v63 }
 0x34d   : > { %6916 = vmatmul.msk.bf16.gmra.mxu3 %vm1052_vm7, %v1269_v51 }
 0x34f   : > { %1807 = vmatmul.bf16.gmra.mxu1 %v7069_v44 }
 0x350   : > { %v1517_v19 = vpop.f32.mrf.mxu1 }
 0x358   : > { %v10928_v23 = vpop.f32.mrf.mxu1 }
 0x35d   : > { %1604 = vmatmul.bf16.vlgmr.msrb.gmra.mxu3 %v6990_v57  ;;  %v7070_v57 = vld [vmem:[%s13113_s3 + $0x140] sm:$0xf0] }
 0x35e   : > { %2091 = vmatpush.bf16.msrb.mxu3 %v9672_v15 }
 0x360   : > { %v1522_v27 = vpop.f32.mrf.mxu1 }
 0x362   : > { %2092 = vmatpush.bf16.msrb.mxu3 %v9671_v8 }
 0x366   : > { %2093 = vmatpush.bf16.msrb.mxu3 %v9670_v11 }
 0x368   : > { %v10942_v31 = vpop.f32.mrf.mxu1 }
 0x36a   : > { %2094 = vmatpush.bf16.msrb.mxu3 %v9669_v17 }
 0x36d   : > { %1609 = vmatmul.bf16.gmra.mxu3 %v6998_v6 }
 0x373   : > { %v1527_v51 = vpop.f32.mrf.mxu1 }
 0x37d   : > { %1614 = vmatmul.bf16.gmra.mxu3 %v7006_v18 }
 0x38d   : > { %1619 = vmatmul.bf16.gmra.mxu3 %v1578_v22 }
 0x39d   : > { %7074 = vmatmul.msk.bf16.vlgmr.msra.gmra.mxu3 %vm821_vm6, %v7057_v1 }
 0x39e   : > { %2368 = vmatpush.bf16.msra.mxu3 %v10417_v30  ;;  %v9655_v30 = vld [vmem:[%s13113_s3 + $0x12c] sm:$0xf] }
 0x3a0   : > { %v1324_v34 = vpop.f32.mrf.mxu3 }
 0x3a1   : > { %v1343_v38 = vadd.f32 %v1324_v34, %v10835_v29  ;;  %v7062_v29 = vld [vmem:[%s13113_s3 + $0x130] sm:$0xf0] }
 0x3a2   : > { %2369 = vmatpush.bf16.msra.mxu3 %v10424_v35  ;;  %v7065_v52 = vor.u32 %v9655_v30, %v7062_v29  ;;  %v10966_v35 = vpop.f32.mrf.mxu1  ;;  %v9663_v29 = vld [vmem:[%s13113_s3 + $0x154] sm:$0xf] }
 0x3a3   : > { %v10954_v7 = vadd.f32 %v1517_v19, %v1343_v38 }
 0x3a6   : > { %2370 = vmatpush.bf16.msra.mxu3 %v10429_v40 }
 0x3a8   : > { %v10963_v10 = vpop.f32.mrf.mxu3 }
 0x3aa   : > { %2371 = vmatpush.bf16.msra.mxu3 %v10436_v45  ;;  %v1532_v13 = vpop.f32.mrf.mxu1  ;;  %v9657_v45 = vld [vmem:[%s13113_s3 + $0x13c] sm:$0xf] }
 0x3ab   : > { %v7073_v61 = vor.u32 %v9657_v45, %v7070_v57 }
 0x3ad   : > { %7075 = vmatmul.msk.bf16.gmra.mxu3 %vm821_vm6, %v7065_v52  ;;  %v7117_v52 = vld [vmem:[%s13113_s3 + $0x158] sm:$0xf0] }
 0x3ae   : > { %2372 = vmatpush.bf16.msra.mxu3 %v10441_v50  ;;  %v7049_v50 = vld [vmem:[%s13113_s3 + $0x148] sm:$0x11] }
 0x3af   : > { %v1763_v59 = vunpack.c.l.b16 %v7049_v50  ;;  %v1764_v8 = vunpack.c.h.b16 %v7049_v50 }
 0x3b0   : > { %v1329_v40 = vpop.f32.mrf.mxu3 }
 0x3b1   : > { %v1345_v53 = vadd.f32 %v1329_v40, %v10844_v32  ;;  %v1772_v12 = vpack.c.b16 %v1764_v8, %v1764_v8  ;;  %v7120_v40 = vor.u32 %v9663_v29, %v7117_v52 }
 0x3b2   : > { %2373 = vmatpush.bf16.msra.mxu3 %v10448_v55  ;;  %v1633_v55 = vpop.f32.mrf.mxu0  ;;  %v1534_v63 = vpop.f32.mrf.mxu1 }
 0x3b3   : > { %v10972_v56 = vadd.f32 %v1522_v27, %v1345_v53 }
 0x3b6   : > { %2374 = vmatpush.bf16.msra.mxu3 %v10453_v60  ;;  %v1771_v60 = vpack.c.b16 %v1763_v59, %v1763_v59  ;;  %v9665_v59 = vld [vmem:[%s13113_s3 + $0x164] sm:$0xf] }
 0x3b8   : > { %v10984_v32 = vpop.f32.mrf.mxu3  ;;  %1812 = vmatmul.bf16.gmra.mxu1 %v1771_v60 }
 0x3ba   : > { %2375 = vmatpush.bf16.msra.mxu3 %v10466_v3  ;;  %v1635_v6 = vpop.f32.mrf.mxu0  ;;  %v1798_v41 = vpop.f32.mrf.mxu1 }
 0x3bd   : > { %7076 = vmatmul.msk.bf16.gmra.mxu3 %vm821_vm6, %v7073_v61  ;;  %v7125_v61 = vld [vmem:[%s13113_s3 + $0x168] sm:$0xf0] }
 0x3be   : > { %v7128_v60 = vor.u32 %v9665_v59, %v7125_v61 }
 0x3c0   : > { %v1334_v2 = vpop.f32.mrf.mxu3 }
 0x3c1   : > { %v1347_v5 = vadd.f32 %v1334_v2, %v10849_v36 }
 0x3c2   : > { %v1638_v14 = vpop.f32.mrf.mxu0  ;;  %v1800_v30 = vpop.f32.mrf.mxu1 }
 0x3c3   : > { %v10989_v15 = vadd.f32 %v1527_v51, %v1347_v5  ;;  %v7115_v5 = vld [vmem:[%s13113_s3 + $0x150] sm:$0xf] }
 0x3c8   : > { %v10991_v11 = vpop.f32.mrf.mxu3  ;;  %7137 = vmatmul.msk.bf16.vlgmr.msrb.gmra.mxu1 %vm821_vm6, %v7120_v40 }
 0x3ca   : > { %v1640_v42 = vpop.f32.mrf.mxu0  ;;  %v1803_v45 = vpop.f32.mrf.mxu1 }
 0x3cd   : > { %7077 = vmatmul.msk.bf16.gmra.mxu3 %vm821_vm6, %v1772_v12 }
 0x3d0   : > { %v1339_v17 = vpop.f32.mrf.mxu3 }
 0x3d1   : > { %v1349_v3 = vadd.f32 %v1339_v17, %v10853_v39 }
 0x3d2   : > { %v1643_v19 = vpop.f32.mrf.mxu0  ;;  %v1805_v63 = vpop.f32.mrf.mxu1 }
 0x3d3   : > { %v10995_v18 = vadd.f32 %v1532_v13, %v1349_v3 }
 0x3d8   : > { %v1341_v46 = vpop.f32.mrf.mxu3  ;;  %7138 = vmatmul.msk.bf16.gmra.mxu1 %vm821_vm6, %v7128_v60 }
 0x3d9   : > { %v7133_v46 = vld [vmem:[%s13113_s3 + $0x178] sm:$0xf0] }
 0x3da   : > { %v1645_v21 = vpop.f32.mrf.mxu0  ;;  %v1808_v12 = vpop.f32.mrf.mxu1 }
 0x3e0   : > { %v1605_v20 = vpop.f32.mrf.mxu3 }
 0x3e1   : > { %v1634_v22 = vadd.f32 %v1633_v55, %v1605_v20 }
 0x3e2   : > { %v1648_v27 = vpop.f32.mrf.mxu0 }
 0x3e8   : > { %v1607_v36 = vpop.f32.mrf.mxu3 }
 0x3e9   : > { %v1636_v24 = vadd.f32 %v1635_v6, %v1607_v36  ;;  %v9664_v6 = vld [vmem:[%s13113_s3 + $0x154] sm:$0xf0] }
 0x3ea   : > { %v1650_v28 = vpop.f32.mrf.mxu0  ;;  %v7116_v3 = vor.u32 %v9664_v6, %v7115_v5  ;;  %v7188_v5 = vld [vmem:[%s13113_s3 + $0x1a0] sm:$0xf0]  ;;  %v7186_v6 = vld [vmem:[%s13113_s3 + $0x198] sm:$0xf] }
 0x3eb   : > { %v1652_v25 = vpack.c.bf16 %v1636_v24, %v1634_v22  ;;  %v7123_v22 = vld [vmem:[%s13113_s3 + $0x160] sm:$0xf]  ;;  %v9666_v24 = vld [vmem:[%s13113_s3 + $0x164] sm:$0xf0] }
 0x3ed   : > { %7039 = vmatmul.msk.bf16.vlgmr.msra.gmra.mxu2 %vm1052_vm7, %v1652_v25 }
 0x3ee   : > { %2206 = vmatpush.bf16.msra.mxu2 %v10515_v47 }
 0x3f0   : > { %v1610_v26 = vpop.f32.mrf.mxu3 }
 0x3f1   : > { %v1639_v58 = vadd.f32 %v1638_v14, %v1610_v26 }
 0x3f2   : > { %2207 = vmatpush.bf16.msra.mxu2 %v10520_v49 }
 0x3f6   : > { %2208 = vmatpush.bf16.msra.mxu2 %v10525_v54 }
 0x3f8   : > { %v1612_v39 = vpop.f32.mrf.mxu3 }
 0x3f9   : > { %v1641_v1 = vadd.f32 %v1640_v42, %v1612_v39  ;;  %v9667_v42 = vld [vmem:[%s13113_s3 + $0x174] sm:$0xf]  ;;  %v7124_v39 = vor.u32 %v9666_v24, %v7123_v22 }
 0x3fa   : > { %2209 = vmatpush.bf16.msra.mxu2 %v10536_v62 }
 0x3fb   : > { %v1653_v34 = vpack.c.bf16 %v1641_v1, %v1639_v58 }
 0x3fd   : > { %7040 = vmatmul.msk.bf16.gmra.mxu2 %vm1052_vm7, %v1653_v34 }
 0x3fe   : > { %2210 = vmatpush.bf16.msra.mxu2 %v10547_v4 }
 0x400   : > { %v1615_v38 = vpop.f32.mrf.mxu3 }
 0x401   : > { %v1644_v44 = vadd.f32 %v1643_v19, %v1615_v38  ;;  %v7136_v19 = vor.u32 %v9667_v42, %v7133_v46  ;;  %v9668_v38 = vld [vmem:[%s13113_s3 + $0x174] sm:$0xf0]  ;;  %v9677_v42 = vld [vmem:[%s13113_s3 + $0x1ac] sm:$0xf]  ;;  %v7196_v46 = vld [vmem:[%s13113_s3 + $0x1b0] sm:$0xf0] }
 0x403   : > { %7139 = vmatmul.msk.bf16.gmra.mxu1 %vm821_vm6, %v7136_v19  ;;  %v7194_v19 = vld [vmem:[%s13113_s3 + $0x1a8] sm:$0xf] }
 0x408   : > { %v1617_v43 = vpop.f32.mrf.mxu3 }
 0x409   : > { %v1646_v51 = vadd.f32 %v1645_v21, %v1617_v43  ;;  %v1810_v21 = vpop.f32.mrf.mxu1 }
 0x40b   : > { %v1654_v53 = vpack.c.bf16 %v1646_v51, %v1644_v44 }
 0x40d   : > { %7041 = vmatmul.msk.bf16.gmra.mxu2 %vm1052_vm7, %v1654_v53 }
 0x410   : > { %v1620_v13 = vpop.f32.mrf.mxu3 }
 0x411   : > { %v1649_v57 = vadd.f32 %v1648_v27, %v1620_v13 }
 0x413   : > { %v1655_v55 = vpack.c.bf16 %v1649_v57, %v1649_v57  ;;  %v7180_v57 = vld [vmem:[%s13113_s3 + $0x190] sm:$0xf0] }
 0x418   : > { %v1622_v50 = vpop.f32.mrf.mxu3 }
 0x419   : > { %v7178_v50 = vld [vmem:[%s13113_s3 + $0x188] sm:$0xf] }
 0x41d   : > { %7042 = vmatmul.msk.bf16.gmra.mxu2 %vm1052_vm7, %v1655_v55  ;;  %v9674_v55 = vld [vmem:[%s13113_s3 + $0x18c] sm:$0xf0] }
 0x41e   : > { %v7179_v61 = vor.u32 %v9674_v55, %v7178_v50 }
 0x420   : > { %v1826_v2 = vpop.f32.mrf.mxu3 }
 0x421   : > { %v1827_v8 = vadd.f32 %v1826_v2, %v1798_v41  ;;  %v9675_v2 = vld [vmem:[%s13113_s3 + $0x19c] sm:$0xf] }
 0x428   : > { %v1828_v14 = vpop.f32.mrf.mxu3 }
 0x429   : > { %v1829_v17 = vadd.f32 %v1828_v14, %v1800_v30  ;;  %v7191_v14 = vor.u32 %v9675_v2, %v7188_v5  ;;  %v9682_v5 = vld [vmem:[%s13114_s4 + $0xf8] sm:$0xff] }
 0x42a   : > { %2284 = vmatpush.bf16.msra.mxu1 %v9682_v5 }
 0x42b   : > { %v1845_v20 = vpack.c.bf16 %v1829_v17, %v1827_v8  ;;  %v9676_v8 = vld [vmem:[%s13113_s3 + $0x19c] sm:$0xf0] }
 0x42d   : > { %7102 = vmatmul.msk.bf16.vlgmr.msrb.gmra.mxu0 %vm1052_vm7, %v1845_v20  ;;  %1990 = vmatmul.bf16.vlgmr.msrb.gmra.mxu2 %v7116_v3  ;;  %v9678_v20 = vld [vmem:[%s13113_s3 + $0x1ac] sm:$0xf0] }
 0x42e   : > { %2399 = vmatpush.bf16.msrb.mxu0 %v10515_v47 }
 0x430   : > { %v1831_v36 = vpop.f32.mrf.mxu3 }
 0x431   : > { %v1832_v25 = vadd.f32 %v1831_v36, %v1803_v45  ;;  %v9673_v45 = vld [vmem:[%s13113_s3 + $0x18c] sm:$0xf] }
 0x432   : > { %2400 = vmatpush.bf16.msrb.mxu0 %v10520_v49  ;;  %v7112_v49 = vld [vmem:[%s13113_s3 + $0x180] sm:$0x11]  ;;  %v7183_v59 = vor.u32 %v9673_v45, %v7180_v57 }
 0x433   : > { %v1956_v52 = vunpack.c.l.b16 %v7112_v49 }
 0x435   : > { %v1813_v28 = vpop.f32.mrf.mxu1  ;;  %v1964_v13 = vpack.c.b16 %v1956_v52, %v1956_v52 }
 0x436   : > { %2401 = vmatpush.bf16.msrb.mxu0 %v10525_v54  ;;  %v1957_v54 = vunpack.c.h.b16 %v7112_v49 }
 0x438   : > { %v1833_v26 = vpop.f32.mrf.mxu3  ;;  %v1965_v58 = vpack.c.b16 %v1957_v54, %v1957_v54 }
 0x439   : > { %v1834_v27 = vadd.f32 %v1833_v26, %v1805_v63 }
 0x43a   : > { %2402 = vmatpush.bf16.msrb.mxu0 %v10536_v62  ;;  %7140 = vmatmul.msk.bf16.gmra.mxu1 %vm821_vm6, %v1965_v58  ;;  %v7131_v62 = vld [vmem:[%s13113_s3 + $0x170] sm:$0xf] }
 0x43b   : > { %v1846_v47 = vpack.c.bf16 %v1834_v27, %v1832_v25  ;;  %v7132_v51 = vor.u32 %v9668_v38, %v7131_v62  ;;  %v7175_v27 = vld [vmem:[%s13113_s3 + $0x1b8] sm:$0x11] }
 0x43d   : > { %7103 = vmatmul.msk.bf16.gmra.mxu0 %vm1052_vm7, %v1846_v47  ;;  %1995 = vmatmul.bf16.gmra.mxu2 %v7124_v39  ;;  %v1815_v34 = vpop.f32.mrf.mxu1  ;;  %v2150_v39 = vunpack.c.h.b16 %v7175_v27 }
 0x43e   : > { %2403 = vmatpush.bf16.msrb.mxu0 %v10547_v4 }
 0x43f   : > { %v2158_v49 = vpack.c.b16 %v2150_v39, %v2150_v39 }
 0x440   : > { %v1836_v1 = vpop.f32.mrf.mxu3 }
 0x441   : > { %v1837_v41 = vadd.f32 %v1836_v1, %v1808_v12 }
 0x445   : > { %v2019_v22 = vpop.f32.mrf.mxu1 }
 0x448   : > { %v1838_v43 = vpop.f32.mrf.mxu3 }
 0x449   : > { %v1839_v44 = vadd.f32 %v1838_v43, %v1810_v21  ;;  %v7199_v21 = vor.u32 %v9677_v42, %v7196_v46  ;;  %v9679_v46 = vld [vmem:[%s13114_s4 + $0xe0] sm:$0xff] }
 0x44b   : > { %v1847_v30 = vpack.c.bf16 %v1839_v44, %v1837_v41 }
 0x44d   : > { %7104 = vmatmul.msk.bf16.gmra.mxu0 %vm1052_vm7, %v1847_v30  ;;  %2000 = vmatmul.bf16.gmra.mxu2 %v7132_v51  ;;  %v2021_v26 = vpop.f32.mrf.mxu1 }
 0x450   : > { %v1841_v4 = vpop.f32.mrf.mxu3 }
 0x451   : > { %v1842_v29 = vadd.f32 %v1841_v4, %v1813_v28  ;;  %v2149_v28 = vunpack.c.l.b16 %v7175_v27 }
 0x453   : > { %v1848_v53 = vpack.c.bf16 %v1842_v29, %v1842_v29  ;;  %v2157_v54 = vpack.c.b16 %v2149_v28, %v2149_v28 }
 0x455   : > { %v2024_v58 = vpop.f32.mrf.mxu1 }
 0x458   : > { %v1843_v40 = vpop.f32.mrf.mxu3 }
 0x45d   : > { %7105 = vmatmul.msk.bf16.gmra.mxu0 %vm1052_vm7, %v1848_v53  ;;  %2005 = vmatmul.bf16.gmra.mxu2 %v1964_v13  ;;  %v2026_v62 = vpop.f32.mrf.mxu1 }
 0x46d   : > { %7200 = vmatmul.msk.bf16.vlgmr.msra.gmra.mxu2 %vm821_vm6, %v7183_v59  ;;  %2183 = vmatmul.bf16.vlgmr.msra.gmra.mxu0 %v7179_v61 }
 0x470   : > { %v1710_v60 = vpop.f32.mrf.mxu2 }
 0x471   : > { %v1729_v63 = vadd.f32 %v1710_v60, %v10954_v7  ;;  %v7187_v7 = vor.u32 %v9676_v8, %v7186_v6  ;;  %v9681_v8 = vld [vmem:[%s13114_s4 + $0xf0] sm:$0xff] }
 0x472   : > { %2285 = vmatpush.bf16.msra.mxu1 %v9681_v8 }
 0x478   : > { %v11084_v12 = vpop.f32.mrf.mxu2 }
 0x47d   : > { %7201 = vmatmul.msk.bf16.gmra.mxu2 %vm821_vm6, %v7191_v14  ;;  %2188 = vmatmul.bf16.gmra.mxu0 %v7187_v7  ;;  %v9680_v7 = vld [vmem:[%s13114_s4 + $0xe8] sm:$0xff] }
 0x47e   : > { %2286 = vmatpush.bf16.msra.mxu1 %v9680_v7  ;;  %v7238_v7 = vld [vmem:[%s13113_s3 + $0x1f0] sm:$0x11] }
 0x480   : > { %v1715_v17 = vpop.f32.mrf.mxu2  ;;  %v2029_v43 = vpop.f32.mrf.mxu1 }
 0x481   : > { %v1731_v3 = vadd.f32 %v1715_v17, %v10972_v56  ;;  %v7195_v56 = vor.u32 %v9678_v20, %v7194_v19  ;;  %v9683_v19 = vld [vmem:[%s13113_s3 + $0x1c4] sm:$0xf]  ;;  %v7243_v20 = vld [vmem:[%s13113_s3 + $0x1c8] sm:$0xf0] }
 0x482   : > { %2287 = vmatpush.bf16.msra.mxu1 %v9679_v46 }
 0x488   : > { %v11100_v36 = vpop.f32.mrf.mxu2  ;;  %v2031_v4 = vpop.f32.mrf.mxu1 }
 0x48d   : > { %7202 = vmatmul.msk.bf16.gmra.mxu2 %vm821_vm6, %v7199_v21  ;;  %2193 = vmatmul.bf16.gmra.mxu0 %v7195_v56  ;;  %v7246_v56 = vor.u32 %v9683_v19, %v7243_v20  ;;  %v7257_v19 = vld [vmem:[%s13113_s3 + $0x1e0] sm:$0xf]  ;;  %v9688_v20 = vld [vmem:[%s13113_s3 + $0x1e4] sm:$0xf0] }
 0x490   : > { %v1720_v24 = vpop.f32.mrf.mxu2 }
 0x491   : > { %v1733_v25 = vadd.f32 %v1720_v24, %v10989_v15 }
 0x498   : > { %v11107_v47 = vpop.f32.mrf.mxu2 }
 0x49d   : > { %7203 = vmatmul.msk.bf16.gmra.mxu2 %vm821_vm6, %v2158_v49  ;;  %2198 = vmatmul.bf16.gmra.mxu0 %v2157_v54  ;;  %v9685_v49 = vld [vmem:[%s13113_s3 + $0x1d4] sm:$0xf]  ;;  %v7251_v54 = vld [vmem:[%s13113_s3 + $0x1d8] sm:$0xf0] }
 0x4a0   : > { %v1725_v1 = vpop.f32.mrf.mxu2 }
 0x4a1   : > { %v1735_v34 = vadd.f32 %v1725_v1, %v10995_v18  ;;  %v7254_v1 = vor.u32 %v9685_v49, %v7251_v54  ;;  %v2342_v54 = vunpack.c.l.b16 %v7238_v7 }
 0x4a8   : > { %v1727_v15 = vpop.f32.mrf.mxu2 }
 0x4a9   : > { %v7241_v15 = vld [vmem:[%s13113_s3 + $0x1c0] sm:$0xf] }
 0x4aa   : > { %v1903_v38 = vpop.f32.mrf.mxu0 }
 0x4ab   : > { %v11111_v41 = vadd.f32 %v1903_v38, %v1729_v63  ;;  %v9684_v38 = vld [vmem:[%s13113_s3 + $0x1c4] sm:$0xf0] }
 0x4ad   : > { %7263 = vmatmul.msk.bf16.vlgmr.msrb.gmra.mxu0 %vm821_vm6, %v7246_v56 }
 0x4b0   : > { %v1991_v44 = vpop.f32.mrf.mxu2 }
 0x4b1   : > { %v2020_v29 = vadd.f32 %v2019_v22, %v1991_v44 }
 0x4b2   : > { %v11113_v51 = vpop.f32.mrf.mxu0 }
 0x4b7   : > { %v2034_v45 = vpop.f32.mrf.mxu1 }
 0x4b8   : > { %v1993_v30 = vpop.f32.mrf.mxu2 }
 0x4b9   : > { %v2022_v52 = vadd.f32 %v2021_v26, %v1993_v30 }
 0x4ba   : > { %v1908_v40 = vpop.f32.mrf.mxu0 }
 0x4bb   : > { %v2038_v53 = vpack.c.bf16 %v2022_v52, %v2020_v29  ;;  %v11115_v13 = vadd.f32 %v1908_v40, %v1731_v3  ;;  %v9687_v29 = vld [vmem:[%s13113_s3 + $0x1e4] sm:$0xf]  ;;  %v7259_v52 = vld [vmem:[%s13113_s3 + $0x1e8] sm:$0xf0] }
 0x4bd   : > { %7165 = vmatmul.msk.bf16.vlgmr.msrb.gmra.mxu3 %vm1052_vm7, %v2038_v53  ;;  %7264 = vmatmul.msk.bf16.gmra.mxu0 %vm821_vm6, %v7254_v1  ;;  %v7262_v53 = vor.u32 %v9687_v29, %v7259_v52  ;;  %v9692_v29 = vld [vmem:[%s13114_s4 + $0x118] sm:$0xff] }
 0x4be   : > { %2477 = vmatpush.bf16.msrb.mxu2 %v9692_v29 }
 0x4bf   : > { %v2036_v55 = vpop.f32.mrf.mxu1 }
 0x4c0   : > { %v1996_v18 = vpop.f32.mrf.mxu2  ;;  %v7249_v55 = vld [vmem:[%s13113_s3 + $0x1d0] sm:$0xf] }
 0x4c1   : > { %v2025_v59 = vadd.f32 %v2024_v58, %v1996_v18 }
 0x4c2   : > { %v11118_v57 = vpop.f32.mrf.mxu0 }
 0x4c8   : > { %v1998_v50 = vpop.f32.mrf.mxu2 }
 0x4c9   : > { %v2027_v61 = vadd.f32 %v2026_v62, %v1998_v50 }
 0x4ca   : > { %v1913_v60 = vpop.f32.mrf.mxu0 }
 0x4cb   : > { %v2039_v63 = vpack.c.bf16 %v2027_v61, %v2025_v59  ;;  %v11120_v2 = vadd.f32 %v1913_v60, %v1733_v25  ;;  %v9686_v59 = vld [vmem:[%s13113_s3 + $0x1d4] sm:$0xf0] }
 0x4cc   : > { %v7250_v5 = vor.u32 %v9686_v59, %v7249_v55 }
 0x4cd   : > { %7166 = vmatmul.msk.bf16.gmra.mxu3 %vm1052_vm7, %v2039_v63  ;;  %7265 = vmatmul.msk.bf16.gmra.mxu0 %vm821_vm6, %v7262_v53 }
 0x4d0   : > { %v2001_v6 = vpop.f32.mrf.mxu2 }
 0x4d1   : > { %v2030_v3 = vadd.f32 %v2029_v43, %v2001_v6 }
 0x4d2   : > { %v11129_v14 = vpop.f32.mrf.mxu0 }
 0x4d8   : > { %v2003_v17 = vpop.f32.mrf.mxu2 }
 0x4d9   : > { %v2032_v42 = vadd.f32 %v2031_v4, %v2003_v17  ;;  %v7242_v4 = vor.u32 %v9684_v38, %v7241_v15  ;;  %v2343_v17 = vunpack.c.h.b16 %v7238_v7 }
 0x4da   : > { %v1918_v21 = vpop.f32.mrf.mxu0 }
 0x4db   : > { %v2040_v22 = vpack.c.bf16 %v2032_v42, %v2030_v3  ;;  %v11143_v24 = vadd.f32 %v1918_v21, %v1735_v34  ;;  %v2351_v3 = vpack.c.b16 %v2343_v17, %v2343_v17 }
 0x4dd   : > { %7167 = vmatmul.msk.bf16.gmra.mxu3 %vm1052_vm7, %v2040_v22  ;;  %7266 = vmatmul.msk.bf16.gmra.mxu0 %vm821_vm6, %v2351_v3 }
 0x4e0   : > { %v2006_v25 = vpop.f32.mrf.mxu2 }
 0x4e1   : > { %v2035_v27 = vadd.f32 %v2034_v45, %v2006_v25  ;;  %v7258_v25 = vor.u32 %v9688_v20, %v7257_v19 }
 0x4e2   : > { %v1920_v26 = vpop.f32.mrf.mxu0 }
 0x4e3   : > { %v2041_v28 = vpack.c.bf16 %v2035_v27, %v2035_v27 }
 0x4e8   : > { %v2008_v39 = vpop.f32.mrf.mxu2 }
 0x4ea   : > { %v2184_v58 = vpop.f32.mrf.mxu0 }
 0x4ed   : > { %7168 = vmatmul.msk.bf16.gmra.mxu3 %vm1052_vm7, %v2041_v28 }
 0x4f0   : > { %v2212_v34 = vpop.f32.mrf.mxu2 }
 0x4f1   : > { %v2213_v43 = vadd.f32 %v2212_v34, %v2184_v58  ;;  %v2350_v34 = vpack.c.b16 %v2342_v54, %v2342_v54 }
 0x4f2   : > { %v2186_v62 = vpop.f32.mrf.mxu0 }
 0x4f8   : > { %v2214_v44 = vpop.f32.mrf.mxu2 }
 0x4f9   : > { %v2215_v30 = vadd.f32 %v2214_v44, %v2186_v62 }
 0x4fa   : > { %v2189_v40 = vpop.f32.mrf.mxu0 }
 0x4fb   : > { %v2231_v18 = vpack.c.bf16 %v2215_v30, %v2213_v43 }
 0x4fd   : > { %7228 = vmatmul.msk.bf16.vlgmr.msra.gmra.mxu1 %vm1052_vm7, %v2231_v18  ;;  %2376 = vmatmul.bf16.vlgmr.msra.gmra.mxu3 %v7242_v4 }
 0x500   : > { %v2217_v45 = vpop.f32.mrf.mxu2 }
 0x501   : > { %v2218_v61 = vadd.f32 %v2217_v45, %v2189_v40  ;;  %v9689_v45 = vld [vmem:[%s13114_s4 + $0x100] sm:$0xff] }
 0x502   : > { %v2191_v50 = vpop.f32.mrf.mxu0 }
 0x508   : > { %v2219_v60 = vpop.f32.mrf.mxu2 }
 0x509   : > { %v2220_v63 = vadd.f32 %v2219_v60, %v2191_v50 }
 0x50a   : > { %v2194_v6 = vpop.f32.mrf.mxu0 }
 0x50b   : > { %v2232_v8 = vpack.c.bf16 %v2220_v63, %v2218_v61 }
 0x50d   : > { %7229 = vmatmul.msk.bf16.gmra.mxu1 %vm1052_vm7, %v2232_v8  ;;  %2381 = vmatmul.bf16.gmra.mxu3 %v7250_v5 }
 0x510   : > { %v2222_v42 = vpop.f32.mrf.mxu2 }
 0x511   : > { %v2223_v21 = vadd.f32 %v2222_v42, %v2194_v6 }
 0x512   : > { %v2196_v46 = vpop.f32.mrf.mxu0 }
 0x518   : > { %v2224_v56 = vpop.f32.mrf.mxu2 }
 0x519   : > { %v2225_v22 = vadd.f32 %v2224_v56, %v2196_v46 }
 0x51a   : > { %v2199_v26 = vpop.f32.mrf.mxu0 }
 0x51b   : > { %v2233_v27 = vpack.c.bf16 %v2225_v22, %v2223_v21 }
 0x51d   : > { %7230 = vmatmul.msk.bf16.gmra.mxu1 %vm1052_vm7, %v2233_v27  ;;  %2386 = vmatmul.bf16.gmra.mxu3 %v7258_v25 }
 0x520   : > { %v2227_v39 = vpop.f32.mrf.mxu2 }
 0x521   : > { %v2228_v49 = vadd.f32 %v2227_v39, %v2199_v26 }
 0x522   : > { %v2201_v28 = vpop.f32.mrf.mxu0 }
 0x523   : > { %v2234_v1 = vpack.c.bf16 %v2228_v49, %v2228_v49 }
 0x528   : > { %v2229_v58 = vpop.f32.mrf.mxu2 }
 0x52a   : > { %v2405_v4 = vpop.f32.mrf.mxu0 }
 0x52d   : > { %7231 = vmatmul.msk.bf16.gmra.mxu1 %vm1052_vm7, %v2234_v1  ;;  %2391 = vmatmul.bf16.gmra.mxu3 %v2350_v34 }
 0x532   : > { %v2407_v53 = vpop.f32.mrf.mxu0 }
 0x53a   : > { %v2410_v50 = vpop.f32.mrf.mxu0 }
 0x540   : > { %v2096_v62 = vpop.f32.mrf.mxu3 }
 0x541   : > { %v2115_v15 = vadd.f32 %v2096_v62, %v11111_v41  ;;  %v9691_v41 = vld [vmem:[%s13114_s4 + $0x110] sm:$0xff] }
 0x542   : > { %2478 = vmatpush.bf16.msrb.mxu2 %v9691_v41  ;;  %v2412_v59 = vpop.f32.mrf.mxu0  ;;  %v1141_v41 = vadd.f32 %v10805_v0, %v10840_v48  ;;  %v1146_v0 = vadd.f32 %v10823_v9, %v10847_v33  ;;  %v7459_v9 = vld [vmem:[%s13117_s7 + $0x78] sm:$0xf0] }
 0x544   : > { %v1346_v33 = vadd.f32 %v10984_v32, %v1146_v0  ;;  %v9709_v32 = vld [vmem:[%s13117_s7 + $0x64] sm:$0xf] }
 0x548   : > { %v11189_v38 = vpop.f32.mrf.mxu3 }
 0x54a   : > { %v2415_v5 = vpop.f32.mrf.mxu0 }
 0x550   : > { %v2101_v43 = vpop.f32.mrf.mxu3 }
 0x551   : > { %v2117_v44 = vadd.f32 %v2101_v43, %v11115_v13  ;;  %v9690_v13 = vld [vmem:[%s13114_s4 + $0x108] sm:$0xff] }
 0x552   : > { %2479 = vmatpush.bf16.msrb.mxu2 %v9690_v13  ;;  %v2417_v17 = vpop.f32.mrf.mxu0  ;;  %v1344_v13 = vadd.f32 %v10963_v10, %v1141_v41  ;;  %v7457_v10 = vld [vmem:[%s13117_s7 + $0x70] sm:$0xf] }
 0x556   : > { %2480 = vmatpush.bf16.msrb.mxu2 %v9689_v45  ;;  %v1537_v45 = vadd.f32 %v10928_v23, %v1344_v13  ;;  %v7425_v13 = vld [vmem:[%s13117_s7 + $0x30] sm:$0xf] }
 0x558   : > { %v11192_v30 = vpop.f32.mrf.mxu3 }
 0x55a   : > { %v2420_v56 = vpop.f32.mrf.mxu0 }
 0x560   : > { %v2106_v52 = vpop.f32.mrf.mxu3 }
 0x561   : > { %v2119_v40 = vadd.f32 %v2106_v52, %v11120_v2 }
 0x562   : > { %v2422_v25 = vpop.f32.mrf.mxu0 }
 0x568   : > { %v11204_v18 = vpop.f32.mrf.mxu3 }
 0x570   : > { %v2111_v2 = vpop.f32.mrf.mxu3 }
 0x571   : > { %v2121_v55 = vadd.f32 %v2111_v2, %v11143_v24  ;;  %v1730_v2 = vadd.f32 %v11084_v12, %v1537_v45  ;;  %v9712_v12 = vld [vmem:[%s13117_s7 + $0x74] sm:$0xf0] }
 0x572   : > { %v9704_v45 = vld [vmem:[%s13117_s7 + $0x34] sm:$0xf0] }
 0x578   : > { %v2113_v61 = vpop.f32.mrf.mxu3 }
 0x57a   : > { %v2289_v60 = vpop.f32.mrf.mxu1 }
 0x57b   : > { %v2308_v63 = vadd.f32 %v2289_v60, %v2115_v15  ;;  %v11234_v60 = vld [vmem:[%s13115_s5] ss:$0 sm:$0xff] }
 0x580   : > { %v2377_v6 = vpop.f32.mrf.mxu3 }
 0x581   : > { %v2406_v3 = vadd.f32 %v2405_v4, %v2377_v6 }
 0x582   : > { %v2291_v8 = vpop.f32.mrf.mxu1 }
 0x588   : > { %v2379_v7 = vpop.f32.mrf.mxu3 }
 0x589   : > { %v2408_v42 = vadd.f32 %v2407_v53, %v2379_v7 }
 0x58a   : > { %v2294_v46 = vpop.f32.mrf.mxu1 }
 0x58b   : > { %v2424_v19 = vpack.c.bf16 %v2408_v42, %v2406_v3  ;;  %v11210_v20 = vadd.f32 %v2294_v46, %v2117_v44  ;;  %v7449_v3 = vld [vmem:[%s13117_s7 + $0x60] sm:$0xf]  ;;  %v9710_v42 = vld [vmem:[%s13117_s7 + $0x64] sm:$0xf0] }
 0x58c   : > { %v7450_v46 = vor.u32 %v9710_v42, %v7449_v3  ;;  %v7401_v42 = vld [vmem:[%s13117_s7] sm:$0xf] }
 0x58d   : > { %7291 = vmatmul.msk.bf16.vlgmr.msrb.gmra.mxu2 %vm1052_vm7, %v2424_v19  ;;  %v7451_v19 = vld [vmem:[%s13117_s7 + $0x68] sm:$0xf0] }
 0x590   : > { %v2382_v21 = vpop.f32.mrf.mxu3 }
 0x591   : > { %v2411_v26 = vadd.f32 %v2410_v50, %v2382_v21  ;;  %v1539_v21 = vadd.f32 %v10942_v31, %v1346_v33  ;;  %v9707_v31 = vld [vmem:[%s13117_s7 + $0x54] sm:$0xf]  ;;  %v9700_v33 = vld [vmem:[%s13117_s7 + $0x14] sm:$0xf0] }
 0x592   : > { %v11213_v24 = vpop.f32.mrf.mxu1 }
 0x598   : > { %v2384_v22 = vpop.f32.mrf.mxu3 }
 0x599   : > { %v2413_v27 = vadd.f32 %v2412_v59, %v2384_v22  ;;  %v7454_v22 = vor.u32 %v9709_v32, %v7451_v19 }
 0x59a   : > { %v2299_v39 = vpop.f32.mrf.mxu1 }
 0x59b   : > { %v2425_v28 = vpack.c.bf16 %v2413_v27, %v2411_v26  ;;  %v11215_v49 = vadd.f32 %v2299_v39, %v2119_v40  ;;  %v1732_v26 = vadd.f32 %v11100_v36, %v1539_v21  ;;  %v7441_v27 = vld [vmem:[%s13117_s7 + $0x50] sm:$0xf]  ;;  %v9708_v39 = vld [vmem:[%s13117_s7 + $0x54] sm:$0xf0] }
 0x59d   : > { %7292 = vmatmul.msk.bf16.gmra.mxu2 %vm1052_vm7, %v2425_v28  ;;  %v7442_v28 = vor.u32 %v9708_v39, %v7441_v27  ;;  %v1925_v36 = vadd.f32 %v11118_v57, %v1732_v26  ;;  %v9705_v57 = vld [vmem:[%s13117_s7 + $0x44] sm:$0xf] }
 0x5a0   : > { %v2387_v54 = vpop.f32.mrf.mxu3 }
 0x5a1   : > { %v2416_v34 = vadd.f32 %v2415_v5, %v2387_v54  ;;  %v7443_v54 = vld [vmem:[%s13117_s7 + $0x58] sm:$0xf0] }
 0x5a2   : > { %v11218_v58 = vpop.f32.mrf.mxu1 }
 0x5a8   : > { %v2389_v1 = vpop.f32.mrf.mxu3 }
 0x5a9   : > { %v2418_v62 = vadd.f32 %v2417_v17, %v2389_v1  ;;  %v7446_v1 = vor.u32 %v9707_v31, %v7443_v54 }
 0x5aa   : > { %v2304_v15 = vpop.f32.mrf.mxu1 }
 0x5ab   : > { %v2426_v43 = vpack.c.bf16 %v2418_v62, %v2416_v34  ;;  %v11220_v44 = vadd.f32 %v2304_v15, %v2121_v55  ;;  %v1923_v55 = vadd.f32 %v11113_v51, %v1730_v2  ;;  %v9711_v51 = vld [vmem:[%s13117_s7 + $0x74] sm:$0xf]  ;;  %v2118_v34 = vadd.f32 %v11192_v30, %v1925_v36  ;;  %v7433_v15 = vld [vmem:[%s13117_s7 + $0x40] sm:$0xf]  ;;  %v7435_v30 = vld [vmem:[%s13117_s7 + $0x48] sm:$0xf0] }
 0x5ac   : > { %v2542_v36 = vld [vmem:[#allocation3 + $0x18] sm:$0x1] }
 0x5ad   : > { %7293 = vmatmul.msk.bf16.gmra.mxu2 %vm1052_vm7, %v2426_v43  ;;  %v2116_v59 = vadd.f32 %v11189_v38, %v1923_v55  ;;  %v7458_v38 = vor.u32 %v9712_v12, %v7457_v10  ;;  %v9706_v43 = vld [vmem:[%s13117_s7 + $0x44] sm:$0xf0] }
 0x5af   : > { %v2309_v5 = vadd.f32 %v2291_v8, %v2116_v59  ;;  %v7462_v8 = vor.u32 %v9711_v51, %v7459_v9  ;;  %2852 = vmatpush.bf16.msra.mxu0 %v7458_v38  ;;  %v7409_v9 = vld [vmem:[%s13117_s7 + $0x10] sm:$0xf] }
 0x5b0   : > { %v2392_v4 = vpop.f32.mrf.mxu3 }
 0x5b1   : > { %v2421_v52 = vadd.f32 %v2420_v56, %v2392_v4  ;;  %2866 = vmatpush.bf16.msra.mxu2 %v7462_v8  ;;  %v7434_v4 = vor.u32 %v9706_v43, %v7433_v15  ;;  %v7411_v8 = vld [vmem:[%s13117_s7 + $0x18] sm:$0xf0] }
 0x5b2   : > { %v2306_v29 = vpop.f32.mrf.mxu1 }
 0x5b3   : > { %v2427_v40 = vpack.c.bf16 %v2421_v52, %v2421_v52  ;;  %2853 = vmatpush.bf16.msra.mxu0 %v7450_v46  ;;  %v7438_v29 = vor.u32 %v9705_v57, %v7435_v30  ;;  %v9698_v46 = vld [vmem:[%s13117_s7 + $0x4] sm:$0xf0] }
 0x5b4   : > { %v7402_v32 = vor.u32 %v9698_v46, %v7401_v42 }
 0x5b5   : > { %2867 = vmatpush.bf16.msra.mxu2 %v7454_v22 }
 0x5b7   : > { %2854 = vmatpush.bf16.msra.mxu0 %v7442_v28 }
 0x5b8   : > { %v2394_v53 = vpop.f32.mrf.mxu3 }
 0x5b9   : > { %2868 = vmatpush.bf16.msra.mxu2 %v7446_v1  ;;  %v1151_v53 = vadd.f32 %v10832_v16, %v10851_v37  ;;  %v7427_v16 = vld [vmem:[%s13117_s7 + $0x38] sm:$0xf0] }
 0x5bb   : > { %2855 = vmatpush.bf16.msra.mxu0 %v7434_v4  ;;  %v1348_v37 = vadd.f32 %v10991_v11, %v1151_v53  ;;  %v9701_v11 = vld [vmem:[%s13117_s7 + $0x24] sm:$0xf]  ;;  %v10231_v4 = vmov 0  }
 0x5bc   : > { %v2586_v57 = vsel %vm2539_vm8, 65535, %v10231_v4  ;;  %v7623_v4 = vld [vmem:[%s13117_s7 + $0x1e0] sm:$0xf] }
 0x5bd   : > { %7294 = vmatmul.msk.bf16.gmra.mxu2 %vm1052_vm7, %v2427_v40 }
 0x5be   : > { %2869 = vmatpush.bf16.msra.mxu2 %v7438_v29  ;;  %v7393_v29 = vld [vmem:[%s13117_s7 + $0xf0] sm:$0xf] }
 0x610   : > { %v2482_v50 = vpop.f32.mrf.mxu2 }
 0x611   : > { %v2501_v61 = vadd.f32 %v2482_v50, %v2308_v63  ;;  %v7426_v50 = vor.u32 %v9704_v45, %v7425_v13  ;;  %v9713_v13 = vld [vmem:[%s13116_s6 + $0x8] sm:$0xff]  ;;  %v7385_v45 = vld [vmem:[%s13117_s7 + $0xe0] sm:$0xf] }
 0x613   : > { %v2512_v48 = vadd.f32 %v11234_v60, %v2501_v61  ;;  %2856 = vmatpush.bf16.msra.mxu0 %v7426_v50  ;;  %v9727_v50 = vld [vmem:[%s13117_s7 + $0xe4] sm:$0xf0] }
 0x615   : > { %v2519_v7 = vmax.f32 %v2512_v48, 0.0  ;;  %v7419_v48 = vld [vmem:[%s13117_s7 + $0x28] sm:$0xf0] }
 0x616   : > { %v7422_v12 = vor.u32 %v9701_v11, %v7419_v48  ;;  %v7395_v11 = vld [vmem:[%s13117_s7 + $0xf8] sm:$0xf0]  ;;  %v9726_v48 = vld [vmem:[%s13117_s7 + $0xe4] sm:$0xf] }
 0x618   : > { %v2484_v6 = vpop.f32.mrf.mxu2 }
 0x619   : > { %v2502_v23 = vadd.f32 %v2484_v6, %v2309_v5  ;;  %v7417_v5 = vld [vmem:[%s13117_s7 + $0x20] sm:$0xf]  ;;  %v9702_v6 = vld [vmem:[%s13117_s7 + $0x24] sm:$0xf0] }
 0x61a   : > { %v7418_v0 = vor.u32 %v9702_v6, %v7417_v5  ;;  %v7361_v5 = vld [vmem:[%s13117_s7 + $0xb0] sm:$0xf]  ;;  %v9721_v6 = vld [vmem:[%s13117_s7 + $0xb4] sm:$0xf0] }
 0x61b   : > { %v2513_v63 = vadd.f32 %v11234_v60, %v2502_v23  ;;  %v1541_v23 = vadd.f32 %v10966_v35, %v1348_v37  ;;  %v9699_v35 = vld [vmem:[%s13117_s7 + $0x14] sm:$0xf]  ;;  %v9725_v37 = vld [vmem:[%s13117_s7 + $0xd4] sm:$0xf0] }
 0x61c   : > { %2857 = vmatpush.bf16.msra.mxu0 %v7418_v0  ;;  %v9728_v0 = vld [vmem:[%s13117_s7 + $0xf4] sm:$0xf] }
 0x61d   : > { %v2520_v17 = vmax.f32 %v2513_v63, 0.0  ;;  %v1734_v38 = vadd.f32 %v11107_v47, %v1541_v23  ;;  %v7410_v63 = vor.u32 %v9700_v33, %v7409_v9  ;;  %v7398_v23 = vor.u32 %v9728_v0, %v7395_v11  ;;  %v9719_v9 = vld [vmem:[%s13117_s7 + $0xa4] sm:$0xf0]  ;;  %v9724_v33 = vld [vmem:[%s13117_s7 + $0xd4] sm:$0xf] }
 0x61e   : > { %v7712_v0 = vld [vmem:[%s13117_s7 + $0x268] sm:$0xf0]  ;;  %v7544_v11 = vld [vmem:[%s13117_s7 + $0x170] sm:$0xf] }
 0x61f   : > { %v10108_v56 = vpack.c.bf16 %v2520_v17, %v2519_v7  ;;  %v1927_v47 = vadd.f32 %v11129_v14, %v1734_v38  ;;  %v7414_v7 = vor.u32 %v9699_v35, %v7411_v8  ;;  %v9697_v14 = vld [vmem:[%s13117_s7 + $0x4] sm:$0xf]  ;;  %v7345_v8 = vld [vmem:[%s13117_s7 + $0x90] sm:$0xf] }
 0x620   : > { %v2487_v25 = vpop.f32.mrf.mxu2  ;;  %2858 = vmatpush.bf16.msra.mxu0 %v7410_v63  ;;  %v7379_v63 = vld [vmem:[%s13117_s7 + $0xd8] sm:$0xf0] }
 0x621   : > { %10109 = vst [vmem:[#allocation3] sm:$0xff] %v10108_v56   ;;  %v2503_v62 = vadd.f32 %v2487_v25, %v11210_v20  ;;  %v2311_v20 = vadd.f32 %v11213_v24, %v2118_v34  ;;  %v9703_v24 = vld [vmem:[%s13117_s7 + $0x34] sm:$0xf]  ;;  %v2120_v17 = vadd.f32 %v11204_v18, %v1927_v47  ;;  %v7403_v18 = vld [vmem:[%s13117_s7 + $0x8] sm:$0xf0]  ;;  %v7382_v47 = vor.u32 %v9724_v33, %v7379_v63 }
 0x622   : > { %v7430_v55 = vor.u32 %v9703_v24, %v7427_v16  ;;  %v7406_v19 = vor.u32 %v9697_v14, %v7403_v18  ;;  %v7386_v24 = vor.u32 %v9727_v50, %v7385_v45  ;;  %v7377_v16 = vld [vmem:[%s13117_s7 + $0xd0] sm:$0xf]  ;;  %v9715_v14 = vld [vmem:[%s13117_s7 + $0x84] sm:$0xf0]  ;;  %v7607_v45 = vld [vmem:[%s13117_s7 + $0x1c0] sm:$0xf] }
 0x623   : > { %v2514_v40 = vadd.f32 %v11234_v60, %v2503_v62  ;;  %v9757_v50 = vld [vmem:[%s13117_s7 + $0x1c4] sm:$0xf0] }
 0x624   : > { %2870 = vmatpush.bf16.msra.mxu2 %v7430_v55  ;;  %2859 = vmatpush.bf16.msra.mxu0 %v7402_v32  ;;  %v7369_v55 = vld [vmem:[%s13117_s7 + $0xc0] sm:$0xf] }
 0x625   : > { %v2521_v59 = vmax.f32 %v2514_v40, 0.0  ;;  %v7337_v32 = vld [vmem:[%s13117_s7 + $0x80] sm:$0xf] }
 0x626   : > { %v7338_v18 = vor.u32 %v9715_v14, %v7337_v32  ;;  %v7528_v32 = vld [vmem:[%s13117_s7 + $0x150] sm:$0xf]  ;;  %v9742_v14 = vld [vmem:[%s13117_s7 + $0x154] sm:$0xf0] }
 0x628   : > { %v2489_v52 = vpop.f32.mrf.mxu2  ;;  %2871 = vmatpush.bf16.msra.mxu2 %v7422_v12  ;;  %v11382_v53 = vld [vmem:[#allocation3] sm:$0xff]  ;;  %v7362_v12 = vor.u32 %v9721_v6, %v7361_v5 }
 0x629   : > { %v2504_v41 = vadd.f32 %v2489_v52, %v2311_v20  ;;  %v9729_v52 = vld [vmem:[%s13117_s7 + $0xf4] sm:$0xf0]  ;;  %v9777_v5 = vld [vmem:[%s13117_s7 + $0x264] sm:$0xf] }
 0x62a   : > { %v7394_v40 = vor.u32 %v9729_v52, %v7393_v29  ;;  %v7615_v29 = vld [vmem:[%s13117_s7 + $0x1d0] sm:$0xf]  ;;  %v9759_v52 = vld [vmem:[%s13117_s7 + $0x1d4] sm:$0xf0]  ;;  %v7715_v33 = vor.u32 %v9777_v5, %v7712_v0  ;;  %v7672_v0 = vld [vmem:[%s13117_s7 + $0x218] sm:$0xf0] }
 0x62b   : > { %v2515_v2 = vadd.f32 %v11234_v60, %v2504_v41  ;;  %v9693_v41 = vld [vmem:[%s13116_s6] sm:$0xff] }
 0x62c   : > { %2872 = vmatpush.bf16.msra.mxu2 %v7414_v7  ;;  %v9717_v7 = vld [vmem:[%s13117_s7 + $0x94] sm:$0xf0] }
 0x62d   : > { %v2522_v61 = vmax.f32 %v2515_v2, 0.0  ;;  %v7378_v2 = vor.u32 %v9725_v37, %v7377_v16  ;;  %v7346_v42 = vor.u32 %v9717_v7, %v7345_v8  ;;  %v7599_v16 = vld [vmem:[%s13117_s7 + $0x1b0] sm:$0xf]  ;;  %v9755_v37 = vld [vmem:[%s13117_s7 + $0x1b4] sm:$0xf0] }
 0x62e   : > { %v7536_v8 = vld [vmem:[%s13117_s7 + $0x160] sm:$0xf]  ;;  %v7704_v7 = vld [vmem:[%s13117_s7 + $0x258] sm:$0xf0] }
 0x62f   : > { %v10113_v10 = vpack.c.bf16 %v2522_v61, %v2521_v59  ;;  %v9723_v59 = vld [vmem:[%s13117_s7 + $0xc4] sm:$0xf0] }
 0x630   : > { %v2492_v51 = vpop.f32.mrf.mxu2  ;;  %2873 = vmatpush.bf16.msra.mxu2 %v7406_v19  ;;  %v7370_v61 = vor.u32 %v9723_v59, %v7369_v55  ;;  %v7363_v19 = vld [vmem:[%s13117_s7 + $0xb8] sm:$0xf0]  ;;  %v9764_v55 = vld [vmem:[%s13116_s6 + $0x20] sm:$0xff]  ;;  %v9779_v59 = vld [vmem:[%s13117_s7 + $0x274] sm:$0xf] }
 0x631   : > { %10120 = vst [vmem:[#allocation3 + $0x8] sm:$0xff] %v10113_v10   ;;  %v2505_v3 = vadd.f32 %v2492_v51, %v11215_v49  ;;  %v2313_v49 = vadd.f32 %v11218_v58, %v2120_v17  ;;  %v7387_v10 = vld [vmem:[%s13117_s7 + $0xe8] sm:$0xf0]  ;;  %v7353_v51 = vld [vmem:[%s13117_s7 + $0xa0] sm:$0xf] }
 0x632   : > { %v7390_v38 = vor.u32 %v9726_v48, %v7387_v10  ;;  %v7354_v35 = vor.u32 %v9719_v9, %v7353_v51  ;;  %v9722_v17 = vld [vmem:[%s13117_s7 + $0xc4] sm:$0xf]  ;;  %v9746_v48 = vld [vmem:[%s13117_s7 + $0x174] sm:$0xf0]  ;;  %v9753_v10 = vld [vmem:[%s13117_s7 + $0x1a4] sm:$0xf0]  ;;  %v7600_v9 = vor.u32 %v9755_v37, %v7599_v16 }
 0x633   : > { %v2516_v56 = vadd.f32 %v11234_v60, %v2505_v3  ;;  %v7371_v3 = vld [vmem:[%s13117_s7 + $0xc8] sm:$0xf0]  ;;  %v9745_v51 = vld [vmem:[%s13117_s7 + $0x174] sm:$0xf] }
 0x634   : > { %v7374_v46 = vor.u32 %v9722_v17, %v7371_v3  ;;  %v9743_v3 = vld [vmem:[%s13117_s7 + $0x164] sm:$0xf] }
 0x635   : > { %v2523_v26 = vmax.f32 %v2516_v56, 0.0  ;;  %v9718_v56 = vld [vmem:[%s13117_s7 + $0xa4] sm:$0xf] }
 0x638   : > { %v2494_v21 = vpop.f32.mrf.mxu2 }
 0x639   : > { %v2506_v22 = vadd.f32 %v2494_v21, %v2313_v49  ;;  %v9720_v49 = vld [vmem:[%s13117_s7 + $0xb4] sm:$0xf] }
 0x63a   : > { %v7366_v21 = vor.u32 %v9720_v49, %v7363_v19  ;;  %v7530_v49 = vld [vmem:[%s13117_s7 + $0x158] sm:$0xf0] }
 0x63b   : > { %v2517_v25 = vadd.f32 %v11234_v60, %v2506_v22  ;;  %v7355_v22 = vld [vmem:[%s13117_s7 + $0xa8] sm:$0xf0] }
 0x63d   : > { %v2524_v27 = vmax.f32 %v2517_v25, 0.0  ;;  %v7358_v25 = vor.u32 %v9718_v56, %v7355_v22  ;;  %v7583_v56 = vld [vmem:[%s13117_s7 + $0x190] sm:$0xf] }
 0x63f   : > { %v10118_v39 = vpack.c.bf16 %v2524_v27, %v2523_v26  ;;  %v9716_v26 = vld [vmem:[%s13117_s7 + $0x94] sm:$0xf]  ;;  %v7347_v27 = vld [vmem:[%s13117_s7 + $0x98] sm:$0xf0] }
 0x640   : > { %v2497_v28 = vpop.f32.mrf.mxu2 }
 0x641   : > { %10121 = vst [vmem:[#allocation3 + $0x10] sm:$0xff] %v10118_v39   ;;  %v2507_v31 = vadd.f32 %v2497_v28, %v11220_v44  ;;  %v7350_v39 = vor.u32 %v9716_v26, %v7347_v27  ;;  %v9714_v28 = vld [vmem:[%s13117_s7 + $0x84] sm:$0xf]  ;;  %v7696_v27 = vld [vmem:[%s13117_s7 + $0x248] sm:$0xf0] }
 0x642   : > { %v9773_v26 = vld [vmem:[%s13117_s7 + $0x244] sm:$0xf] }
 0x643   : > { %v2518_v54 = vadd.f32 %v11234_v60, %v2507_v31  ;;  %v11370_v60 = vld [vmem:[#allocation3 + $0x8] sm:$0xff] }
 0x644   : > { %v7339_v31 = vld [vmem:[%s13117_s7 + $0x88] sm:$0xf0] }
 0x645   : > { %v2525_v58 = vmax.f32 %v2518_v54, 0.0  ;;  %v7342_v54 = vor.u32 %v9714_v28, %v7339_v31  ;;  %v7520_v31 = vld [vmem:[%s13117_s7 + $0x140] sm:$0xf] }
 0x647   : > { %v2532_v1 = vpack.c.bf16 %v2525_v58, %v2525_v58 }
 0x648   : > { %v2499_v34 = vpop.f32.mrf.mxu2  ;;  %v11364_v44 = vld [vmem:[#allocation3 + $0x10] sm:$0xff] }
 0x649   : > { %v2543_v62 = vsel %vm2541_vm10, %v2532_v1, %v2542_v36  ;;  %v7631_v36 = vld [vmem:[%s13117_s7 + $0x1f0] sm:$0xf]  ;;  %v9763_v1 = vld [vmem:[%s13117_s7 + $0x1f4] sm:$0xf0] }
 0x64a   : > { %2544 = vst [vmem:[#allocation3 + $0x18] sm:$0x1] %v2543_v62 }
 0x651   : > { %v2553_v15 = vld [vmem:[#allocation3 + $0x18] sm:$0x1] }
 0x652   : > { %v2572_v43 = vunpack.c.l.b16 %v2553_v15  ;;  %v7632_v15 = vor.u32 %v9763_v1, %v7631_v36  ;;  %v7522_v36 = vld [vmem:[%s13117_s7 + $0x148] sm:$0xf0] }
 0x654   : > { %v2576_v30 = vpack.c.b16 %v2572_v43, %v2572_v43 }
 0x656   : > { %v11358_v20 = vand.u32 %v2586_v57, %v2576_v30  ;;  %v9761_v57 = vld [vmem:[%s13117_s7 + $0x1e4] sm:$0xf0] }
 0x657   : > { %v7624_v30 = vor.u32 %v9761_v57, %v7623_v4  ;;  %v7688_v4 = vld [vmem:[%s13117_s7 + $0x238] sm:$0xf0] }
 0x658   : > { %2594 = vmatpush.bf16.msrb.mxu1 %v11358_v20  ;;  %2636 = vmatpush.bf16.msrb.mxu3 %v11358_v20 }
 0x659   : > { %3050 = vmatpush.bf16.msrb.mxu2 %v11358_v20  ;;  %3205 = vmatpush.bf16.msrb.mxu0 %v11358_v20 }
 0x65c   : > { %2595 = vmatpush.bf16.msrb.mxu1 %v11364_v44  ;;  %2637 = vmatpush.bf16.msrb.mxu3 %v11364_v44 }
 0x65d   : > { %3051 = vmatpush.bf16.msrb.mxu2 %v11364_v44  ;;  %3206 = vmatpush.bf16.msrb.mxu0 %v11364_v44 }
 0x660   : > { %2596 = vmatpush.bf16.msrb.mxu1 %v11370_v60  ;;  %2638 = vmatpush.bf16.msrb.mxu3 %v11370_v60 }
 0x661   : > { %3052 = vmatpush.bf16.msrb.mxu2 %v11370_v60  ;;  %3207 = vmatpush.bf16.msrb.mxu0 %v11370_v60 }
 0x664   : > { %2597 = vmatpush.bf16.msrb.mxu1 %v11382_v53  ;;  %2639 = vmatpush.bf16.msrb.mxu3 %v11382_v53 }
 0x665   : > { %3053 = vmatpush.bf16.msrb.mxu2 %v11382_v53  ;;  %3208 = vmatpush.bf16.msrb.mxu0 %v11382_v53 }
 0x667   : > { %7311 = vmatmul.msk.bf16.vlgmr.msrb.gmra.mxu1 %vm2580_vm11, %v9693_v41  ;;  %7318 = vmatmul.msk.bf16.vlgmr.msrb.gmra.mxu3 %vm2580_vm11, %v9713_v13  ;;  %v7616_v13 = vor.u32 %v9759_v52, %v7615_v29  ;;  %v7512_v29 = vld [vmem:[%s13117_s7 + $0x130] sm:$0xf]  ;;  %v9738_v52 = vld [vmem:[%s13117_s7 + $0x134] sm:$0xf0] }
 0x668   : > { %2744 = vmatpush.bf16.msra.mxu1 %v7394_v40  ;;  %2758 = vmatpush.bf16.msra.mxu3 %v7398_v23  ;;  %v7591_v23 = vld [vmem:[%s13117_s7 + $0x1a0] sm:$0xf]  ;;  %v7513_v16 = vor.u32 %v9738_v52, %v7512_v29  ;;  %v7617_v29 = vld [vmem:[%s13117_s7 + $0x1d8] sm:$0xf0]  ;;  %v7702_v52 = vld [vmem:[%s13117_s7 + $0x250] sm:$0xf] }
 0x669   : > { %v7592_v19 = vor.u32 %v9753_v10, %v7591_v23  ;;  %v7496_v23 = vld [vmem:[%s13117_s7 + $0x110] sm:$0xf]  ;;  %v9734_v10 = vld [vmem:[%s13117_s7 + $0x114] sm:$0xf0] }
 0x66c   : > { %2745 = vmatpush.bf16.msra.mxu1 %v7386_v24  ;;  %2759 = vmatpush.bf16.msra.mxu3 %v7390_v38  ;;  %v7608_v24 = vor.u32 %v9757_v50, %v7607_v45  ;;  %v7546_v38 = vld [vmem:[%s13117_s7 + $0x178] sm:$0xf0]  ;;  %v9769_v50 = vld [vmem:[%s13117_s7 + $0x224] sm:$0xf] }
 0x66d   : > { %v7549_v63 = vor.u32 %v9745_v51, %v7546_v38  ;;  %v7498_v51 = vld [vmem:[%s13117_s7 + $0x118] sm:$0xf0] }
 0x670   : > { %2746 = vmatpush.bf16.msra.mxu1 %v7378_v2  ;;  %2760 = vmatpush.bf16.msra.mxu3 %v7382_v47  ;;  %v9747_v2 = vld [vmem:[%s13116_s6 + $0x18] sm:$0xff]  ;;  %v9744_v47 = vld [vmem:[%s13117_s7 + $0x164] sm:$0xf0] }
 0x671   : > { %v7537_v17 = vor.u32 %v9744_v47, %v7536_v8  ;;  %v9814_v8 = vld [vmem:[%s13117_s7 + $0x374] sm:$0xf0] }
 0x674   : > { %2747 = vmatpush.bf16.msra.mxu1 %v7370_v61  ;;  %2761 = vmatpush.bf16.msra.mxu3 %v7374_v46  ;;  %v7720_v61 = vld [vmem:[%s13117_s7 + $0x278] sm:$0xf0] }
 0x675   : > { %v7723_v6 = vor.u32 %v9779_v59, %v7720_v61  ;;  %v9735_v59 = vld [vmem:[%s13117_s7 + $0x124] sm:$0xf]  ;;  %v7506_v61 = vld [vmem:[%s13117_s7 + $0x128] sm:$0xf0] }
 0x678   : > { %2748 = vmatpush.bf16.msra.mxu1 %v7362_v12  ;;  %2762 = vmatpush.bf16.msra.mxu3 %v7366_v21  ;;  %v7545_v12 = vor.u32 %v9746_v48, %v7544_v11  ;;  %v9730_v21 = vld [vmem:[%s13116_s6 + $0x10] sm:$0xff]  ;;  %v7509_v48 = vor.u32 %v9735_v59, %v7506_v61  ;;  %v9774_v59 = vld [vmem:[%s13117_s7 + $0x244] sm:$0xf0] }
 0x67c   : > { %2749 = vmatpush.bf16.msra.mxu1 %v7354_v35  ;;  %2763 = vmatpush.bf16.msra.mxu3 %v7358_v25  ;;  %v9775_v35 = vld [vmem:[%s13117_s7 + $0x254] sm:$0xf]  ;;  %v9751_v25 = vld [vmem:[%s13117_s7 + $0x194] sm:$0xf0] }
 0x67d   : > { %v7707_v22 = vor.u32 %v9775_v35, %v7704_v7  ;;  %v7584_v1 = vor.u32 %v9751_v25, %v7583_v56  ;;  %v7892_v35 = vld [vmem:[%s13117_s7 + $0x370] sm:$0xf]  ;;  %v9762_v56 = vld [vmem:[%s13117_s7 + $0x1f4] sm:$0xf] }
 0x67e   : > { %v7718_v25 = vld [vmem:[%s13117_s7 + $0x270] sm:$0xf] }
 0x680   : > { %2750 = vmatpush.bf16.msra.mxu1 %v7346_v42  ;;  %2764 = vmatpush.bf16.msra.mxu3 %v7350_v39  ;;  %v7538_v42 = vld [vmem:[%s13117_s7 + $0x168] sm:$0xf0]  ;;  %v7529_v39 = vor.u32 %v9742_v14, %v7528_v32  ;;  %v9732_v14 = vld [vmem:[%s13117_s7 + $0x104] sm:$0xf0] }
 0x681   : > { %v7541_v46 = vor.u32 %v9743_v3, %v7538_v42  ;;  %v7884_v3 = vld [vmem:[%s13117_s7 + $0x360] sm:$0xf]  ;;  %v9812_v42 = vld [vmem:[%s13117_s7 + $0x364] sm:$0xf0] }
 0x682   : > { %v7885_v32 = vor.u32 %v9812_v42, %v7884_v3  ;;  %v7836_v3 = vld [vmem:[%s13117_s7 + $0x300] sm:$0xf]  ;;  %v9800_v42 = vld [vmem:[%s13117_s7 + $0x304] sm:$0xf0] }
 0x684   : > { %2751 = vmatpush.bf16.msra.mxu1 %v7338_v18  ;;  %2765 = vmatpush.bf16.msra.mxu3 %v7342_v54  ;;  %v9741_v18 = vld [vmem:[%s13117_s7 + $0x154] sm:$0xf]  ;;  %v9740_v54 = vld [vmem:[%s13117_s7 + $0x144] sm:$0xf0] }
 0x685   : > { %v7533_v28 = vor.u32 %v9741_v18, %v7530_v49  ;;  %v7521_v57 = vor.u32 %v9740_v54, %v7520_v31  ;;  %v9731_v18 = vld [vmem:[%s13117_s7 + $0x104] sm:$0xf]  ;;  %v7490_v49 = vld [vmem:[%s13117_s7 + $0x108] sm:$0xf0]  ;;  %v9810_v31 = vld [vmem:[%s13117_s7 + $0x354] sm:$0xf0] }
 0x688   : > { %2895 = vmatpush.bf16.msrb.mxu1 %v11358_v20  ;;  %3003 = vmatpush.bf16.msrb.mxu3 %v7545_v12  ;;  %v9733_v12 = vld [vmem:[%s13117_s7 + $0x114] sm:$0xf] }
 0x689   : > { %v7501_v47 = vor.u32 %v9733_v12, %v7498_v51  ;;  %v9772_v12 = vld [vmem:[%s13117_s7 + $0x234] sm:$0xf0] }
 0x68c   : > { %2896 = vmatpush.bf16.msrb.mxu1 %v11364_v44  ;;  %3004 = vmatpush.bf16.msrb.mxu3 %v7537_v17  ;;  %v7893_v17 = vor.u32 %v9814_v8, %v7892_v35  ;;  %v7593_v35 = vld [vmem:[%s13117_s7 + $0x1a8] sm:$0xf0]  ;;  %v7678_v8 = vld [vmem:[%s13117_s7 + $0x220] sm:$0xf] }
 0x690   : > { %2897 = vmatpush.bf16.msrb.mxu1 %v11370_v60  ;;  %3005 = vmatpush.bf16.msrb.mxu3 %v7529_v39 }
 0x694   : > { %2898 = vmatpush.bf16.msrb.mxu1 %v11382_v53  ;;  %3006 = vmatpush.bf16.msrb.mxu3 %v7521_v57 }
 0x698   : > { %3007 = vmatpush.bf16.msrb.mxu3 %v7513_v16  ;;  %v9756_v16 = vld [vmem:[%s13117_s7 + $0x1c4] sm:$0xf] }
 0x6e4   : > { %v2599_v58 = vpop.f32.mrf.mxu1 }
 0x6ea   : > { %v2641_v34 = vpop.f32.mrf.mxu3 }
 0x6ec   : > { %v2601_v62 = vpop.f32.mrf.mxu1 }
 0x6ed   : > { %v2604_v43 = vpack.c.bf16 %v2601_v62, %v2599_v58  ;;  %v9739_v58 = vld [vmem:[%s13117_s7 + $0x144] sm:$0xf]  ;;  %v7699_v62 = vor.u32 %v9773_v26, %v7696_v27  ;;  %v9780_v27 = vld [vmem:[%s13117_s7 + $0x274] sm:$0xf0] }
 0x6ee   : > { %v7719_v39 = vor.u32 %v9780_v27, %v7718_v25  ;;  %v7662_v25 = vld [vmem:[%s13117_s7 + $0x200] sm:$0xf]  ;;  %v9766_v27 = vld [vmem:[%s13117_s7 + $0x204] sm:$0xf0] }
 0x6ef   : > { %2860 = vmatmul.bf16.vlgmr.msra.gmra.mxu0 %v2604_v43  ;;  %2874 = vmatmul.bf16.vlgmr.msra.gmra.mxu2 %v2604_v43  ;;  %v9771_v43 = vld [vmem:[%s13117_s7 + $0x234] sm:$0xf] }
 0x6f0   : > { %3158 = vmatpush.bf16.msra.mxu2 %v7632_v15  ;;  %3327 = vmatpush.bf16.msra.mxu0 %v7723_v6  ;;  %v9749_v15 = vld [vmem:[%s13117_s7 + $0x184] sm:$0xf0]  ;;  %v7691_v45 = vor.u32 %v9771_v43, %v7688_v4  ;;  %v9767_v6 = vld [vmem:[%s13117_s7 + $0x214] sm:$0xf]  ;;  %v7868_v43 = vld [vmem:[%s13117_s7 + $0x340] sm:$0xf] }
 0x6f1   : > { %v7675_v38 = vor.u32 %v9767_v6, %v7672_v0  ;;  %v9808_v4 = vld [vmem:[%s13117_s7 + $0x344] sm:$0xf0] }
 0x6f2   : > { %v2643_v40 = vpop.f32.mrf.mxu3  ;;  %v7869_v57 = vor.u32 %v9808_v4, %v7868_v43  ;;  %v9804_v6 = vld [vmem:[%s13117_s7 + $0x324] sm:$0xf0] }
 0x6f3   : > { %v2646_v41 = vpack.c.bf16 %v2643_v40, %v2641_v34  ;;  %v7575_v34 = vld [vmem:[%s13117_s7 + $0x180] sm:$0xf]  ;;  %v9737_v40 = vld [vmem:[%s13117_s7 + $0x134] sm:$0xf] }
 0x6f4   : > { %3159 = vmatpush.bf16.msra.mxu2 %v7624_v30  ;;  %3328 = vmatpush.bf16.msra.mxu0 %v7715_v33  ;;  %v7525_v30 = vor.u32 %v9739_v58, %v7522_v36  ;;  %v7664_v33 = vld [vmem:[%s13117_s7 + $0x208] sm:$0xf0]  ;;  %v9760_v58 = vld [vmem:[%s13117_s7 + $0x1e4] sm:$0xf] }
 0x6f5   : > { %2752 = vmatmul.bf16.vlgmr.msra.gmra.mxu1 %v2646_v41  ;;  %2766 = vmatmul.bf16.vlgmr.msra.gmra.mxu3 %v2646_v41  ;;  %v7514_v41 = vld [vmem:[%s13117_s7 + $0x138] sm:$0xf0]  ;;  %v7625_v36 = vld [vmem:[%s13117_s7 + $0x1e8] sm:$0xf0] }
 0x6f6   : > { %3017 = vmatpush.bf16.msra.mxu1 %v7549_v63  ;;  %v7517_v37 = vor.u32 %v9737_v40, %v7514_v41  ;;  %v7497_v63 = vor.u32 %v9734_v10, %v7496_v23  ;;  %v9776_v41 = vld [vmem:[%s13117_s7 + $0x254] sm:$0xf0]  ;;  %v7686_v23 = vld [vmem:[%s13117_s7 + $0x230] sm:$0xf] }
 0x6f7   : > { %v7687_v51 = vor.u32 %v9772_v12, %v7686_v23  ;;  %v9781_v23 = vld [vmem:[%s13116_s6 + $0x28] sm:$0xff]  ;;  %v7765_v12 = vld [vmem:[%s13117_s7 + $0x2a0] sm:$0xf] }
 0x6f8   : > { %3160 = vmatpush.bf16.msra.mxu2 %v7616_v13  ;;  %3329 = vmatpush.bf16.msra.mxu0 %v7707_v22  ;;  %v7576_v13 = vor.u32 %v9749_v15, %v7575_v34  ;;  %v7633_v22 = vld [vmem:[%s13117_s7 + $0x1f8] sm:$0xf0]  ;;  %v7628_v34 = vor.u32 %v9760_v58, %v7625_v36 }
 0x6f9   : > { %v7636_v26 = vor.u32 %v9762_v56, %v7633_v22  ;;  %v9748_v56 = vld [vmem:[%s13117_s7 + $0x184] sm:$0xf]  ;;  %v7577_v22 = vld [vmem:[%s13117_s7 + $0x188] sm:$0xf0] }
 0x6fa   : > { %3018 = vmatpush.bf16.msra.mxu1 %v7541_v46  ;;  %v7488_v46 = vld [vmem:[%s13117_s7 + $0x100] sm:$0xf] }
 0x6fc   : > { %3161 = vmatpush.bf16.msra.mxu2 %v7608_v24  ;;  %3330 = vmatpush.bf16.msra.mxu0 %v7699_v62  ;;  %v7680_v24 = vld [vmem:[%s13117_s7 + $0x228] sm:$0xf0]  ;;  %v9778_v62 = vld [vmem:[%s13117_s7 + $0x264] sm:$0xf0] }
 0x6fd   : > { %v7683_v5 = vor.u32 %v9769_v50, %v7680_v24  ;;  %v9806_v50 = vld [vmem:[%s13117_s7 + $0x334] sm:$0xf0] }
 0x6fe   : > { %3019 = vmatpush.bf16.msra.mxu1 %v7533_v28  ;;  %v7876_v28 = vld [vmem:[%s13117_s7 + $0x350] sm:$0xf] }
 0x6ff   : > { %7556 = vmatmul.msk.bf16.vlgmr.msrb.gmra.mxu2 %vm2580_vm11, %v9747_v2  ;;  %7643 = vmatmul.msk.bf16.vlgmr.msrb.gmra.mxu0 %vm2580_vm11, %v9764_v55  ;;  %v7504_v2 = vld [vmem:[%s13117_s7 + $0x120] sm:$0xf]  ;;  %v9736_v55 = vld [vmem:[%s13117_s7 + $0x124] sm:$0xf0]  ;;  %v7877_v54 = vor.u32 %v9810_v31, %v7876_v28  ;;  %v7663_v28 = vor.u32 %v9766_v27, %v7662_v25  ;;  %v7886_v25 = vld [vmem:[%s13117_s7 + $0x368] sm:$0xf0] }
 0x700   : > { %3162 = vmatpush.bf16.msra.mxu2 %v7600_v9  ;;  %3331 = vmatpush.bf16.msra.mxu0 %v7691_v45  ;;  %v7505_v11 = vor.u32 %v9736_v55, %v7504_v2  ;;  %v9765_v9 = vld [vmem:[%s13117_s7 + $0x204] sm:$0xf]  ;;  %v7860_v45 = vld [vmem:[%s13117_s7 + $0x330] sm:$0xf]  ;;  %v7694_v2 = vld [vmem:[%s13117_s7 + $0x240] sm:$0xf] }
 0x701   : > { %v7667_v7 = vor.u32 %v9765_v9, %v7664_v33  ;;  %v7861_v24 = vor.u32 %v9806_v50, %v7860_v45  ;;  %v7695_v61 = vor.u32 %v9774_v59, %v7694_v2  ;;  %v9802_v9 = vld [vmem:[%s13117_s7 + $0x314] sm:$0xf0]  ;;  %v9788_v27 = vld [vmem:[%s13117_s7 + $0x2b4] sm:$0xf] }
 0x702   : > { %3020 = vmatpush.bf16.msra.mxu1 %v7525_v30  ;;  %3008 = vmatpush.bf16.msrb.mxu3 %v7505_v11  ;;  %v9758_v30 = vld [vmem:[%s13117_s7 + $0x1d4] sm:$0xf]  ;;  %v9793_v59 = vld [vmem:[%s13117_s7 + $0x2d4] sm:$0xf0] }
 0x703   : > { %v7620_v40 = vor.u32 %v9758_v30, %v7617_v29  ;;  %v9754_v11 = vld [vmem:[%s13117_s7 + $0x1b4] sm:$0xf] }
 0x704   : > { %3163 = vmatpush.bf16.msra.mxu2 %v7592_v19  ;;  %3332 = vmatpush.bf16.msra.mxu0 %v7683_v5  ;;  %v7489_v19 = vor.u32 %v9732_v14, %v7488_v46  ;;  %v7852_v5 = vld [vmem:[%s13117_s7 + $0x320] sm:$0xf]  ;;  %v7837_v46 = vor.u32 %v9800_v42, %v7836_v3  ;;  %v7585_v14 = vld [vmem:[%s13117_s7 + $0x198] sm:$0xf0] }
 0x705   : > { %7469 = vmatmul.msk.bf16.vlgmr.msrb.gmra.mxu1 %vm2580_vm11, %v9730_v21  ;;  %v7493_v21 = vor.u32 %v9731_v18, %v7490_v49  ;;  %v7853_v0 = vor.u32 %v9804_v6, %v7852_v5  ;;  %v7670_v18 = vld [vmem:[%s13117_s7 + $0x210] sm:$0xf]  ;;  %v7781_v5 = vld [vmem:[%s13117_s7 + $0x2c0] sm:$0xf]  ;;  %v9791_v6 = vld [vmem:[%s13117_s7 + $0x2c4] sm:$0xf0] }
 0x706   : > { %3021 = vmatpush.bf16.msra.mxu1 %v7517_v37  ;;  %3009 = vmatpush.bf16.msrb.mxu3 %v7497_v63  ;;  %v7609_v37 = vld [vmem:[%s13117_s7 + $0x1c8] sm:$0xf0]  ;;  %v9752_v63 = vld [vmem:[%s13117_s7 + $0x1a4] sm:$0xf]  ;;  %v7807_v3 = vld [vmem:[%s13117_s7 + $0x2f8] sm:$0xf0] }
 0x707   : > { %v7612_v55 = vor.u32 %v9756_v16, %v7609_v37  ;;  %v7797_v16 = vld [vmem:[%s13117_s7 + $0x2e0] sm:$0xf]  ;;  %v9795_v37 = vld [vmem:[%s13117_s7 + $0x2e4] sm:$0xf0] }
 0x708   : > { %3164 = vmatpush.bf16.msra.mxu2 %v7584_v1  ;;  %3333 = vmatpush.bf16.msra.mxu0 %v7675_v38  ;;  %v7710_v1 = vld [vmem:[%s13117_s7 + $0x260] sm:$0xf]  ;;  %v7844_v38 = vld [vmem:[%s13117_s7 + $0x310] sm:$0xf]  ;;  %v7798_v2 = vor.u32 %v9795_v37, %v7797_v16  ;;  %v9782_v16 = vld [vmem:[%s13117_s7 + $0x284] sm:$0xf] }
 0x709   : > { %v7711_v15 = vor.u32 %v9778_v62, %v7710_v1  ;;  %v7845_v33 = vor.u32 %v9802_v9, %v7844_v38  ;;  %v7757_v9 = vld [vmem:[%s13117_s7 + $0x290] sm:$0xf]  ;;  %v7751_v37 = vld [vmem:[%s13117_s7 + $0x288] sm:$0xf0] }
 0x70a   : > { %3022 = vmatpush.bf16.msra.mxu1 %v7509_v48  ;;  %3010 = vmatpush.bf16.msrb.mxu3 %v7489_v19  ;;  %v7601_v48 = vld [vmem:[%s13117_s7 + $0x1b8] sm:$0xf0]  ;;  %v9768_v19 = vld [vmem:[%s13117_s7 + $0x214] sm:$0xf0] }
 0x70b   : > { %v7604_v10 = vor.u32 %v9754_v11, %v7601_v48  ;;  %v7773_v11 = vld [vmem:[%s13117_s7 + $0x2b0] sm:$0xf]  ;;  %v9789_v48 = vld [vmem:[%s13117_s7 + $0x2b4] sm:$0xf0] }
 0x70c   : > { %3165 = vmatpush.bf16.msra.mxu2 %v7576_v13  ;;  %3334 = vmatpush.bf16.msra.mxu0 %v7667_v7  ;;  %v7703_v13 = vor.u32 %v9776_v41, %v7702_v52  ;;  %v9770_v7 = vld [vmem:[%s13117_s7 + $0x224] sm:$0xf0]  ;;  %v7805_v52 = vld [vmem:[%s13117_s7 + $0x2f0] sm:$0xf] }
 0x70e   : > { %3023 = vmatpush.bf16.msra.mxu1 %v7501_v47  ;;  %3172 = vmatpush.bf16.msra.mxu3 %v7636_v26  ;;  %v7596_v47 = vor.u32 %v9752_v63, %v7593_v35  ;;  %v7580_v26 = vor.u32 %v9748_v56, %v7577_v22  ;;  %v7749_v35 = vld [vmem:[%s13117_s7 + $0x280] sm:$0xf]  ;;  %v9811_v22 = vld [vmem:[%s13117_s7 + $0x364] sm:$0xf] }
 0x710   : > { %3360 = vmatpush.bf16.msrb.mxu2 %v11358_v20  ;;  %3623 = vmatpush.bf16.msrb.mxu0 %v7893_v17  ;;  %v7679_v17 = vor.u32 %v9770_v7, %v7678_v8  ;;  %v9783_v8 = vld [vmem:[%s13117_s7 + $0x284] sm:$0xf0]  ;;  %v9798_v7 = vld [vmem:[%s13116_s6 + $0x30] sm:$0xff] }
 0x712   : > { %3024 = vmatpush.bf16.msra.mxu1 %v7493_v21  ;;  %3173 = vmatpush.bf16.msra.mxu3 %v7628_v34  ;;  %v7671_v21 = vor.u32 %v9768_v19, %v7670_v18  ;;  %v7894_v18 = vld [vmem:[%s13117_s7 + $0x378] sm:$0xf0]  ;;  %v9790_v19 = vld [vmem:[%s13117_s7 + $0x2c4] sm:$0xf] }
 0x714   : > { %3361 = vmatpush.bf16.msrb.mxu2 %v11364_v44  ;;  %3624 = vmatpush.bf16.msrb.mxu0 %v7885_v32  ;;  %v9750_v32 = vld [vmem:[%s13117_s7 + $0x194] sm:$0xf] }
 0x715   : > { %v7588_v49 = vor.u32 %v9750_v32, %v7585_v14  ;;  %v9813_v32 = vld [vmem:[%s13117_s7 + $0x374] sm:$0xf] }
 0x716   : > { %3313 = vmatpush.bf16.msrb.mxu1 %v7719_v39  ;;  %3174 = vmatpush.bf16.msra.mxu3 %v7620_v40  ;;  %v9797_v40 = vld [vmem:[%s13117_s7 + $0x2f4] sm:$0xf0] }
 0x717   : > { %v7806_v45 = vor.u32 %v9797_v40, %v7805_v52  ;;  %v9784_v40 = vld [vmem:[%s13117_s7 + $0x294] sm:$0xf] }
 0x718   : > { %3362 = vmatpush.bf16.msrb.mxu2 %v11370_v60  ;;  %3625 = vmatpush.bf16.msrb.mxu0 %v7877_v54 }
 0x71a   : > { %3314 = vmatpush.bf16.msrb.mxu1 %v7711_v15  ;;  %3175 = vmatpush.bf16.msra.mxu3 %v7612_v55  ;;  %v7789_v55 = vld [vmem:[%s13117_s7 + $0x2d0] sm:$0xf] }
 0x71c   : > { %3363 = vmatpush.bf16.msrb.mxu2 %v11382_v53  ;;  %3626 = vmatpush.bf16.msrb.mxu0 %v7869_v57 }
 0x71e   : > { %3315 = vmatpush.bf16.msrb.mxu1 %v7703_v13  ;;  %3176 = vmatpush.bf16.msra.mxu3 %v7604_v10  ;;  %v7774_v10 = vor.u32 %v9789_v48, %v7773_v11  ;;  %v9801_v11 = vld [vmem:[%s13117_s7 + $0x314] sm:$0xf]  ;;  %v7846_v48 = vld [vmem:[%s13117_s7 + $0x318] sm:$0xf0] }
 0x720   : > { %3627 = vmatpush.bf16.msrb.mxu0 %v7861_v24 }
 0x722   : > { %3316 = vmatpush.bf16.msrb.mxu1 %v7695_v61  ;;  %3177 = vmatpush.bf16.msra.mxu3 %v7596_v47  ;;  %v7790_v61 = vor.u32 %v9793_v59, %v7789_v55  ;;  %v7750_v47 = vor.u32 %v9783_v8, %v7749_v35  ;;  %v7754_v55 = vor.u32 %v9782_v16, %v7751_v37  ;;  %v9803_v59 = vld [vmem:[%s13117_s7 + $0x324] sm:$0xf]  ;;  %v7965_v16 = vld [vmem:[%s13117_s7 + $0x3d8] sm:$0xf0]  ;;  %v8058_v37 = vld [vmem:[%s13117_s7 + $0x460] sm:$0xf] }
 0x724   : > { %3628 = vmatpush.bf16.msrb.mxu0 %v7853_v0  ;;  %v7782_v0 = vor.u32 %v9791_v6, %v7781_v5 }
 0x726   : > { %3317 = vmatpush.bf16.msrb.mxu1 %v7687_v51  ;;  %3178 = vmatpush.bf16.msra.mxu3 %v7588_v49  ;;  %v9787_v51 = vld [vmem:[%s13117_s7 + $0x2a4] sm:$0xf0]  ;;  %v7897_v49 = vor.u32 %v9813_v32, %v7894_v18  ;;  %v9830_v18 = vld [vmem:[%s13117_s7 + $0x3f4] sm:$0xf] }
 0x727   : > { %v7766_v38 = vor.u32 %v9787_v51, %v7765_v12 }
 0x728   : > { %3629 = vmatpush.bf16.msrb.mxu0 %v7845_v33  ;;  %v9785_v33 = vld [vmem:[%s13117_s7 + $0x294] sm:$0xf0] }
 0x729   : > { %v7758_v63 = vor.u32 %v9785_v33, %v7757_v9 }
 0x72a   : > { %3318 = vmatpush.bf16.msrb.mxu1 %v7679_v17  ;;  %3179 = vmatpush.bf16.msra.mxu3 %v7580_v26  ;;  %v9796_v17 = vld [vmem:[%s13117_s7 + $0x2f4] sm:$0xf]  ;;  %v7889_v26 = vor.u32 %v9811_v22, %v7886_v25 }
 0x72b   : > { %v7810_v42 = vor.u32 %v9796_v17, %v7807_v3 }
 0x72c   : > { %3630 = vmatpush.bf16.msrb.mxu0 %v7837_v46  ;;  %v7791_v46 = vld [vmem:[%s13117_s7 + $0x2d8] sm:$0xf0] }
 0x72e   : > { %3319 = vmatpush.bf16.msrb.mxu1 %v7671_v21  ;;  %v7783_v21 = vld [vmem:[%s13117_s7 + $0x2c8] sm:$0xf0] }
 0x72f   : > { %v7786_v56 = vor.u32 %v9790_v19, %v7783_v21 }
 0x732   : > { %3320 = vmatpush.bf16.msrb.mxu1 %v7663_v28  ;;  %v9809_v28 = vld [vmem:[%s13117_s7 + $0x354] sm:$0xf] }
 0x76c   : > { %v2861_v39 = vpop.f32.mrf.mxu0 }
 0x772   : > { %v2753_v31 = vpop.f32.mrf.mxu1  ;;  %v2875_v54 = vpop.f32.mrf.mxu2 }
 0x773   : > { %v11842_v58 = vadd.f32 %v2861_v39, %v2753_v31  ;;  %v7775_v39 = vld [vmem:[%s13117_s7 + $0x2b8] sm:$0xf0] }
 0x774   : > { %v11844_v36 = vpop.f32.mrf.mxu0  ;;  %v7778_v31 = vor.u32 %v9788_v27, %v7775_v39  ;;  %v9815_v27 = vld [vmem:[%s13116_s6 + $0x38] sm:$0xff]  ;;  %v9832_v39 = vld [vmem:[%s13116_s6 + $0x40] sm:$0xff] }
 0x778   : > { %v2767_v1 = vpop.f32.mrf.mxu3 }
 0x779   : > { %v11846_v34 = vadd.f32 %v2875_v54, %v2767_v1  ;;  %v7878_v54 = vld [vmem:[%s13117_s7 + $0x358] sm:$0xf0] }
 0x77a   : > { %v11848_v62 = vpop.f32.mrf.mxu1  ;;  %v11850_v15 = vpop.f32.mrf.mxu2  ;;  %v7881_v1 = vor.u32 %v9809_v28, %v7878_v54  ;;  %v7971_v28 = vld [vmem:[%s13117_s7 + $0x3e0] sm:$0xf]  ;;  %v9828_v54 = vld [vmem:[%s13117_s7 + $0x3e4] sm:$0xf] }
 0x77c   : > { %v3210_v43 = vpop.f32.mrf.mxu0 }
 0x782   : > { %v2900_v4 = vpop.f32.mrf.mxu1  ;;  %v3055_v57 = vpop.f32.mrf.mxu2 }
 0x784   : > { %v3212_v30 = vpop.f32.mrf.mxu0 }
 0x785   : > { %v3215_v29 = vpack.c.bf16 %v3212_v30, %v3210_v43  ;;  %v9786_v43 = vld [vmem:[%s13117_s7 + $0x2a4] sm:$0xf] }
 0x786   : > { %v9807_v30 = vld [vmem:[%s13117_s7 + $0x344] sm:$0xf] }
 0x787   : > { %3335 = vmatmul.bf16.vlgmr.msra.gmra.mxu0 %v3215_v29 }
 0x788   : > { %3825 = vmatpush.bf16.msra.mxu0 %v11358_v20 }
 0x78a   : > { %v2902_v41 = vpop.f32.mrf.mxu1  ;;  %v3057_v13 = vpop.f32.mrf.mxu2 }
 0x78b   : > { %v2905_v50 = vpack.c.bf16 %v2902_v41, %v2900_v4  ;;  %v3060_v24 = vpack.c.bf16 %v3057_v13, %v3055_v57  ;;  %v7767_v4 = vld [vmem:[%s13117_s7 + $0x2a8] sm:$0xf0]  ;;  %v7759_v41 = vld [vmem:[%s13117_s7 + $0x298] sm:$0xf0]  ;;  %v9805_v13 = vld [vmem:[%s13117_s7 + $0x334] sm:$0xf] }
 0x78c   : > { %3826 = vmatpush.bf16.msra.mxu0 %v11364_v44  ;;  %v7770_v57 = vor.u32 %v9786_v43, %v7767_v4  ;;  %v7973_v43 = vld [vmem:[%s13117_s7 + $0x3e8] sm:$0xf0]  ;;  %v8066_v4 = vld [vmem:[%s13117_s7 + $0x470] sm:$0xf] }
 0x78d   : > { %3011 = vmatmul.bf16.vlgmr.msrb.gmra.mxu3 %v2905_v50  ;;  %3025 = vmatmul.bf16.vlgmr.msra.gmra.mxu1 %v2905_v50  ;;  %v7862_v50 = vld [vmem:[%s13117_s7 + $0x338] sm:$0xf0] }
 0x78e   : > { %3166 = vmatmul.bf16.vlgmr.msra.gmra.mxu2 %v3060_v24  ;;  %3468 = vmatpush.bf16.msrb.mxu3 %v7806_v45  ;;  %v7762_v45 = vor.u32 %v9784_v40, %v7759_v41  ;;  %v8068_v40 = vld [vmem:[%s13117_s7 + $0x478] sm:$0xf0] }
 0x78f   : > { %3515 = vmatpush.bf16.msra.mxu1 %v11358_v20  ;;  %3482 = vmatpush.bf16.msra.mxu2 %v7810_v42 }
 0x790   : > { %3827 = vmatpush.bf16.msra.mxu0 %v11370_v60 }
 0x792   : > { %3469 = vmatpush.bf16.msrb.mxu3 %v7798_v2  ;;  %v11998_v2 = vpop.f32.mrf.mxu3 }
 0x793   : > { %3516 = vmatpush.bf16.msra.mxu1 %v11364_v44 }
 0x794   : > { %3828 = vmatpush.bf16.msra.mxu0 %v11382_v53 }
 0x796   : > { %3470 = vmatpush.bf16.msrb.mxu3 %v7790_v61  ;;  %v7854_v61 = vld [vmem:[%s13117_s7 + $0x328] sm:$0xf0] }
 0x797   : > { %3517 = vmatpush.bf16.msra.mxu1 %v11370_v60  ;;  %v7857_v6 = vor.u32 %v9803_v59, %v7854_v61 }
 0x79a   : > { %3471 = vmatpush.bf16.msrb.mxu3 %v7782_v0 }
 0x79b   : > { %3518 = vmatpush.bf16.msra.mxu1 %v11382_v53 }
 0x79d   : > { %3180 = vmatmul.bf16.vlgmr.msra.gmra.mxu3 %v3060_v24  ;;  %3321 = vmatmul.bf16.vlgmr.msrb.gmra.mxu1 %v3215_v29  ;;  %v7870_v29 = vld [vmem:[%s13117_s7 + $0x348] sm:$0xf0]  ;;  %v7865_v24 = vor.u32 %v9805_v13, %v7862_v50  ;;  %v7963_v13 = vld [vmem:[%s13117_s7 + $0x3d0] sm:$0xf]  ;;  %v9826_v50 = vld [vmem:[%s13117_s7 + $0x3d4] sm:$0xf] }
 0x79e   : > { %7730 = vmatmul.msk.bf16.vlgmr.msrb.gmra.mxu2 %vm2580_vm11, %v9781_v23  ;;  %3472 = vmatpush.bf16.msrb.mxu3 %v7774_v10  ;;  %v7873_v52 = vor.u32 %v9807_v30, %v7870_v29  ;;  %v7849_v23 = vor.u32 %v9801_v11, %v7846_v48  ;;  %v7976_v30 = vor.u32 %v9828_v54, %v7973_v43  ;;  %v7955_v11 = vld [vmem:[%s13117_s7 + $0x3c0] sm:$0xf]  ;;  %v9825_v48 = vld [vmem:[%s13117_s7 + $0x3c4] sm:$0xf0]  ;;  %v9818_v43 = vld [vmem:[%s13117_s7 + $0x394] sm:$0xf] }
 0x79f   : > { %3637 = vmatpush.bf16.msrb.mxu1 %v7897_v49  ;;  %v7981_v49 = vld [vmem:[%s13117_s7 + $0x3f8] sm:$0xf0]  ;;  %v7968_v59 = vor.u32 %v9826_v50, %v7965_v16  ;;  %v7923_v50 = vld [vmem:[%s13117_s7 + $0x380] sm:$0xf]  ;;  %v9816_v16 = vld [vmem:[%s13117_s7 + $0x384] sm:$0xf] }
 0x7a0   : > { %v7984_v21 = vor.u32 %v9830_v18, %v7981_v49  ;;  %v7939_v18 = vld [vmem:[%s13117_s7 + $0x3a0] sm:$0xf]  ;;  %v9821_v49 = vld [vmem:[%s13117_s7 + $0x3a4] sm:$0xf0] }
 0x7a2   : > { %3473 = vmatpush.bf16.msrb.mxu3 %v7766_v38  ;;  %v9799_v38 = vld [vmem:[%s13117_s7 + $0x304] sm:$0xf] }
 0x7a3   : > { %3638 = vmatpush.bf16.msrb.mxu1 %v7889_v26 }
 0x7a6   : > { %3474 = vmatpush.bf16.msrb.mxu3 %v7758_v63 }
 0x7a7   : > { %3639 = vmatpush.bf16.msrb.mxu1 %v7881_v1 }
 0x7aa   : > { %3475 = vmatpush.bf16.msrb.mxu3 %v7750_v47 }
 0x7ab   : > { %3640 = vmatpush.bf16.msrb.mxu1 %v7873_v52  ;;  %v9847_v52 = vld [vmem:[%s13117_s7 + $0x474] sm:$0xf] }
 0x7ac   : > { %v8071_v41 = vor.u32 %v9847_v52, %v8068_v40  ;;  %v9838_v52 = vld [vmem:[%s13117_s7 + $0x424] sm:$0xf0]  ;;  %v9837_v40 = vld [vmem:[%s13117_s7 + $0x424] sm:$0xf] }
 0x7ad   : > { %7817 = vmatmul.msk.bf16.vlgmr.msra.gmra.mxu1 %vm2580_vm11, %v9798_v7 }
 0x7ae   : > { %3670 = vmatpush.bf16.msra.mxu3 %v11358_v20  ;;  %v9794_v20 = vld [vmem:[%s13117_s7 + $0x2e4] sm:$0xf] }
 0x7af   : > { %3641 = vmatpush.bf16.msrb.mxu1 %v7865_v24 }
 0x7b2   : > { %3671 = vmatpush.bf16.msra.mxu3 %v11364_v44  ;;  %v7799_v44 = vld [vmem:[%s13117_s7 + $0x2e8] sm:$0xf0] }
 0x7b3   : > { %3642 = vmatpush.bf16.msrb.mxu1 %v7857_v6  ;;  %v8060_v6 = vld [vmem:[%s13117_s7 + $0x468] sm:$0xf0] }
 0x7b6   : > { %3672 = vmatpush.bf16.msra.mxu3 %v11370_v60  ;;  %v7802_v60 = vor.u32 %v9794_v20, %v7799_v44 }
 0x7b7   : > { %3643 = vmatpush.bf16.msrb.mxu1 %v7849_v23  ;;  %v9824_v23 = vld [vmem:[%s13117_s7 + $0x3c4] sm:$0xf] }
 0x7b8   : > { %3483 = vmatpush.bf16.msra.mxu2 %v7802_v60 }
 0x7ba   : > { %3673 = vmatpush.bf16.msra.mxu3 %v11382_v53  ;;  %v9792_v53 = vld [vmem:[%s13117_s7 + $0x2d4] sm:$0xf] }
 0x7bb   : > { %v7794_v14 = vor.u32 %v9792_v53, %v7791_v46 }
 0x7bd   : > { %3484 = vmatpush.bf16.msra.mxu2 %v7794_v14  ;;  %v7979_v14 = vld [vmem:[%s13117_s7 + $0x3f0] sm:$0xf] }
 0x7c1   : > { %3485 = vmatpush.bf16.msra.mxu2 %v7786_v56 }
 0x7c5   : > { %3486 = vmatpush.bf16.msra.mxu2 %v7778_v31  ;;  %v9829_v31 = vld [vmem:[%s13117_s7 + $0x3e4] sm:$0xf0] }
 0x7c6   : > { %v7972_v1 = vor.u32 %v9829_v31, %v7971_v28  ;;  %v8036_v28 = vld [vmem:[%s13117_s7 + $0x438] sm:$0xf0]  ;;  %v7931_v31 = vld [vmem:[%s13117_s7 + $0x390] sm:$0xf] }
 0x7c9   : > { %3487 = vmatpush.bf16.msra.mxu2 %v7770_v57  ;;  %v9848_v57 = vld [vmem:[%s13117_s7 + $0x474] sm:$0xf0] }
 0x7ca   : > { %v8067_v29 = vor.u32 %v9848_v57, %v8066_v4  ;;  %v7933_v4 = vld [vmem:[%s13117_s7 + $0x398] sm:$0xf0] }
 0x7cd   : > { %3488 = vmatpush.bf16.msra.mxu2 %v7762_v45  ;;  %v9827_v45 = vld [vmem:[%s13117_s7 + $0x3d4] sm:$0xf0] }
 0x7ce   : > { %v7964_v24 = vor.u32 %v9827_v45, %v7963_v13  ;;  %v8028_v13 = vld [vmem:[%s13117_s7 + $0x428] sm:$0xf0] }
 0x7cf   : > { %v8031_v45 = vor.u32 %v9837_v40, %v8028_v13  ;;  %v9866_v40 = vld [vmem:[%s13119_s9 + $0x88] sm:$0xff] }
 0x7d1   : > { %3489 = vmatpush.bf16.msra.mxu2 %v7754_v55  ;;  %v9846_v55 = vld [vmem:[%s13117_s7 + $0x464] sm:$0xf0] }
 0x7d2   : > { %v8059_v61 = vor.u32 %v9846_v55, %v8058_v37  ;;  %v7925_v55 = vld [vmem:[%s13117_s7 + $0x388] sm:$0xf0] }
 0x804   : > { %v3336_v60 = vpop.f32.mrf.mxu0 }
 0x80a   : > { %v3026_v5 = vpop.f32.mrf.mxu1 }
 0x80b   : > { %v3032_v0 = vadd.f32 %v3026_v5, %v11846_v34  ;;  %v7838_v34 = vld [vmem:[%s13117_s7 + $0x308] sm:$0xf0]  ;;  %v9845_v5 = vld [vmem:[%s13117_s7 + $0x464] sm:$0xf] }
 0x80c   : > { %v7841_v33 = vor.u32 %v9799_v38, %v7838_v34  ;;  %v9844_v38 = vld [vmem:[%s13117_s7 + $0x454] sm:$0xf0] }
 0x80e   : > { %3644 = vmatpush.bf16.msrb.mxu1 %v7841_v33 }
 0x810   : > { %v3012_v10 = vpop.f32.mrf.mxu3 }
 0x811   : > { %v3031_v12 = vadd.f32 %v3012_v10, %v11842_v58  ;;  %v3167_v51 = vpop.f32.mrf.mxu2  ;;  %v2864_v58 = vadd.f32 %v11844_v36, %v11848_v62  ;;  %v9831_v36 = vld [vmem:[%s13117_s7 + $0x3f4] sm:$0xf0]  ;;  %v7956_v10 = vor.u32 %v9825_v48, %v7955_v11  ;;  %v9835_v11 = vld [vmem:[%s13117_s7 + $0x414] sm:$0xf]  ;;  %v8020_v48 = vld [vmem:[%s13117_s7 + $0x418] sm:$0xf0] }
 0x812   : > { %v12020_v9 = vpop.f32.mrf.mxu1  ;;  %v7980_v62 = vor.u32 %v9831_v36, %v7979_v14  ;;  %3933 = vmatpush.bf16.msra.mxu1 %v8067_v29  ;;  %v9841_v14 = vld [vmem:[%s13117_s7 + $0x444] sm:$0xf]  ;;  %v8044_v36 = vld [vmem:[%s13117_s7 + $0x448] sm:$0xf0]  ;;  %v8026_v29 = vld [vmem:[%s13117_s7 + $0x420] sm:$0xf] }
 0x813   : > { %v3186_v63 = vadd.f32 %v3167_v51, %v3031_v12  ;;  %v7957_v12 = vld [vmem:[%s13117_s7 + $0x3c8] sm:$0xf0]  ;;  %v8050_v51 = vld [vmem:[%s13117_s7 + $0x450] sm:$0xf] }
 0x814   : > { %3778 = vmatpush.bf16.msrb.mxu2 %v7980_v62  ;;  %v7960_v34 = vor.u32 %v9824_v23, %v7957_v12  ;;  %v8051_v33 = vor.u32 %v9844_v38, %v8050_v51  ;;  %v8047_v62 = vor.u32 %v9841_v14, %v8044_v36  ;;  %v8023_v23 = vor.u32 %v9835_v11, %v8020_v48  ;;  %v9834_v12 = vld [vmem:[%s13117_s7 + $0x404] sm:$0xf0]  ;;  %v9833_v51 = vld [vmem:[%s13117_s7 + $0x404] sm:$0xf]  ;;  %v12229_v38 = vpop.f32.mrf.mxu0  ;;  %v9912_v11 = vld [vmem:[%s13119_s9 + $0x1f8] sm:$0xff] }
 0x815   : > { %v9854_v36 = vld [vmem:[%s13119_s9 + $0x28] sm:$0xff]  ;;  %v9887_v48 = vld [vmem:[%s13119_s9 + $0x130] sm:$0xff] }
 0x816   : > { %3934 = vmatpush.bf16.msra.mxu1 %v8059_v61  ;;  %v9836_v61 = vld [vmem:[%s13117_s7 + $0x414] sm:$0xf0] }
 0x818   : > { %v3014_v35 = vpop.f32.mrf.mxu3  ;;  %3779 = vmatpush.bf16.msrb.mxu2 %v7972_v1  ;;  %v9819_v1 = vld [vmem:[%s13117_s7 + $0x394] sm:$0xf0] }
 0x819   : > { %v3169_v8 = vpop.f32.mrf.mxu2  ;;  %v3033_v17 = vadd.f32 %v3014_v35, %v2864_v58  ;;  %v8052_v35 = vld [vmem:[%s13117_s7 + $0x458] sm:$0xf0]  ;;  %v9823_v58 = vld [vmem:[%s13117_s7 + $0x3b4] sm:$0xf0]  ;;  %v7932_v57 = vor.u32 %v9819_v1, %v7931_v31  ;;  %v9851_v1 = vld [vmem:[%s13119_s9 + $0x10] sm:$0xff] }
 0x81a   : > { %v3322_v47 = vpop.f32.mrf.mxu1  ;;  %3935 = vmatpush.bf16.msra.mxu1 %v8051_v33  ;;  %v8012_v33 = vld [vmem:[%s13117_s7 + $0x408] sm:$0xf0]  ;;  %v9876_v31 = vld [vmem:[%s13119_s9 + $0xd8] sm:$0xff] }
 0x81b   : > { %v12024_v7 = vadd.f32 %v3322_v47, %v3186_v63  ;;  %v3188_v42 = vadd.f32 %v3169_v8, %v3033_v17  ;;  %v9843_v63 = vld [vmem:[%s13117_s7 + $0x454] sm:$0xf]  ;;  %v7947_v47 = vld [vmem:[%s13117_s7 + $0x3b0] sm:$0xf] }
 0x81c   : > { %3780 = vmatpush.bf16.msrb.mxu2 %v7964_v24  ;;  %v8055_v8 = vor.u32 %v9843_v63, %v8052_v35  ;;  %v9822_v17 = vld [vmem:[%s13117_s7 + $0x3b4] sm:$0xf]  ;;  %v9817_v24 = vld [vmem:[%s13117_s7 + $0x384] sm:$0xf0]  ;;  %v8015_v63 = vor.u32 %v9833_v51, %v8012_v33  ;;  %v9856_v35 = vld [vmem:[%s13119_s9 + $0x38] sm:$0xff] }
 0x81d   : > { %v7924_v37 = vor.u32 %v9817_v24, %v7923_v50  ;;  %v9857_v50 = vld [vmem:[%s13119_s9 + $0x40] sm:$0xff]  ;;  %v9886_v51 = vld [vmem:[%s13119_s9 + $0x128] sm:$0xff] }
 0x81e   : > { %v9902_v33 = vld [vmem:[%s13119_s9 + $0x1a8] sm:$0xff] }
 0x820   : > { %v3181_v3 = vpop.f32.mrf.mxu3  ;;  %3781 = vmatpush.bf16.msrb.mxu2 %v7956_v10  ;;  %v8010_v10 = vld [vmem:[%s13117_s7 + $0x400] sm:$0xf] }
 0x821   : > { %v3187_v20 = vadd.f32 %v3181_v3, %v3032_v0  ;;  %v3365_v44 = vpop.f32.mrf.mxu2  ;;  %v8063_v0 = vor.u32 %v9845_v5, %v8060_v6  ;;  %v7948_v3 = vor.u32 %v9823_v58, %v7947_v47  ;;  %v7928_v6 = vor.u32 %v9816_v16, %v7925_v55  ;;  %v9872_v47 = vld [vmem:[%s13119_s9 + $0xb8] sm:$0xff] }
 0x822   : > { %v3324_v53 = vpop.f32.mrf.mxu1  ;;  %v9880_v58 = vld [vmem:[%s13119_s9 + $0xf8] sm:$0xff] }
 0x823   : > { %v12026_v46 = vadd.f32 %v3324_v53, %v3188_v42  ;;  %v12028_v32 = vadd.f32 %v3336_v60, %v3187_v20  ;;  %v7949_v42 = vld [vmem:[%s13117_s7 + $0x3b8] sm:$0xf0]  ;;  %v8042_v20 = vld [vmem:[%s13117_s7 + $0x440] sm:$0xf] }
 0x824   : > { %v7952_v60 = vor.u32 %v9822_v17, %v7949_v42  ;;  %3782 = vmatpush.bf16.msrb.mxu2 %v7948_v3  ;;  %v9855_v3 = vld [vmem:[%s13119_s9 + $0x30] sm:$0xff]  ;;  %v9888_v16 = vld [vmem:[%s13119_s9 + $0x138] sm:$0xff] }
 0x825   : > { %v9863_v42 = vld [vmem:[%s13119_s9 + $0x70] sm:$0xff] }
 0x828   : > { %v12212_v5 = vpop.f32.mrf.mxu3 }
 0x829   : > { %v3367_v19 = vpop.f32.mrf.mxu2 }
 0x82a   : > { %v3370_v56 = vpack.c.bf16 %v3367_v19, %v3365_v44  ;;  %v3520_v22 = vpop.f32.mrf.mxu1  ;;  %v9842_v44 = vld [vmem:[%s13117_s7 + $0x444] sm:$0xf0]  ;;  %v9820_v19 = vld [vmem:[%s13117_s7 + $0x3a4] sm:$0xf] }
 0x82b   : > { %v8043_v53 = vor.u32 %v9842_v44, %v8042_v20  ;;  %v9871_v44 = vld [vmem:[%s13119_s9 + $0xb0] sm:$0xff] }
 0x82c   : > { %3476 = vmatmul.bf16.vlgmr.msrb.gmra.mxu3 %v3370_v56  ;;  %3490 = vmatmul.bf16.vlgmr.msra.gmra.mxu2 %v3370_v56  ;;  %v7941_v56 = vld [vmem:[%s13117_s7 + $0x3a8] sm:$0xf0] }
 0x82d   : > { %3792 = vmatpush.bf16.msrb.mxu3 %v7984_v21  ;;  %3936 = vmatpush.bf16.msra.mxu1 %v8043_v53  ;;  %v7940_v21 = vor.u32 %v9821_v49, %v7939_v18  ;;  %v9878_v18 = vld [vmem:[%s13119_s9 + $0xe8] sm:$0xff] }
 0x82f   : > { %3783 = vmatpush.bf16.msrb.mxu2 %v7940_v21  ;;  %v9861_v21 = vld [vmem:[%s13119_s9 + $0x60] sm:$0xff] }
 0x831   : > { %3793 = vmatpush.bf16.msrb.mxu3 %v7976_v30  ;;  %v7936_v30 = vor.u32 %v9818_v43, %v7933_v4  ;;  %v9859_v43 = vld [vmem:[%s13119_s9 + $0x50] sm:$0xff] }
 0x832   : > { %v3522_v25 = vpop.f32.mrf.mxu1  ;;  %v9867_v4 = vld [vmem:[%s13119_s9 + $0x90] sm:$0xff] }
 0x833   : > { %v3525_v26 = vpack.c.bf16 %v3522_v25, %v3520_v22  ;;  %v8034_v22 = vld [vmem:[%s13117_s7 + $0x430] sm:$0xf]  ;;  %v9840_v25 = vld [vmem:[%s13117_s7 + $0x434] sm:$0xf0]  ;;  %3784 = vmatpush.bf16.msrb.mxu2 %v7932_v57 }
 0x834   : > { %v9875_v57 = vld [vmem:[%s13119_s9 + $0xd0] sm:$0xff] }
 0x835   : > { %3631 = vmatmul.bf16.vlgmr.msrb.gmra.mxu0 %v3525_v26  ;;  %3645 = vmatmul.bf16.vlgmr.msrb.gmra.mxu1 %v3525_v26  ;;  %v7944_v26 = vor.u32 %v9820_v19, %v7941_v56  ;;  %v9853_v19 = vld [vmem:[%s13119_s9 + $0x20] sm:$0xff] }
 0x836   : > { %3947 = vmatpush.bf16.msrb.mxu0 %v8071_v41  ;;  %3794 = vmatpush.bf16.msrb.mxu3 %v7968_v59  ;;  %v8027_v41 = vor.u32 %v9838_v52, %v8026_v29  ;;  %v8018_v59 = vld [vmem:[%s13117_s7 + $0x410] sm:$0xf]  ;;  %v9850_v29 = vld [vmem:[%s13119_s9 + $0x8] sm:$0xff] }
 0x837   : > { %3785 = vmatpush.bf16.msrb.mxu2 %v7924_v37  ;;  %v9858_v52 = vld [vmem:[%s13119_s9 + $0x48] sm:$0xff]  ;;  %v9896_v37 = vld [vmem:[%s13119_s9 + $0x178] sm:$0xff] }
 0x83a   : > { %3948 = vmatpush.bf16.msrb.mxu0 %v8063_v0  ;;  %3795 = vmatpush.bf16.msrb.mxu3 %v7960_v34  ;;  %v8019_v0 = vor.u32 %v9836_v61, %v8018_v59  ;;  %v8011_v34 = vor.u32 %v9834_v12, %v8010_v10  ;;  %v9865_v59 = vld [vmem:[%s13119_s9 + $0x80] sm:$0xff]  ;;  %v9903_v10 = vld [vmem:[%s13119_s9 + $0x1b0] sm:$0xff] }
 0x83b   : > { %4117 = vmatpush.bf16.msra.mxu2 %v9856_v35  ;;  %v9873_v61 = vld [vmem:[%s13119_s9 + $0xc0] sm:$0xff]  ;;  %v9911_v12 = vld [vmem:[%s13119_s9 + $0x1f0] sm:$0xff] }
 0x83c   : > { %7904 = vmatmul.msk.bf16.vlgmr.msra.gmra.mxu3 %vm2580_vm11, %v9815_v27  ;;  %v8035_v27 = vor.u32 %v9840_v25, %v8034_v22  ;;  %v9869_v22 = vld [vmem:[%s13119_s9 + $0xa0] sm:$0xff] }
 0x83d   : > { %v9877_v25 = vld [vmem:[%s13119_s9 + $0xe0] sm:$0xff] }
 0x83e   : > { %3949 = vmatpush.bf16.msrb.mxu0 %v8055_v8  ;;  %3796 = vmatpush.bf16.msrb.mxu3 %v7952_v60  ;;  %v9864_v8 = vld [vmem:[%s13119_s9 + $0x78] sm:$0xff]  ;;  %v9879_v60 = vld [vmem:[%s13119_s9 + $0xf0] sm:$0xff]  ;;  %v9885_v35 = vld [vmem:[%s13119_s9 + $0x120] sm:$0xff] }
 0x83f   : > { %3937 = vmatpush.bf16.msra.mxu1 %v8035_v27  ;;  %4118 = vmatpush.bf16.msra.mxu2 %v9855_v3  ;;  %v9892_v3 = vld [vmem:[%s13119_s9 + $0x158] sm:$0xff] }
 0x842   : > { %3950 = vmatpush.bf16.msrb.mxu0 %v8047_v62  ;;  %3797 = vmatpush.bf16.msrb.mxu3 %v7944_v26  ;;  %v9870_v62 = vld [vmem:[%s13119_s9 + $0xa8] sm:$0xff] }
 0x843   : > { %3938 = vmatpush.bf16.msra.mxu1 %v8027_v41  ;;  %4119 = vmatpush.bf16.msra.mxu2 %v9854_v36  ;;  %v9874_v41 = vld [vmem:[%s13119_s9 + $0xc8] sm:$0xff]  ;;  %v9907_v36 = vld [vmem:[%s13119_s9 + $0x1d0] sm:$0xff] }
 0x845   : > { %7991 = vmatmul.msk.bf16.vlgmr.msra.gmra.mxu0 %vm2580_vm11, %v9832_v39  ;;  %v9839_v39 = vld [vmem:[%s13117_s7 + $0x434] sm:$0xf] }
 0x846   : > { %v8039_v54 = vor.u32 %v9839_v39, %v8036_v28  ;;  %3798 = vmatpush.bf16.msrb.mxu3 %v7936_v30  ;;  %v9852_v39 = vld [vmem:[%s13119_s9 + $0x18] sm:$0xff] }
 0x847   : > { %3939 = vmatpush.bf16.msra.mxu1 %v8019_v0  ;;  %4120 = vmatpush.bf16.msra.mxu2 %v9853_v19  ;;  %v9868_v28 = vld [vmem:[%s13119_s9 + $0x98] sm:$0xff] }
 0x848   : > { %3951 = vmatpush.bf16.msrb.mxu0 %v8039_v54  ;;  %v9904_v0 = vld [vmem:[%s13119_s9 + $0x1b8] sm:$0xff] }
 0x84a   : > { %3799 = vmatpush.bf16.msrb.mxu3 %v7928_v6 }
 0x84b   : > { %3940 = vmatpush.bf16.msra.mxu1 %v8011_v34  ;;  %4121 = vmatpush.bf16.msra.mxu2 %v9852_v39  ;;  %v9894_v34 = vld [vmem:[%s13119_s9 + $0x168] sm:$0xff] }
 0x84c   : > { %3952 = vmatpush.bf16.msrb.mxu0 %v8031_v45  ;;  %v9849_v45 = vld [vmem:[%s13119_s9] sm:$0xff] }
 0x84e   : > { %4130 = vmatpush.bf16.msra.mxu3 %v9864_v8  ;;  %v9893_v8 = vld [vmem:[%s13119_s9 + $0x160] sm:$0xff] }
 0x84f   : > { %4281 = vmatpush.bf16.msrb.mxu1 %v9872_v47  ;;  %4122 = vmatpush.bf16.msra.mxu2 %v9851_v1  ;;  %v9901_v47 = vld [vmem:[%s13119_s9 + $0x1a0] sm:$0xff] }
 0x850   : > { %3953 = vmatpush.bf16.msrb.mxu0 %v8023_v23  ;;  %v9895_v23 = vld [vmem:[%s13119_s9 + $0x170] sm:$0xff]  ;;  %v3965_v1 = vld [vmem:[%s13118_s8] sm:$0x3] }
 0x852   : > { %4131 = vmatpush.bf16.msra.mxu3 %v9863_v42  ;;  %v9900_v42 = vld [vmem:[%s13119_s9 + $0x198] sm:$0xff] }
 0x853   : > { %4282 = vmatpush.bf16.msrb.mxu1 %v9871_v44  ;;  %4123 = vmatpush.bf16.msra.mxu2 %v9850_v29  ;;  %v9883_v44 = vld [vmem:[%s13119_s9 + $0x110] sm:$0xff] }
 0x854   : > { %3954 = vmatpush.bf16.msrb.mxu0 %v8015_v63  ;;  %v9910_v63 = vld [vmem:[%s13119_s9 + $0x1e8] sm:$0xff] }
 0x857   : > { %4283 = vmatpush.bf16.msrb.mxu1 %v9870_v62  ;;  %4124 = vmatpush.bf16.msra.mxu2 %v9849_v45  ;;  %v9890_v62 = vld [vmem:[%s13119_s9 + $0x148] sm:$0xff] }
 0x858   : > { %4294 = vmatpush.bf16.msra.mxu0 %v9880_v58  ;;  %v9909_v58 = vld [vmem:[%s13119_s9 + $0x1e0] sm:$0xff] }
 0x85b   : > { %4284 = vmatpush.bf16.msrb.mxu1 %v9869_v22 }
 0x85c   : > { %4295 = vmatpush.bf16.msra.mxu0 %v9879_v60  ;;  %v9891_v60 = vld [vmem:[%s13119_s9 + $0x150] sm:$0xff] }
 0x85f   : > { %4285 = vmatpush.bf16.msrb.mxu1 %v9868_v28  ;;  %v2878_v28 = vadd.f32 %v11850_v15, %v11998_v2  ;;  %v3968_v15 = vperm.slane %v3965_v1, 1 }
 0x860   : > { %4296 = vmatpush.bf16.msra.mxu0 %v9878_v18  ;;  %v9898_v18 = vld [vmem:[%s13119_s9 + $0x188] sm:$0xff] }
 0x863   : > { %4286 = vmatpush.bf16.msrb.mxu1 %v9867_v4 }
 0x864   : > { %4297 = vmatpush.bf16.msra.mxu0 %v9877_v25  ;;  %v9897_v25 = vld [vmem:[%s13119_s9 + $0x180] sm:$0xff] }
 0x867   : > { %4287 = vmatpush.bf16.msrb.mxu1 %v9866_v40 }
 0x868   : > { %4298 = vmatpush.bf16.msra.mxu0 %v9876_v31  ;;  %v3034_v31 = vadd.f32 %v12020_v9, %v2878_v28  ;;  %v9940_v28 = vld [vmem:[%s13119_s9 + $0x2d8] sm:$0xff] }
 0x86b   : > { %4288 = vmatpush.bf16.msrb.mxu1 %v9865_v59 }
 0x86c   : > { %4299 = vmatpush.bf16.msra.mxu0 %v9875_v57 }
 0x870   : > { %4300 = vmatpush.bf16.msra.mxu0 %v9874_v41  ;;  %v3967_v41 = vperm.slane %v3965_v1, 0  ;;  %v9915_v1 = vld [vmem:[%s13119_s9 + $0x210] sm:$0xff] }
 0x874   : > { %4301 = vmatpush.bf16.msra.mxu0 %v9873_v61 }
 0x8af   : > { %v3477_v17 = vpop.f32.mrf.mxu3  ;;  %v3491_v22 = vpop.f32.mrf.mxu2 }
 0x8b0   : > { %v3496_v20 = vadd.f32 %v3477_v17, %v12024_v7  ;;  %v9862_v7 = vld [vmem:[%s13119_s9 + $0x68] sm:$0xff]  ;;  %v9884_v17 = vld [vmem:[%s13119_s9 + $0x118] sm:$0xff] }
 0x8b1   : > { %4132 = vmatpush.bf16.msra.mxu3 %v9862_v7  ;;  %v9882_v7 = vld [vmem:[%s13119_s9 + $0x108] sm:$0xff] }
 0x8b2   : > { %v3632_v53 = vpop.f32.mrf.mxu0  ;;  %v3646_v19 = vpop.f32.mrf.mxu1 }
 0x8b3   : > { %v12259_v14 = vadd.f32 %v3632_v53, %v3496_v20  ;;  %v9908_v20 = vld [vmem:[%s13119_s9 + $0x1d8] sm:$0xff]  ;;  %v9899_v53 = vld [vmem:[%s13119_s9 + $0x190] sm:$0xff] }
 0x8b5   : > { %4133 = vmatpush.bf16.msra.mxu3 %v9861_v21  ;;  %v9881_v21 = vld [vmem:[%s13119_s9 + $0x100] sm:$0xff] }
 0x8b7   : > { %v3479_v49 = vpop.f32.mrf.mxu3 }
 0x8b8   : > { %v3498_v56 = vadd.f32 %v3479_v49, %v12026_v46  ;;  %v9860_v46 = vld [vmem:[%s13119_s9 + $0x58] sm:$0xff]  ;;  %v9906_v49 = vld [vmem:[%s13119_s9 + $0x1c8] sm:$0xff] }
 0x8b9   : > { %4134 = vmatpush.bf16.msra.mxu3 %v9860_v46  ;;  %v3493_v46 = vpop.f32.mrf.mxu2 }
 0x8ba   : > { %v3634_v26 = vpop.f32.mrf.mxu0  ;;  %v3648_v39 = vpop.f32.mrf.mxu1 }
 0x8bb   : > { %v12286_v27 = vadd.f32 %v3634_v26, %v3498_v56  ;;  %v9889_v56 = vld [vmem:[%s13119_s9 + $0x140] sm:$0xff] }
 0x8bc   : > { %v9905_v26 = vld [vmem:[%s13119_s9 + $0x1c0] sm:$0xff] }
 0x8bd   : > { %4135 = vmatpush.bf16.msra.mxu3 %v9859_v43  ;;  %v3189_v43 = vadd.f32 %v12212_v5, %v3034_v31 }
 0x8bf   : > { %v3675_v54 = vpop.f32.mrf.mxu3  ;;  %v3344_v2 = vadd.f32 %v12229_v38, %v3189_v43  ;;  %v9923_v43 = vld [vmem:[%s13119_s9 + $0x250] sm:$0xff] }
 0x8c1   : > { %4136 = vmatpush.bf16.msra.mxu3 %v9858_v52  ;;  %v3499_v45 = vadd.f32 %v3493_v46, %v3344_v2  ;;  %v9932_v46 = vld [vmem:[%s13119_s9 + $0x298] sm:$0xff] }
 0x8c2   : > { %v3830_v30 = vpop.f32.mrf.mxu0  ;;  %v9960_v2 = vld [vmem:[%s13119_s9 + $0x378] sm:$0xff] }
 0x8c5   : > { %4137 = vmatpush.bf16.msra.mxu3 %v9857_v50 }
 0x8c7   : > { %v3677_v13 = vpop.f32.mrf.mxu3 }
 0x8c8   : > { %v3680_v24 = vpack.c.bf16 %v3677_v13, %v3675_v54  ;;  %v3497_v54 = vadd.f32 %v3491_v22, %v12028_v32  ;;  %v9916_v22 = vld [vmem:[%s13119_s9 + $0x218] sm:$0xff] }
 0x8ca   : > { %3786 = vmatmul.bf16.vlgmr.msrb.gmra.mxu2 %v3680_v24  ;;  %3800 = vmatmul.bf16.vlgmr.msrb.gmra.mxu3 %v3680_v24  ;;  %v3832_v55 = vpop.f32.mrf.mxu0  ;;  %v3652_v4 = vadd.f32 %v3646_v19, %v3497_v54  ;;  %v9925_v19 = vld [vmem:[%s13119_s9 + $0x260] sm:$0xff] }
 0x8cb   : > { %v3835_v6 = vpack.c.bf16 %v3832_v55, %v3830_v30  ;;  %4441 = vmatpush.bf16.msrb.mxu2 %v9888_v16  ;;  %4454 = vmatpush.bf16.msrb.mxu3 %v9896_v37  ;;  %v3654_v16 = vadd.f32 %v3648_v39, %v3499_v45  ;;  %v9968_v45 = vld [vmem:[%s13119_s9 + $0x3b8] sm:$0xff] }
 0x8cd   : > { %3941 = vmatmul.bf16.vlgmr.msra.gmra.mxu1 %v3835_v6  ;;  %3955 = vmatmul.bf16.vlgmr.msrb.gmra.mxu0 %v3835_v6 }
 0x8ce   : > { %4601 = vmatpush.bf16.msra.mxu1 %v9904_v0  ;;  %4614 = vmatpush.bf16.msrb.mxu0 %v9912_v11 }
 0x8cf   : > { %4442 = vmatpush.bf16.msrb.mxu2 %v9887_v48  ;;  %4455 = vmatpush.bf16.msrb.mxu3 %v9895_v23 }
 0x8d2   : > { %4602 = vmatpush.bf16.msra.mxu1 %v9903_v10  ;;  %4615 = vmatpush.bf16.msrb.mxu0 %v9911_v12  ;;  %v9920_v12 = vld [vmem:[%s13119_s9 + $0x238] sm:$0xff] }
 0x8d3   : > { %4443 = vmatpush.bf16.msrb.mxu2 %v9886_v51  ;;  %4456 = vmatpush.bf16.msrb.mxu3 %v9894_v34  ;;  %v9928_v51 = vld [vmem:[%s13119_s9 + $0x278] sm:$0xff] }
 0x8d6   : > { %4603 = vmatpush.bf16.msra.mxu1 %v9902_v33  ;;  %4616 = vmatpush.bf16.msrb.mxu0 %v9910_v63 }
 0x8d7   : > { %4444 = vmatpush.bf16.msrb.mxu2 %v9885_v35  ;;  %4457 = vmatpush.bf16.msrb.mxu3 %v9893_v8  ;;  %v9936_v35 = vld [vmem:[%s13119_s9 + $0x2b8] sm:$0xff] }
 0x8d8   : > { %v9944_v8 = vld [vmem:[%s13119_s9 + $0x2f8] sm:$0xff] }
 0x8da   : > { %4604 = vmatpush.bf16.msra.mxu1 %v9901_v47  ;;  %4617 = vmatpush.bf16.msrb.mxu0 %v9909_v58 }
 0x8db   : > { %4445 = vmatpush.bf16.msrb.mxu2 %v9884_v17  ;;  %4458 = vmatpush.bf16.msrb.mxu3 %v9892_v3 }
 0x8de   : > { %4605 = vmatpush.bf16.msra.mxu1 %v9900_v42  ;;  %4618 = vmatpush.bf16.msrb.mxu0 %v9908_v20  ;;  %v9919_v42 = vld [vmem:[%s13119_s9 + $0x230] sm:$0xff] }
 0x8df   : > { %4446 = vmatpush.bf16.msrb.mxu2 %v9883_v44  ;;  %4459 = vmatpush.bf16.msrb.mxu3 %v9891_v60  ;;  %v9927_v20 = vld [vmem:[%s13119_s9 + $0x270] sm:$0xff] }
 0x8e0   : > { %v9935_v60 = vld [vmem:[%s13119_s9 + $0x2b0] sm:$0xff] }
 0x8e2   : > { %4606 = vmatpush.bf16.msra.mxu1 %v9899_v53  ;;  %4619 = vmatpush.bf16.msrb.mxu0 %v9907_v36  ;;  %v9943_v53 = vld [vmem:[%s13119_s9 + $0x2f0] sm:$0xff]  ;;  %v9918_v36 = vld [vmem:[%s13119_s9 + $0x228] sm:$0xff] }
 0x8e3   : > { %4447 = vmatpush.bf16.msrb.mxu2 %v9882_v7  ;;  %4460 = vmatpush.bf16.msrb.mxu3 %v9890_v62  ;;  %v9926_v7 = vld [vmem:[%s13119_s9 + $0x268] sm:$0xff] }
 0x8e4   : > { %v9934_v62 = vld [vmem:[%s13119_s9 + $0x2a8] sm:$0xff] }
 0x8e6   : > { %4607 = vmatpush.bf16.msra.mxu1 %v9898_v18  ;;  %4620 = vmatpush.bf16.msrb.mxu0 %v9906_v49  ;;  %v9942_v18 = vld [vmem:[%s13119_s9 + $0x2e8] sm:$0xff]  ;;  %v9917_v49 = vld [vmem:[%s13119_s9 + $0x220] sm:$0xff] }
 0x8e7   : > { %4448 = vmatpush.bf16.msrb.mxu2 %v9881_v21  ;;  %4461 = vmatpush.bf16.msrb.mxu3 %v9889_v56  ;;  %v9933_v21 = vld [vmem:[%s13119_s9 + $0x2a0] sm:$0xff] }
 0x8e8   : > { %v9941_v56 = vld [vmem:[%s13119_s9 + $0x2e0] sm:$0xff] }
 0x8ea   : > { %4608 = vmatpush.bf16.msra.mxu1 %v9897_v25  ;;  %4621 = vmatpush.bf16.msrb.mxu0 %v9905_v26  ;;  %v9924_v25 = vld [vmem:[%s13119_s9 + $0x258] sm:$0xff] }
 0x94a   : > { %v3942_v57 = vpop.f32.mrf.mxu1  ;;  %v3956_v30 = vpop.f32.mrf.mxu0 }
 0x94d   : > { %v3787_v29 = vpop.f32.mrf.mxu2  ;;  %v3801_v52 = vpop.f32.mrf.mxu3 }
 0x94e   : > { %v3806_v40 = vadd.f32 %v3787_v29, %v12259_v14  ;;  %v3807_v13 = vadd.f32 %v3801_v52, %v3652_v4  ;;  %v9931_v4 = vld [vmem:[%s13119_s9 + $0x290] sm:$0xff]  ;;  %v9922_v29 = vld [vmem:[%s13119_s9 + $0x248] sm:$0xff] }
 0x94f   : > { %v9930_v52 = vld [vmem:[%s13119_s9 + $0x288] sm:$0xff] }
 0x950   : > { %v3961_v9 = vadd.f32 %v3942_v57, %v3806_v40  ;;  %v3962_v32 = vadd.f32 %v3956_v30, %v3807_v13  ;;  %v9939_v57 = vld [vmem:[%s13119_s9 + $0x2d0] sm:$0xff]  ;;  %v9914_v30 = vld [vmem:[%s13119_s9 + $0x208] sm:$0xff]  ;;  %v9921_v13 = vld [vmem:[%s13119_s9 + $0x240] sm:$0xff] }
 0x951   : > { %v9938_v40 = vld [vmem:[%s13119_s9 + $0x2c8] sm:$0xff] }
 0x952   : > { %v3971_v50 = vadd.f32 %v3967_v41, %v3961_v9  ;;  %v3972_v24 = vadd.f32 %v3968_v15, %v3962_v32  ;;  %v3944_v14 = vpop.f32.mrf.mxu1  ;;  %v3958_v11 = vpop.f32.mrf.mxu0  ;;  %v9929_v9 = vld [vmem:[%s13119_s9 + $0x280] sm:$0xff] }
 0x953   : > { %v9937_v32 = vld [vmem:[%s13119_s9 + $0x2c0] sm:$0xff] }
 0x954   : > { %v3975_v37 = vmax.f32 %v3971_v50, 0.0  ;;  %v3976_v5 = vmax.f32 %v3972_v24, 0.0  ;;  %v9976_v50 = vld [vmem:[%s13119_s9 + $0x3f8] sm:$0xff]  ;;  %v9951_v24 = vld [vmem:[%s13119_s9 + $0x330] sm:$0xff] }
 0x955   : > { %v3789_v55 = vpop.f32.mrf.mxu2  ;;  %v3803_v59 = vpop.f32.mrf.mxu3 }
 0x956   : > { %v3979_v61 = vpack.c.bf16 %v3976_v5, %v3975_v37  ;;  %v3808_v6 = vadd.f32 %v3789_v55, %v12286_v27  ;;  %v3809_v0 = vadd.f32 %v3803_v59, %v3654_v16  ;;  %v9959_v16 = vld [vmem:[%s13119_s9 + $0x370] sm:$0xff] }
 0x957   : > { %v9967_v55 = vld [vmem:[%s13119_s9 + $0x3b0] sm:$0xff] }
 0x958   : > { %v4015_v48 = vunpack.c.l.b16 %v3979_v61  ;;  %v4016_v23 = vunpack.c.h.b16 %v3979_v61  ;;  %v3963_v10 = vadd.f32 %v3944_v14, %v3808_v6  ;;  %v3964_v38 = vadd.f32 %v3958_v11, %v3809_v0  ;;  %v9975_v59 = vld [vmem:[%s13119_s9 + $0x3f0] sm:$0xff]  ;;  %v9950_v0 = vld [vmem:[%s13119_s9 + $0x328] sm:$0xff] }
 0x959   : > { %v9958_v14 = vld [vmem:[%s13119_s9 + $0x368] sm:$0xff] }
 0x95a   : > { %v12449_v34 = vpack.c.b16 %v4015_v48, %v4015_v48  ;;  %v12451_v33 = vpack.c.b16 %v4016_v23, %v4016_v23  ;;  %v3973_v27 = vadd.f32 %v3967_v41, %v3963_v10  ;;  %v3974_v63 = vadd.f32 %v3968_v15, %v3964_v38  ;;  %v9913_v41 = vld [vmem:[%s13119_s9 + $0x200] sm:$0xff]  ;;  %v9952_v15 = vld [vmem:[%s13119_s9 + $0x338] sm:$0xff]  ;;  %v9966_v11 = vld [vmem:[%s13119_s9 + $0x3a8] sm:$0xff] }
 0x95b   : > { %v9974_v48 = vld [vmem:[%s13119_s9 + $0x3e8] sm:$0xff]  ;;  %v9949_v23 = vld [vmem:[%s13119_s9 + $0x320] sm:$0xff] }
 0x95c   : > { %v3977_v47 = vmax.f32 %v3973_v27, 0.0  ;;  %v3978_v58 = vmax.f32 %v3974_v63, 0.0  ;;  %4125 = vmatmul.bf16.vlgmr.msra.gmra.mxu2 %v12449_v34  ;;  %4138 = vmatmul.bf16.vlgmr.msra.gmra.mxu3 %v12451_v33  ;;  %v12462_v17 = vshrl.u32 %v12449_v34, 16  ;;  %v12465_v3 = vshrl.u32 %v12451_v33, 16  ;;  %v9957_v10 = vld [vmem:[%s13119_s9 + $0x360] sm:$0xff]  ;;  %v9956_v27 = vld [vmem:[%s13119_s9 + $0x358] sm:$0xff] }
 0x95d   : > { %4761 = vmatpush.bf16.msra.mxu2 %v9920_v12  ;;  %4774 = vmatpush.bf16.msra.mxu3 %v9928_v51  ;;  %v4341_v26 = vrot.slane %v12449_v34, 1  ;;  %v4342_v39 = vrot.slane %v12451_v33, 1  ;;  %v4661_v37 = vrot.slane %v12449_v34, 2  ;;  %v4662_v5 = vrot.slane %v12451_v33, 2  ;;  %v9965_v38 = vld [vmem:[%s13119_s9 + $0x3a0] sm:$0xff]  ;;  %v9948_v51 = vld [vmem:[%s13119_s9 + $0x318] sm:$0xff] }
 0x95e   : > { %v12473_v44 = vpack.c.bf16 %v3978_v58, %v3977_v47  ;;  %4289 = vmatmul.bf16.vlgmr.msrb.gmra.mxu1 %v12462_v17  ;;  %4302 = vmatmul.bf16.vlgmr.msra.gmra.mxu0 %v12465_v3  ;;  %v4501_v31 = vrot.slane %v12462_v17, 1  ;;  %v4502_v54 = vrot.slane %v12465_v3, 1  ;;  %v4821_v61 = vrot.slane %v12462_v17, 2  ;;  %v9973_v12 = vld [vmem:[%s13119_s9 + $0x3e0] sm:$0xff]  ;;  %v9964_v63 = vld [vmem:[%s13119_s9 + $0x398] sm:$0xff]  ;;  %v9955_v47 = vld [vmem:[%s13119_s9 + $0x350] sm:$0xff] }
 0x95f   : > { %4921 = vmatpush.bf16.msrb.mxu1 %v9936_v35  ;;  %4934 = vmatpush.bf16.msra.mxu0 %v9944_v8  ;;  %v4822_v6 = vrot.slane %v12465_v3, 2  ;;  %v9972_v35 = vld [vmem:[%s13119_s9 + $0x3d8] sm:$0xff]  ;;  %v9947_v8 = vld [vmem:[%s13119_s9 + $0x310] sm:$0xff] }
 0x960   : > { %v9963_v58 = vld [vmem:[%s13119_s9 + $0x390] sm:$0xff] }
 0x961   : > { %4762 = vmatpush.bf16.msra.mxu2 %v9919_v42  ;;  %4775 = vmatpush.bf16.msra.mxu3 %v9927_v20  ;;  %v9971_v42 = vld [vmem:[%s13119_s9 + $0x3d0] sm:$0xff]  ;;  %v9946_v20 = vld [vmem:[%s13119_s9 + $0x308] sm:$0xff] }
 0x963   : > { %4922 = vmatpush.bf16.msrb.mxu1 %v9935_v60  ;;  %4935 = vmatpush.bf16.msra.mxu0 %v9943_v53  ;;  %v9954_v60 = vld [vmem:[%s13119_s9 + $0x348] sm:$0xff] }
 0x964   : > { %v9962_v53 = vld [vmem:[%s13119_s9 + $0x388] sm:$0xff] }
 0x965   : > { %4763 = vmatpush.bf16.msra.mxu2 %v9918_v36  ;;  %4776 = vmatpush.bf16.msra.mxu3 %v9926_v7  ;;  %v9970_v36 = vld [vmem:[%s13119_s9 + $0x3c8] sm:$0xff]  ;;  %v9945_v7 = vld [vmem:[%s13119_s9 + $0x300] sm:$0xff] }
 0x967   : > { %4923 = vmatpush.bf16.msrb.mxu1 %v9934_v62  ;;  %4936 = vmatpush.bf16.msra.mxu0 %v9942_v18  ;;  %v9953_v62 = vld [vmem:[%s13119_s9 + $0x340] sm:$0xff]  ;;  %v9984_v18 = vld [vmem:[%s13119_s9 + $0x438] sm:$0xff] }
 0x969   : > { %4764 = vmatpush.bf16.msra.mxu2 %v9917_v49  ;;  %4777 = vmatpush.bf16.msra.mxu3 %v9925_v19  ;;  %v9992_v49 = vld [vmem:[%s13119_s9 + $0x478] sm:$0xff]  ;;  %v9961_v19 = vld [vmem:[%s13119_s9 + $0x380] sm:$0xff] }
 0x96b   : > { %4924 = vmatpush.bf16.msrb.mxu1 %v9933_v21  ;;  %4937 = vmatpush.bf16.msra.mxu0 %v9941_v56  ;;  %v9969_v21 = vld [vmem:[%s13119_s9 + $0x3c0] sm:$0xff]  ;;  %v10000_v56 = vld [vmem:[%s13119_s9 + $0x4b8] sm:$0xff] }
 0x96c   : > { %4449 = vmatmul.bf16.vlgmr.msrb.gmra.mxu2 %v4341_v26  ;;  %4462 = vmatmul.bf16.vlgmr.msrb.gmra.mxu3 %v4342_v39  ;;  %v4982_v26 = vrot.slane %v12451_v33, 3  ;;  %v9983_v39 = vld [vmem:[%s13119_s9 + $0x430] sm:$0xff] }
 0x96d   : > { %4765 = vmatpush.bf16.msra.mxu2 %v9916_v22  ;;  %4778 = vmatpush.bf16.msra.mxu3 %v9924_v25  ;;  %v10008_v22 = vld [vmem:[%s13119_s9 + $0x4f8] sm:$0xff]  ;;  %v4981_v25 = vrot.slane %v12449_v34, 3  ;;  %v9999_v34 = vld [vmem:[%s13119_s9 + $0x4b0] sm:$0xff] }
 0x96e   : > { %4609 = vmatmul.bf16.vlgmr.msra.gmra.mxu1 %v4501_v31  ;;  %4622 = vmatmul.bf16.vlgmr.msrb.gmra.mxu0 %v4502_v54  ;;  %v5142_v31 = vrot.slane %v12465_v3, 3  ;;  %v10007_v33 = vld [vmem:[%s13119_s9 + $0x4f0] sm:$0xff]  ;;  %v9990_v3 = vld [vmem:[%s13119_s9 + $0x468] sm:$0xff] }
 0x96f   : > { %4925 = vmatpush.bf16.msrb.mxu1 %v9932_v46  ;;  %4938 = vmatpush.bf16.msra.mxu0 %v9940_v28  ;;  %v9991_v46 = vld [vmem:[%s13119_s9 + $0x470] sm:$0xff]  ;;  %v5141_v28 = vrot.slane %v12462_v17, 3  ;;  %v9982_v17 = vld [vmem:[%s13119_s9 + $0x428] sm:$0xff] }
 0x970   : > { %v9998_v54 = vld [vmem:[%s13119_s9 + $0x4a8] sm:$0xff] }
 0x971   : > { %4766 = vmatpush.bf16.msra.mxu2 %v9915_v1  ;;  %4779 = vmatpush.bf16.msra.mxu3 %v9923_v43  ;;  %v10006_v1 = vld [vmem:[%s13119_s9 + $0x4e8] sm:$0xff]  ;;  %v9981_v43 = vld [vmem:[%s13119_s9 + $0x420] sm:$0xff] }
 0x973   : > { %4926 = vmatpush.bf16.msrb.mxu1 %v9931_v4  ;;  %4939 = vmatpush.bf16.msra.mxu0 %v9939_v57  ;;  %v9989_v4 = vld [vmem:[%s13119_s9 + $0x460] sm:$0xff] }
 0x974   : > { %v9997_v57 = vld [vmem:[%s13119_s9 + $0x4a0] sm:$0xff] }
 0x975   : > { %4767 = vmatpush.bf16.msra.mxu2 %v9914_v30  ;;  %4780 = vmatpush.bf16.msra.mxu3 %v9922_v29  ;;  %v10005_v30 = vld [vmem:[%s13119_s9 + $0x4e0] sm:$0xff]  ;;  %v9980_v29 = vld [vmem:[%s13119_s9 + $0x418] sm:$0xff] }
 0x977   : > { %4927 = vmatpush.bf16.msrb.mxu1 %v9930_v52  ;;  %4940 = vmatpush.bf16.msra.mxu0 %v9938_v40  ;;  %v9988_v52 = vld [vmem:[%s13119_s9 + $0x458] sm:$0xff] }
 0x978   : > { %v9996_v40 = vld [vmem:[%s13119_s9 + $0x498] sm:$0xff] }
 0x979   : > { %4768 = vmatpush.bf16.msra.mxu2 %v9913_v41  ;;  %4781 = vmatpush.bf16.msra.mxu3 %v9921_v13  ;;  %v10004_v41 = vld [vmem:[%s13119_s9 + $0x4d8] sm:$0xff]  ;;  %v9979_v13 = vld [vmem:[%s13119_s9 + $0x410] sm:$0xff] }
 0x97b   : > { %4928 = vmatpush.bf16.msrb.mxu1 %v9929_v9  ;;  %4941 = vmatpush.bf16.msra.mxu0 %v9937_v32  ;;  %v10003_v9 = vld [vmem:[%s13119_s9 + $0x4d0] sm:$0xff]  ;;  %v9978_v32 = vld [vmem:[%s13119_s9 + $0x408] sm:$0xff] }
 0x97c   : > { %4769 = vmatmul.bf16.vlgmr.msra.gmra.mxu2 %v4661_v37  ;;  %4782 = vmatmul.bf16.vlgmr.msra.gmra.mxu3 %v4662_v5  ;;  %v5303_v37 = vunpack.c.h.b16 %v12473_v44  ;;  %v9977_v5 = vld [vmem:[%s13119_s9 + $0x400] sm:$0xff] }
 0x97d   : > { %5081 = vmatpush.bf16.msrb.mxu2 %v9952_v15  ;;  %5094 = vmatpush.bf16.msrb.mxu3 %v9960_v2  ;;  %v9987_v15 = vld [vmem:[%s13119_s9 + $0x450] sm:$0xff] }
 0x97e   : > { %4929 = vmatmul.bf16.vlgmr.msrb.gmra.mxu1 %v4821_v61  ;;  %4942 = vmatmul.bf16.vlgmr.msra.gmra.mxu0 %v4822_v6  ;;  %v9995_v2 = vld [vmem:[%s13119_s9 + $0x490] sm:$0xff]  ;;  %v10024_v61 = vld [vmem:[%s13119_s9 + $0x578] sm:$0xff]  ;;  %v10001_v6 = vld [vmem:[%s13119_s9 + $0x4c0] sm:$0xff] }
 0x97f   : > { %5241 = vmatpush.bf16.msra.mxu1 %v9968_v45  ;;  %5254 = vmatpush.bf16.msrb.mxu0 %v9976_v50  ;;  %v9986_v45 = vld [vmem:[%s13119_s9 + $0x448] sm:$0xff] }
 0x980   : > { %v9994_v50 = vld [vmem:[%s13119_s9 + $0x488] sm:$0xff] }
 0x981   : > { %5082 = vmatpush.bf16.msrb.mxu2 %v9951_v24  ;;  %5095 = vmatpush.bf16.msrb.mxu3 %v9959_v16  ;;  %v10002_v24 = vld [vmem:[%s13119_s9 + $0x4c8] sm:$0xff]  ;;  %v5302_v16 = vunpack.c.l.b16 %v12473_v44  ;;  %v9993_v44 = vld [vmem:[%s13119_s9 + $0x480] sm:$0xff] }
 0x983   : > { %5242 = vmatpush.bf16.msra.mxu1 %v9967_v55  ;;  %5255 = vmatpush.bf16.msrb.mxu0 %v9975_v59  ;;  %v9985_v55 = vld [vmem:[%s13119_s9 + $0x440] sm:$0xff]  ;;  %v10016_v59 = vld [vmem:[%s13119_s9 + $0x538] sm:$0xff] }
 0x985   : > { %5083 = vmatpush.bf16.msrb.mxu2 %v9950_v0  ;;  %5096 = vmatpush.bf16.msrb.mxu3 %v9958_v14  ;;  %v12767_v0 = vpack.c.b16 %v5302_v16, %v5302_v16  ;;  %v12769_v14 = vpack.c.b16 %v5303_v37, %v5303_v37  ;;  %v10069_v16 = vld [vmem:[%s13119_s9 + $0x6e0] sm:$0xff] }
 0x987   : > { %5243 = vmatpush.bf16.msra.mxu1 %v9966_v11  ;;  %5256 = vmatpush.bf16.msrb.mxu0 %v9974_v48  ;;  %v10032_v11 = vld [vmem:[%s13119_s9 + $0x5b8] sm:$0xff] }
 0x988   : > { %v10040_v48 = vld [vmem:[%s13119_s9 + $0x5f8] sm:$0xff] }
 0x989   : > { %5084 = vmatpush.bf16.msrb.mxu2 %v9949_v23  ;;  %5097 = vmatpush.bf16.msrb.mxu3 %v9957_v10  ;;  %v10015_v23 = vld [vmem:[%s13119_s9 + $0x530] sm:$0xff] }
 0x98a   : > { %v10023_v10 = vld [vmem:[%s13119_s9 + $0x570] sm:$0xff] }
 0x98b   : > { %5244 = vmatpush.bf16.msra.mxu1 %v9965_v38  ;;  %5257 = vmatpush.bf16.msrb.mxu0 %v9973_v12  ;;  %v12786_v38 = vshrl.u32 %v12767_v0, 16  ;;  %v12789_v12 = vshrl.u32 %v12769_v14, 16 }
 0x98d   : > { %5085 = vmatpush.bf16.msrb.mxu2 %v9948_v51  ;;  %5098 = vmatpush.bf16.msrb.mxu3 %v9956_v27  ;;  %v10031_v51 = vld [vmem:[%s13119_s9 + $0x5b0] sm:$0xff] }
 0x98e   : > { %v10039_v27 = vld [vmem:[%s13119_s9 + $0x5f0] sm:$0xff] }
 0x98f   : > { %5245 = vmatpush.bf16.msra.mxu1 %v9964_v63  ;;  %5258 = vmatpush.bf16.msrb.mxu0 %v9972_v35  ;;  %v10014_v63 = vld [vmem:[%s13119_s9 + $0x528] sm:$0xff] }
 0x990   : > { %v10022_v35 = vld [vmem:[%s13119_s9 + $0x568] sm:$0xff] }
 0x991   : > { %5086 = vmatpush.bf16.msrb.mxu2 %v9947_v8  ;;  %5099 = vmatpush.bf16.msrb.mxu3 %v9955_v47  ;;  %v10030_v8 = vld [vmem:[%s13119_s9 + $0x5a8] sm:$0xff] }
 0x992   : > { %v10038_v47 = vld [vmem:[%s13119_s9 + $0x5e8] sm:$0xff] }
 0x993   : > { %5246 = vmatpush.bf16.msra.mxu1 %v9963_v58  ;;  %5259 = vmatpush.bf16.msrb.mxu0 %v9971_v42  ;;  %v10013_v58 = vld [vmem:[%s13119_s9 + $0x520] sm:$0xff] }
 0x994   : > { %v10021_v42 = vld [vmem:[%s13119_s9 + $0x560] sm:$0xff] }
 0x995   : > { %5087 = vmatpush.bf16.msrb.mxu2 %v9946_v20  ;;  %5100 = vmatpush.bf16.msrb.mxu3 %v9954_v60  ;;  %v10029_v20 = vld [vmem:[%s13119_s9 + $0x5a0] sm:$0xff] }
 0x996   : > { %v10037_v60 = vld [vmem:[%s13119_s9 + $0x5e0] sm:$0xff] }
 0x997   : > { %5247 = vmatpush.bf16.msra.mxu1 %v9962_v53  ;;  %5260 = vmatpush.bf16.msrb.mxu0 %v9970_v36  ;;  %v10012_v53 = vld [vmem:[%s13119_s9 + $0x518] sm:$0xff] }
 0x998   : > { %v10020_v36 = vld [vmem:[%s13119_s9 + $0x558] sm:$0xff] }
 0x999   : > { %5088 = vmatpush.bf16.msrb.mxu2 %v9945_v7  ;;  %5101 = vmatpush.bf16.msrb.mxu3 %v9953_v62  ;;  %v10028_v7 = vld [vmem:[%s13119_s9 + $0x598] sm:$0xff] }
 0x99a   : > { %v10036_v62 = vld [vmem:[%s13119_s9 + $0x5d8] sm:$0xff] }
 0x99b   : > { %5248 = vmatpush.bf16.msra.mxu1 %v9961_v19  ;;  %5261 = vmatpush.bf16.msrb.mxu0 %v9969_v21  ;;  %v10027_v19 = vld [vmem:[%s13119_s9 + $0x590] sm:$0xff] }
 0x99c   : > { %5089 = vmatmul.bf16.vlgmr.msrb.gmra.mxu2 %v4981_v25  ;;  %5102 = vmatmul.bf16.vlgmr.msrb.gmra.mxu3 %v4982_v26  ;;  %v10035_v21 = vld [vmem:[%s13119_s9 + $0x5d0] sm:$0xff]  ;;  %v10026_v25 = vld [vmem:[%s13119_s9 + $0x588] sm:$0xff] }
 0x99d   : > { %5404 = vmatpush.bf16.msra.mxu2 %v9984_v18  ;;  %5417 = vmatpush.bf16.msra.mxu3 %v9992_v49  ;;  %v10011_v18 = vld [vmem:[%s13119_s9 + $0x510] sm:$0xff]  ;;  %v10034_v26 = vld [vmem:[%s13119_s9 + $0x5c8] sm:$0xff] }
 0x99e   : > { %5249 = vmatmul.bf16.vlgmr.msra.gmra.mxu1 %v5141_v28  ;;  %5262 = vmatmul.bf16.vlgmr.msrb.gmra.mxu0 %v5142_v31  ;;  %v10019_v49 = vld [vmem:[%s13119_s9 + $0x550] sm:$0xff]  ;;  %v10048_v28 = vld [vmem:[%s13119_s9 + $0x638] sm:$0xff] }
 0x99f   : > { %5568 = vmatpush.bf16.msrb.mxu1 %v10000_v56  ;;  %5581 = vmatpush.bf16.msra.mxu0 %v10008_v22  ;;  %v10010_v56 = vld [vmem:[%s13119_s9 + $0x508] sm:$0xff]  ;;  %v10056_v31 = vld [vmem:[%s13119_s9 + $0x678] sm:$0xff] }
 0x9a0   : > { %v10018_v22 = vld [vmem:[%s13119_s9 + $0x548] sm:$0xff] }
 0x9a1   : > { %5405 = vmatpush.bf16.msra.mxu2 %v9983_v39  ;;  %5418 = vmatpush.bf16.msra.mxu3 %v9991_v46  ;;  %v10009_v39 = vld [vmem:[%s13119_s9 + $0x500] sm:$0xff] }
 0x9a2   : > { %v10017_v46 = vld [vmem:[%s13119_s9 + $0x540] sm:$0xff] }
 0x9a3   : > { %5569 = vmatpush.bf16.msrb.mxu1 %v9999_v34  ;;  %5582 = vmatpush.bf16.msra.mxu0 %v10007_v33  ;;  %v10025_v34 = vld [vmem:[%s13119_s9 + $0x580] sm:$0xff] }
 0x9a4   : > { %v10033_v33 = vld [vmem:[%s13119_s9 + $0x5c0] sm:$0xff] }
 0x9a5   : > { %5406 = vmatpush.bf16.msra.mxu2 %v9982_v17  ;;  %5419 = vmatpush.bf16.msra.mxu3 %v9990_v3  ;;  %v10064_v17 = vld [vmem:[%s13119_s9 + $0x6b8] sm:$0xff] }
 0x9a6   : > { %v10072_v3 = vld [vmem:[%s13119_s9 + $0x6f8] sm:$0xff] }
 0x9a7   : > { %5570 = vmatpush.bf16.msrb.mxu1 %v9998_v54  ;;  %5583 = vmatpush.bf16.msra.mxu0 %v10006_v1  ;;  %v5628_v54 = vrot.slane %v12767_v0, 1  ;;  %v5629_v1 = vrot.slane %v12769_v14, 1 }
 0x9a9   : > { %5407 = vmatpush.bf16.msra.mxu2 %v9981_v43  ;;  %5420 = vmatpush.bf16.msra.mxu3 %v9989_v4  ;;  %v10047_v43 = vld [vmem:[%s13119_s9 + $0x630] sm:$0xff] }
 0x9aa   : > { %v10055_v4 = vld [vmem:[%s13119_s9 + $0x670] sm:$0xff] }
 0x9ab   : > { %5571 = vmatpush.bf16.msrb.mxu1 %v9997_v57  ;;  %5584 = vmatpush.bf16.msra.mxu0 %v10005_v30  ;;  %v5788_v57 = vrot.slane %v12786_v38, 1  ;;  %v5789_v30 = vrot.slane %v12789_v12, 1 }
 0x9ad   : > { %5408 = vmatpush.bf16.msra.mxu2 %v9980_v29  ;;  %5421 = vmatpush.bf16.msra.mxu3 %v9988_v52  ;;  %v10063_v29 = vld [vmem:[%s13119_s9 + $0x6b0] sm:$0xff] }
 0x9ae   : > { %v10071_v52 = vld [vmem:[%s13119_s9 + $0x6f0] sm:$0xff] }
 0x9af   : > { %5572 = vmatpush.bf16.msrb.mxu1 %v9996_v40  ;;  %5585 = vmatpush.bf16.msra.mxu0 %v10004_v41  ;;  %v10046_v40 = vld [vmem:[%s13119_s9 + $0x628] sm:$0xff] }
 0x9b0   : > { %v10054_v41 = vld [vmem:[%s13119_s9 + $0x668] sm:$0xff] }
 0x9b1   : > { %5409 = vmatpush.bf16.msra.mxu2 %v9979_v13  ;;  %5422 = vmatpush.bf16.msra.mxu3 %v9987_v15  ;;  %v10062_v13 = vld [vmem:[%s13119_s9 + $0x6a8] sm:$0xff] }
 0x9b2   : > { %v10070_v15 = vld [vmem:[%s13119_s9 + $0x6e8] sm:$0xff] }
 0x9b3   : > { %5573 = vmatpush.bf16.msrb.mxu1 %v9995_v2  ;;  %5586 = vmatpush.bf16.msra.mxu0 %v10003_v9 }
 0x9b5   : > { %5410 = vmatpush.bf16.msra.mxu2 %v9978_v32  ;;  %5423 = vmatpush.bf16.msra.mxu3 %v9986_v45  ;;  %v10045_v45 = vld [vmem:[%s13119_s9 + $0x620] sm:$0xff] }
 0x9b7   : > { %5574 = vmatpush.bf16.msrb.mxu1 %v9994_v50  ;;  %5587 = vmatpush.bf16.msra.mxu0 %v10002_v24  ;;  %v10053_v50 = vld [vmem:[%s13119_s9 + $0x660] sm:$0xff] }
 0x9b8   : > { %v10061_v24 = vld [vmem:[%s13119_s9 + $0x6a0] sm:$0xff] }
 0x9b9   : > { %5411 = vmatpush.bf16.msra.mxu2 %v9977_v5  ;;  %5424 = vmatpush.bf16.msra.mxu3 %v9985_v55  ;;  %v3981_v5 = vld [vmem:[%s13120_s10] sm:$0x1] }
 0x9bb   : > { %5575 = vmatpush.bf16.msrb.mxu1 %v9993_v44  ;;  %5588 = vmatpush.bf16.msra.mxu0 %v10001_v6  ;;  %v10052_v44 = vld [vmem:[%s13119_s9 + $0x658] sm:$0xff] }
 0x9bc   : > { %5412 = vmatmul.bf16.vlgmr.msra.gmra.mxu2 %v12767_v0  ;;  %5425 = vmatmul.bf16.vlgmr.msra.gmra.mxu3 %v12769_v14 }
 0x9bd   : > { %5728 = vmatpush.bf16.msrb.mxu2 %v10016_v59  ;;  %5741 = vmatpush.bf16.msrb.mxu3 %v10024_v61  ;;  %v10044_v61 = vld [vmem:[%s13119_s9 + $0x618] sm:$0xff] }
 0x9be   : > { %5576 = vmatmul.bf16.vlgmr.msrb.gmra.mxu1 %v12786_v38  ;;  %5589 = vmatmul.bf16.vlgmr.msra.gmra.mxu0 %v12789_v12 }
 0x9bf   : > { %5888 = vmatpush.bf16.msra.mxu1 %v10032_v11  ;;  %5901 = vmatpush.bf16.msrb.mxu0 %v10040_v48  ;;  %v10060_v11 = vld [vmem:[%s13119_s9 + $0x698] sm:$0xff] }
 0x9c0   : > { %v10068_v48 = vld [vmem:[%s13119_s9 + $0x6d8] sm:$0xff] }
 0x9c1   : > { %5729 = vmatpush.bf16.msrb.mxu2 %v10015_v23  ;;  %5742 = vmatpush.bf16.msrb.mxu3 %v10023_v10 }
 0x9c3   : > { %5889 = vmatpush.bf16.msra.mxu1 %v10031_v51  ;;  %5902 = vmatpush.bf16.msrb.mxu0 %v10039_v27  ;;  %v10043_v51 = vld [vmem:[%s13119_s9 + $0x610] sm:$0xff] }
 0x9c4   : > { %v10051_v27 = vld [vmem:[%s13119_s9 + $0x650] sm:$0xff] }
 0x9c5   : > { %5730 = vmatpush.bf16.msrb.mxu2 %v10014_v63  ;;  %5743 = vmatpush.bf16.msrb.mxu3 %v10022_v35  ;;  %v10059_v35 = vld [vmem:[%s13119_s9 + $0x690] sm:$0xff] }
 0x9c7   : > { %5890 = vmatpush.bf16.msra.mxu1 %v10030_v8  ;;  %5903 = vmatpush.bf16.msrb.mxu0 %v10038_v47  ;;  %v10067_v8 = vld [vmem:[%s13119_s9 + $0x6d0] sm:$0xff] }
 0x9c9   : > { %5731 = vmatpush.bf16.msrb.mxu2 %v10013_v58  ;;  %5744 = vmatpush.bf16.msrb.mxu3 %v10021_v42  ;;  %v10042_v42 = vld [vmem:[%s13119_s9 + $0x608] sm:$0xff] }
 0x9cb   : > { %5891 = vmatpush.bf16.msra.mxu1 %v10029_v20  ;;  %5904 = vmatpush.bf16.msrb.mxu0 %v10037_v60  ;;  %v10050_v20 = vld [vmem:[%s13119_s9 + $0x648] sm:$0xff] }
 0x9cc   : > { %v10058_v60 = vld [vmem:[%s13119_s9 + $0x688] sm:$0xff] }
 0x9cd   : > { %5732 = vmatpush.bf16.msrb.mxu2 %v10012_v53  ;;  %5745 = vmatpush.bf16.msrb.mxu3 %v10020_v36  ;;  %v10066_v53 = vld [vmem:[%s13119_s9 + $0x6c8] sm:$0xff] }
 0x9cf   : > { %5892 = vmatpush.bf16.msra.mxu1 %v10028_v7  ;;  %5905 = vmatpush.bf16.msrb.mxu0 %v10036_v62 }
 0x9d1   : > { %5733 = vmatpush.bf16.msrb.mxu2 %v10011_v18  ;;  %5746 = vmatpush.bf16.msrb.mxu3 %v10019_v49  ;;  %v10041_v18 = vld [vmem:[%s13119_s9 + $0x600] sm:$0xff] }
 0x9d2   : > { %v10049_v49 = vld [vmem:[%s13119_s9 + $0x640] sm:$0xff] }
 0x9d3   : > { %5893 = vmatpush.bf16.msra.mxu1 %v10027_v19  ;;  %5906 = vmatpush.bf16.msrb.mxu0 %v10035_v21  ;;  %v10080_v19 = vld [vmem:[%s13119_s9 + $0x738] sm:$0xff] }
 0x9d4   : > { %v10088_v21 = vld [vmem:[%s13119_s9 + $0x778] sm:$0xff] }
 0x9d5   : > { %5734 = vmatpush.bf16.msrb.mxu2 %v10010_v56  ;;  %5747 = vmatpush.bf16.msrb.mxu3 %v10018_v22  ;;  %v10057_v56 = vld [vmem:[%s13119_s9 + $0x680] sm:$0xff] }
 0x9d6   : > { %v10065_v22 = vld [vmem:[%s13119_s9 + $0x6c0] sm:$0xff] }
 0x9d7   : > { %5894 = vmatpush.bf16.msra.mxu1 %v10026_v25  ;;  %5907 = vmatpush.bf16.msrb.mxu0 %v10034_v26 }
 0x9d9   : > { %5735 = vmatpush.bf16.msrb.mxu2 %v10009_v39  ;;  %5748 = vmatpush.bf16.msrb.mxu3 %v10017_v46  ;;  %v10096_v46 = vld [vmem:[%s13119_s9 + $0x7b8] sm:$0xff] }
 0x9db   : > { %5895 = vmatpush.bf16.msra.mxu1 %v10025_v34  ;;  %5908 = vmatpush.bf16.msrb.mxu0 %v10033_v33  ;;  %v4290_v2 = vpop.f32.mrf.mxu1  ;;  %v4303_v9 = vpop.f32.mrf.mxu0  ;;  %v5949_v34 = vrot.slane %v12769_v14, 2 }
 0x9dc   : > { %5736 = vmatmul.bf16.vlgmr.msrb.gmra.mxu2 %v5628_v54  ;;  %5749 = vmatmul.bf16.vlgmr.msrb.gmra.mxu3 %v5629_v1  ;;  %v4304_v32 = vadd.f32 %v4303_v9, %v4290_v2  ;;  %v6108_v54 = vrot.slane %v12786_v38, 2  ;;  %v6109_v1 = vrot.slane %v12789_v12, 2  ;;  %v10102_v2 = vld [vmem:[%s13119_s9 + $0x7e8] sm:$0xff]  ;;  %v10077_v9 = vld [vmem:[%s13119_s9 + $0x720] sm:$0xff] }
 0x9dd   : > { %6048 = vmatpush.bf16.msra.mxu2 %v10048_v28  ;;  %6061 = vmatpush.bf16.msra.mxu3 %v10056_v31  ;;  %v10104_v28 = vld [vmem:[%s13119_s9 + $0x7f8] sm:$0xff]  ;;  %v5948_v31 = vrot.slane %v12767_v0, 2 }
 0x9de   : > { %5896 = vmatmul.bf16.vlgmr.msra.gmra.mxu1 %v5788_v57  ;;  %5909 = vmatmul.bf16.vlgmr.msrb.gmra.mxu0 %v5789_v30  ;;  %v10095_v57 = vld [vmem:[%s13119_s9 + $0x7b0] sm:$0xff] }
 0x9df   : > { %6208 = vmatpush.bf16.msrb.mxu1 %v10064_v17  ;;  %6221 = vmatpush.bf16.msra.mxu0 %v10072_v3  ;;  %v4126_v37 = vpop.f32.mrf.mxu2  ;;  %v4139_v55 = vpop.f32.mrf.mxu3  ;;  %v10079_v17 = vld [vmem:[%s13119_s9 + $0x730] sm:$0xff] }
 0x9e0   : > { %v4140_v59 = vadd.f32 %v4139_v55, %v4126_v37  ;;  %v10087_v3 = vld [vmem:[%s13119_s9 + $0x770] sm:$0xff]  ;;  %v10084_v55 = vld [vmem:[%s13119_s9 + $0x758] sm:$0xff] }
 0x9e1   : > { %6049 = vmatpush.bf16.msra.mxu2 %v10047_v43  ;;  %6062 = vmatpush.bf16.msra.mxu3 %v10055_v4  ;;  %v10103_v30 = vld [vmem:[%s13119_s9 + $0x7f0] sm:$0xff] }
 0x9e2   : > { %v4143_v6 = vadd.f32 %v4140_v59, %v3981_v5  ;;  %v10076_v5 = vld [vmem:[%s13119_s9 + $0x718] sm:$0xff] }
 0x9e3   : > { %6209 = vmatpush.bf16.msrb.mxu1 %v10063_v29  ;;  %6222 = vmatpush.bf16.msra.mxu0 %v10071_v52  ;;  %v4292_v23 = vpop.f32.mrf.mxu1  ;;  %v4305_v10 = vpop.f32.mrf.mxu0  ;;  %v10078_v52 = vld [vmem:[%s13119_s9 + $0x728] sm:$0xff] }
 0x9e4   : > { %v4307_v63 = vadd.f32 %v4304_v32, %v4143_v6  ;;  %v10085_v32 = vld [vmem:[%s13119_s9 + $0x760] sm:$0xff]  ;;  %v10100_v6 = vld [vmem:[%s13119_s9 + $0x7d8] sm:$0xff]  ;;  %v10083_v23 = vld [vmem:[%s13119_s9 + $0x750] sm:$0xff] }
 0x9e5   : > { %6050 = vmatpush.bf16.msra.mxu2 %v10046_v40  ;;  %6063 = vmatpush.bf16.msra.mxu3 %v10054_v41  ;;  %v10086_v40 = vld [vmem:[%s13119_s9 + $0x768] sm:$0xff] }
 0x9e7   : > { %6210 = vmatpush.bf16.msrb.mxu1 %v10062_v13  ;;  %6223 = vmatpush.bf16.msra.mxu0 %v10070_v15  ;;  %v4128_v47 = vpop.f32.mrf.mxu2  ;;  %v4141_v58 = vpop.f32.mrf.mxu3  ;;  %v10094_v15 = vld [vmem:[%s13119_s9 + $0x7a8] sm:$0xff] }
 0x9e8   : > { %v10074_v47 = vld [vmem:[%s13119_s9 + $0x708] sm:$0xff] }
 0x9e9   : > { %6051 = vmatpush.bf16.msra.mxu2 %v10045_v45  ;;  %6064 = vmatpush.bf16.msra.mxu3 %v10053_v50  ;;  %v10082_v58 = vld [vmem:[%s13119_s9 + $0x748] sm:$0xff] }
 0x9eb   : > { %6211 = vmatpush.bf16.msrb.mxu1 %v10061_v24  ;;  %6224 = vmatpush.bf16.msra.mxu0 %v10069_v16  ;;  %v4610_v36 = vpop.f32.mrf.mxu1  ;;  %v4623_v7 = vpop.f32.mrf.mxu0  ;;  %v10093_v24 = vld [vmem:[%s13119_s9 + $0x7a0] sm:$0xff] }
 0x9ec   : > { %v4624_v62 = vadd.f32 %v4623_v7, %v4610_v36  ;;  %v10101_v16 = vld [vmem:[%s13119_s9 + $0x7e0] sm:$0xff] }
 0x9ed   : > { %6052 = vmatpush.bf16.msra.mxu2 %v10044_v61  ;;  %6065 = vmatpush.bf16.msra.mxu3 %v10052_v44  ;;  %v10092_v44 = vld [vmem:[%s13119_s9 + $0x798] sm:$0xff]  ;;  %v10073_v36 = vld [vmem:[%s13119_s9 + $0x700] sm:$0xff] }
 0x9ee   : > { %v10081_v7 = vld [vmem:[%s13119_s9 + $0x740] sm:$0xff] }
 0x9ef   : > { %6212 = vmatpush.bf16.msrb.mxu1 %v10060_v11  ;;  %6225 = vmatpush.bf16.msra.mxu0 %v10068_v48  ;;  %v4450_v25 = vpop.f32.mrf.mxu2  ;;  %v4463_v26 = vpop.f32.mrf.mxu3  ;;  %v10075_v48 = vld [vmem:[%s13119_s9 + $0x710] sm:$0xff] }
 0x9f0   : > { %v4464_v39 = vadd.f32 %v4463_v26, %v4450_v25 }
 0x9f1   : > { %6053 = vmatpush.bf16.msra.mxu2 %v10043_v51  ;;  %6066 = vmatpush.bf16.msra.mxu3 %v10051_v27 }
 0x9f2   : > { %v4467_v33 = vadd.f32 %v4464_v39, %v4307_v63  ;;  %v10091_v63 = vld [vmem:[%s13119_s9 + $0x790] sm:$0xff] }
 0x9f3   : > { %6213 = vmatpush.bf16.msrb.mxu1 %v10059_v35  ;;  %6226 = vmatpush.bf16.msra.mxu0 %v10067_v8  ;;  %v4612_v43 = vpop.f32.mrf.mxu1  ;;  %v4625_v4 = vpop.f32.mrf.mxu0  ;;  %v10099_v35 = vld [vmem:[%s13119_s9 + $0x7d0] sm:$0xff] }
 0x9f4   : > { %v4627_v29 = vadd.f32 %v4624_v62, %v4467_v33  ;;  %v10089_v62 = vld [vmem:[%s13119_s9 + $0x780] sm:$0xff] }
 0x9f5   : > { %6054 = vmatpush.bf16.msra.mxu2 %v10042_v42  ;;  %6067 = vmatpush.bf16.msra.mxu3 %v10050_v20 }
 0x9f7   : > { %6214 = vmatpush.bf16.msrb.mxu1 %v10058_v60  ;;  %6227 = vmatpush.bf16.msra.mxu0 %v10066_v53  ;;  %v4452_v41 = vpop.f32.mrf.mxu2  ;;  %v4465_v13 = vpop.f32.mrf.mxu3  ;;  %v10090_v60 = vld [vmem:[%s13119_s9 + $0x788] sm:$0xff] }
 0x9f8   : > { %v10098_v53 = vld [vmem:[%s13119_s9 + $0x7c8] sm:$0xff] }
 0x9f9   : > { %6055 = vmatpush.bf16.msra.mxu2 %v10041_v18  ;;  %6068 = vmatpush.bf16.msra.mxu3 %v10049_v49  ;;  %v10097_v18 = vld [vmem:[%s13119_s9 + $0x7c0] sm:$0xff]  ;;  %v6268_v49 = vrot.slane %v12767_v0, 3 }
 0x9fb   : > { %6215 = vmatpush.bf16.msrb.mxu1 %v10057_v56  ;;  %6228 = vmatpush.bf16.msra.mxu0 %v10065_v22  ;;  %v4930_v45 = vpop.f32.mrf.mxu1  ;;  %v4943_v50 = vpop.f32.mrf.mxu0  ;;  %v6429_v56 = vrot.slane %v12789_v12, 3 }
 0x9fc   : > { %6056 = vmatmul.bf16.vlgmr.msra.gmra.mxu2 %v5948_v31  ;;  %6069 = vmatmul.bf16.vlgmr.msra.gmra.mxu3 %v5949_v34  ;;  %v4944_v37 = vadd.f32 %v4943_v50, %v4930_v45 }
 0x9fd   : > { %6368 = vmatpush.bf16.msrb.mxu2 %v10080_v19  ;;  %6381 = vmatpush.bf16.msrb.mxu3 %v10088_v21  ;;  %v6269_v19 = vrot.slane %v12769_v14, 3  ;;  %v6428_v21 = vrot.slane %v12786_v38, 3 }
 0x9fe   : > { %6216 = vmatmul.bf16.vlgmr.msrb.gmra.mxu1 %v6108_v54  ;;  %6229 = vmatmul.bf16.vlgmr.msra.gmra.mxu0 %v6109_v1 }
 0x9ff   : > { %6528 = vmatpush.bf16.msra.mxu1 %v10096_v46  ;;  %6541 = vmatpush.bf16.msrb.mxu0 %v10104_v28  ;;  %v4770_v59 = vpop.f32.mrf.mxu2  ;;  %v4783_v61 = vpop.f32.mrf.mxu3 }
 0xa00   : > { %v4784_v11 = vadd.f32 %v4783_v61, %v4770_v59 }
 0xa01   : > { %6369 = vmatpush.bf16.msrb.mxu2 %v10079_v17  ;;  %6382 = vmatpush.bf16.msrb.mxu3 %v10087_v3 }
 0xa02   : > { %v4787_v10 = vadd.f32 %v4784_v11, %v4627_v29 }
 0xa03   : > { %6529 = vmatpush.bf16.msra.mxu1 %v10095_v57  ;;  %6542 = vmatpush.bf16.msrb.mxu0 %v10103_v30  ;;  %v4932_v51 = vpop.f32.mrf.mxu1  ;;  %v4945_v27 = vpop.f32.mrf.mxu0 }
 0xa04   : > { %v4947_v8 = vadd.f32 %v4944_v37, %v4787_v10 }
 0xa05   : > { %6370 = vmatpush.bf16.msrb.mxu2 %v10078_v52  ;;  %6383 = vmatpush.bf16.msrb.mxu3 %v10086_v40 }
 0xa07   : > { %6530 = vmatpush.bf16.msra.mxu1 %v10094_v15  ;;  %6543 = vmatpush.bf16.msrb.mxu0 %v10102_v2  ;;  %v4772_v42 = vpop.f32.mrf.mxu2  ;;  %v4785_v20 = vpop.f32.mrf.mxu3 }
 0xa09   : > { %6371 = vmatpush.bf16.msrb.mxu2 %v10077_v9  ;;  %6384 = vmatpush.bf16.msrb.mxu3 %v10085_v32 }
 0xa0b   : > { %6531 = vmatpush.bf16.msra.mxu1 %v10093_v24  ;;  %6544 = vmatpush.bf16.msrb.mxu0 %v10101_v16 }
 0xa0d   : > { %6372 = vmatpush.bf16.msrb.mxu2 %v10076_v5  ;;  %6385 = vmatpush.bf16.msrb.mxu3 %v10084_v55 }
 0xa0f   : > { %6532 = vmatpush.bf16.msra.mxu1 %v10092_v44  ;;  %6545 = vmatpush.bf16.msrb.mxu0 %v10100_v6 }
 0xa11   : > { %6373 = vmatpush.bf16.msrb.mxu2 %v10075_v48  ;;  %6386 = vmatpush.bf16.msrb.mxu3 %v10083_v23 }
 0xa13   : > { %6533 = vmatpush.bf16.msra.mxu1 %v10091_v63  ;;  %6546 = vmatpush.bf16.msrb.mxu0 %v10099_v35 }
 0xa15   : > { %6374 = vmatpush.bf16.msrb.mxu2 %v10074_v47  ;;  %6387 = vmatpush.bf16.msrb.mxu3 %v10082_v58 }
 0xa17   : > { %6534 = vmatpush.bf16.msra.mxu1 %v10090_v60  ;;  %6547 = vmatpush.bf16.msrb.mxu0 %v10098_v53 }
 0xa19   : > { %6375 = vmatpush.bf16.msrb.mxu2 %v10073_v36  ;;  %6388 = vmatpush.bf16.msrb.mxu3 %v10081_v7 }
 0xa1b   : > { %6535 = vmatpush.bf16.msra.mxu1 %v10089_v62  ;;  %6548 = vmatpush.bf16.msrb.mxu0 %v10097_v18  ;;  %v5250_v22 = vpop.f32.mrf.mxu1  ;;  %v5263_v25 = vpop.f32.mrf.mxu0 }
 0xa1c   : > { %6376 = vmatmul.bf16.vlgmr.msrb.gmra.mxu2 %v6268_v49  ;;  %6389 = vmatmul.bf16.vlgmr.msrb.gmra.mxu3 %v6269_v19  ;;  %v5264_v26 = vadd.f32 %v5263_v25, %v5250_v22 }
 0xa1e   : > { %6536 = vmatmul.bf16.vlgmr.msra.gmra.mxu1 %v6428_v21  ;;  %6549 = vmatmul.bf16.vlgmr.msrb.gmra.mxu0 %v6429_v56 }
 0xa1f   : > { %v5090_v39 = vpop.f32.mrf.mxu2  ;;  %v5103_v46 = vpop.f32.mrf.mxu3 }
 0xa20   : > { %v5104_v28 = vadd.f32 %v5103_v46, %v5090_v39 }
 0xa22   : > { %v5107_v31 = vadd.f32 %v5104_v28, %v4947_v8 }
 0xa23   : > { %v5252_v0 = vpop.f32.mrf.mxu1  ;;  %v5265_v34 = vpop.f32.mrf.mxu0 }
 0xa24   : > { %v5267_v14 = vadd.f32 %v5264_v26, %v5107_v31 }
 0xa27   : > { %v5092_v33 = vpop.f32.mrf.mxu2  ;;  %v5105_v17 = vpop.f32.mrf.mxu3 }
 0xa3b   : > { %v5577_v3 = vpop.f32.mrf.mxu1  ;;  %v5590_v54 = vpop.f32.mrf.mxu0 }
 0xa3c   : > { %v5591_v1 = vadd.f32 %v5590_v54, %v5577_v3 }
 0xa3f   : > { %v5413_v38 = vpop.f32.mrf.mxu2  ;;  %v5426_v43 = vpop.f32.mrf.mxu3 }
 0xa40   : > { %v5427_v12 = vadd.f32 %v5426_v43, %v5413_v38 }
 0xa42   : > { %v5430_v4 = vadd.f32 %v5427_v12, %v5267_v14 }
 0xa43   : > { %v5579_v57 = vpop.f32.mrf.mxu1  ;;  %v5592_v30 = vpop.f32.mrf.mxu0 }
 0xa44   : > { %v5594_v29 = vadd.f32 %v5591_v1, %v5430_v4 }
 0xa47   : > { %v5415_v52 = vpop.f32.mrf.mxu2  ;;  %v5428_v40 = vpop.f32.mrf.mxu3 }
 0xa5b   : > { %v5897_v41 = vpop.f32.mrf.mxu1  ;;  %v5910_v13 = vpop.f32.mrf.mxu0 }
 0xa5c   : > { %v5911_v48 = vadd.f32 %v5910_v13, %v5897_v41 }
 0xa5f   : > { %v5737_v15 = vpop.f32.mrf.mxu2  ;;  %v5750_v2 = vpop.f32.mrf.mxu3 }
 0xa60   : > { %v5751_v6 = vadd.f32 %v5750_v2, %v5737_v15 }
 0xa62   : > { %v5754_v11 = vadd.f32 %v5751_v6, %v5594_v29 }
 0xa63   : > { %v5899_v9 = vpop.f32.mrf.mxu1  ;;  %v5912_v32 = vpop.f32.mrf.mxu0 }
 0xa64   : > { %v5914_v10 = vadd.f32 %v5911_v48, %v5754_v11 }
 0xa67   : > { %v5739_v45 = vpop.f32.mrf.mxu2  ;;  %v5752_v50 = vpop.f32.mrf.mxu3 }
 0xa7b   : > { %v6217_v24 = vpop.f32.mrf.mxu1  ;;  %v6230_v16 = vpop.f32.mrf.mxu0 }
 0xa7c   : > { %v6231_v35 = vadd.f32 %v6230_v16, %v6217_v24 }
 0xa7f   : > { %v6057_v37 = vpop.f32.mrf.mxu2  ;;  %v6070_v5 = vpop.f32.mrf.mxu3 }
 0xa80   : > { %v6071_v23 = vadd.f32 %v6070_v5, %v6057_v37 }
 0xa82   : > { %v6074_v63 = vadd.f32 %v6071_v23, %v5914_v10 }
 0xa83   : > { %v6219_v55 = vpop.f32.mrf.mxu1  ;;  %v6232_v59 = vpop.f32.mrf.mxu0 }
 0xa84   : > { %v6234_v58 = vadd.f32 %v6231_v35, %v6074_v63 }
 0xa87   : > { %v6059_v61 = vpop.f32.mrf.mxu2  ;;  %v6072_v44 = vpop.f32.mrf.mxu3 }
 0xa9b   : > { %v6537_v51 = vpop.f32.mrf.mxu1  ;;  %v6550_v27 = vpop.f32.mrf.mxu0 }
 0xa9c   : > { %v6551_v20 = vadd.f32 %v6550_v27, %v6537_v51 }
 0xa9f   : > { %v6377_v8 = vpop.f32.mrf.mxu2  ;;  %v6390_v47 = vpop.f32.mrf.mxu3 }
 0xaa0   : > { %v6391_v42 = vadd.f32 %v6390_v47, %v6377_v8 }
 0xaa2   : > { %v6394_v60 = vadd.f32 %v6391_v42, %v6234_v58 }
 0xaa3   : > { %v6539_v53 = vpop.f32.mrf.mxu1  ;;  %v6552_v36 = vpop.f32.mrf.mxu0 }
 0xaa4   : > { %v6554_v7 = vadd.f32 %v6551_v20, %v6394_v60 }
 0xaa6   : > { %6556 = vst.msk [vmem:[%s378_s22] sm:$0x1] %vm6555_vm12, %v6554_v7 }
 0xaa7   : > { %v6379_v62 = vpop.f32.mrf.mxu2  ;;  %v6392_v18 = vpop.f32.mrf.mxu3 }
 0xaa8   : > { %10193 = shalt.err (!%p10190_p3)
}
 0xaa9   : > { %10123 = dma.vmem_to_hbm [thread:$0]  (%p10330_p5), %s6569_s24, 16, %s6571_s25, %s6558_s21  }
 0xaaa PF: > { %p10129_p4 = scmp.ge.s32.totalorder %s10228_s20, 2  ;;  %s6582_s13 = sand.u32 1, %s10216_s17  }
 0xaab   : > { %s6583_s16 = scalar_lea.sflag [#allocation5], %s6582_s13 }
 0xaac   : > { %p10126_p7 = pnand %p10129_p4, %p10334_p6 }
 0xaae   : > { %p10127_p8 = pneg %p10126_p7 }
 0xab0   : > { %10211 = dma.done.wait (%p10127_p8), %s6583_s16, 16  }
 0xab1   : > { %10213 = vsyncadd (%p10127_p8), %s6583_s16, 4294967280  ;;  %p21_p9 = scmp.ge.s32.totalorder %s10317_s23, 4   ;;  %s13128_s17 = smov %s10220_s18 }
 0xab2   : > { %s13129_s18 = smov %s10224_s19  ;;  %s13130_s19 = smov %s10328_s26 }
 0xab3   : > { %s13131_s20 = smov %s10317_s23  ;;  %23 = sbr.rel (!%p21_p9) target bundleno = 6 (0x6), region = 146 }
 0xab8   :  { %6588 = vsyncpa [#allocation5], 1 }
 0xab9   :  { %6590 = vsyncpa [#allocation5 + $0x1], 1 }

</bundles_post_ra>
